<compile_context>
chip_gen: v7x
topology: tpu7x:2x2x1
jax: 0.10.0
libtpu: 0.0.40
codegen_flags: <defaults>
</compile_context>

<pallas_src>
import jax
import jax.numpy as jnp
from jax import lax
from jax.experimental import pallas as pl
from jax.experimental.pallas import tpu as pltpu

# ---------------- model hyper-parameters (PyTorch defaults) ----------------
CLASS_NUM = 2
F1 = 8
D = 2
F2 = 16
KERN_LEN = 256
CHANS = 64

N = 2                         # batch
T = 1536                      # time samples -> F2 * (T/8/16) = 192 = Linear(192, 2) input
ROWS = N * CHANS              # 128 rows on sublanes (row = n*Chans + c)
PAD_L = (KERN_LEN - 1) // 2 + 1          # 128  (layer1 left pad)
PAD2_L = (KERN_LEN // 2 - 1) // 2 + 1    # 64   (layer4 left pad)
B2OFF = PAD_L - PAD2_L                   # 64   (branch-2 band offset inside xpad1)
TPAD = T + KERN_LEN           # 1792 lane-aligned padded time length
TP8 = T // 8                  # 192 positions surviving AvgPool(1,8)
TS = TP8 // 16                # 12  positions surviving AvgPool(1,16)
NTS = N * TS                  # 24  (both samples batched on lanes in the tail)
NCOL = 2 * TP8                # 384 active columns of the fused matmul
CTILE = 128                   # column tile of the fused matmul
NTILES = NCOL // CTILE        # 3 grid steps
BOX1 = KERN_LEN + 7           # 263 taps of the pool-folded branch-1 filter
BOX2 = KERN_LEN // 2 + 7      # 135 taps of the pool-folded branch-2 filter
assert F2 * TS == 192
assert TPAD % 128 == 0 and NCOL % CTILE == 0


# =============================== kernel =====================================

def fbtsa_kernel(xp_ref, wband_ref, cst_ref, pool_ref, slab_ref,
                 wlin_ref, blin_ref, out_ref, pcat_ref):
    """Whole FBTSANet_RB forward (eval semantics), fused & column-tiled."""
    f32 = jnp.float32
    j = pl.program_id(0)

    def elu(v):
        return jnp.where(v > 0, v, jnp.exp(v) - 1.0)

    # ---- front end: one 128-column tile of the fused banded matmul ----
    # layer1/layer4 + BN + layer2/layer5 1x1 + AvgPool(1,8) folded into wband.
    acc = jnp.dot(xp_ref[...], wband_ref[...], preferred_element_type=f32)   # (128, 128)
    e = elu(acc + cst_ref[...])
    # TODO(synk): F.dropout(0.5)/Dropout(0.3) default to training mode (stochastic);
    # implemented as identity (inference semantics) to stay deterministic.

    # AvgPool(1,16) of layer3 (commuted in front of its affine ops) as a matmul,
    # accumulated across column tiles into VMEM scratch.
    contrib = jnp.dot(e, pool_ref[...], preferred_element_type=f32)          # (128, 24)

    @pl.when(j == 0)
    def _():
        pcat_ref[...] = jnp.zeros_like(pcat_ref)

    pcat_ref[...] += contrib

    # ---- tail: layer3 + TCN residual blocks + Linear, once, on the last tile ----
    @pl.when(j == NTILES - 1)
    def _():
        pcat = pcat_ref[...]                                   # (128, 24)
        # rows (n*64+c), cols [branch1 t0..11 | branch2 t0..11]
        #   ->  rows [branch1 ch 0..63 ; branch2 ch 0..63], cols [sample0 | sample1]
        b1 = jnp.concatenate([pcat[0:CHANS, 0:TS], pcat[CHANS:ROWS, 0:TS]], axis=1)
        b2 = jnp.concatenate([pcat[0:CHANS, TS:NTS], pcat[CHANS:ROWS, TS:NTS]], axis=1)
        pstack = jnp.concatenate([b1, b2], axis=0)             # (128, 24)

        # layer3: grouped (Chans,1) conv + 1x1 conv + BN3, folded to one affine map.
        w3 = slab_ref[0:16, :]                                 # (16, 128)
        beff3 = slab_ref[48:64, 0:1]                           # (16, 1)
        y = elu(jnp.dot(w3, pstack, preferred_element_type=f32) + beff3)    # (16, 24)

        zg = jnp.zeros((F2, 3), f32)
        lane = lax.broadcasted_iota(jnp.int32, (1, NTS), 1)
        tmod = jnp.where(lane >= TS, lane - TS, lane)          # per-sample time index

        def tcn_layer(yin, w_stk, b, pad_left, dil):
            # Conv1d(k=4, dilation=dil) + folded BatchNorm1d on both samples at once:
            # one (16,64)x(64,24) matmul against the shift-stacked input.
            yg = jnp.concatenate([zg, yin, zg], axis=1)        # (16, 30) guard-padded
            parts = []
            for k in range(4):
                s = k * dil - pad_left                          # shift in [-3, 3]
                seg = yg[:, 3 + s:3 + s + NTS]                  # (16, 24)
                msk = ((tmod + s >= 0) & (tmod + s < TS)).astype(f32)
                parts.append(seg * msk)                         # zero outside own sample
            ystk = jnp.concatenate(parts, axis=0)               # (64, 24)
            return jnp.dot(w_stk, ystk, preferred_element_type=f32) + b

        wt1a = slab_ref[16:32, 0:64]
        wt1b = slab_ref[16:32, 64:128]
        wt2a = slab_ref[32:48, 0:64]
        wt2b = slab_ref[32:48, 64:128]
        bt1a = slab_ref[48:64, 1:2]
        bt1b = slab_ref[48:64, 2:3]
        bt2a = slab_ref[48:64, 3:4]
        bt2b = slab_ref[48:64, 4:5]

        # tcn_block1: two (k=4, dil=1, pad (2,1)) conv+BN+ELU layers, residual
        t1 = elu(tcn_layer(y, wt1a, bt1a, 2, 1))
        rb1 = elu(tcn_layer(t1, wt1b, bt1b, 2, 1))
        y = y + rb1
        # tcn_block2: two (k=4, dil=2, pad (3,3)) conv+BN+ELU layers, residual
        t2 = elu(tcn_layer(y, wt2a, bt2a, 3, 2))
        rb2 = elu(tcn_layer(t2, wt2b, bt2b, 3, 2))
        y = y + rb2

        # Flatten + Linear(192, class_num)
        rows = []
        for n in range(N):
            yn = y[:, n * TS:(n + 1) * TS]                      # (16, 12)
            r = jnp.sum(jnp.sum(wlin_ref[...] * yn[None, :, :], axis=2), axis=1)   # (2,)
            rows.append(r.reshape(1, CLASS_NUM))
        out_ref[...] = jnp.concatenate(rows, axis=0) + blin_ref[...]


def fbtsa_pallas(xp, wband, cst, pool, slab, wlin, blin):
    return pl.pallas_call(
        fbtsa_kernel,
        out_shape=jax.ShapeDtypeStruct((N, CLASS_NUM), jnp.float32),
        grid=(NTILES,),
        in_specs=[
            pl.BlockSpec((ROWS, TPAD), lambda j: (0, 0)),       # xp (resident)
            pl.BlockSpec((TPAD, CTILE), lambda j: (0, j)),      # wband column tile
            pl.BlockSpec((1, CTILE), lambda j: (0, j)),         # cst column tile
            pl.BlockSpec((CTILE, NTS), lambda j: (j, 0)),       # pool row tile
            pl.BlockSpec((64, 128), lambda j: (0, 0)),          # packed param slab
            pl.BlockSpec((CLASS_NUM, F2, TS), lambda j: (0, 0, 0)),
            pl.BlockSpec((1, CLASS_NUM), lambda j: (0, 0)),
        ],
        out_specs=pl.BlockSpec((N, CLASS_NUM), lambda j: (0, 0)),
        scratch_shapes=[pltpu.VMEM((ROWS, NTS), jnp.float32)],
        compiler_params=pltpu.CompilerParams(dimension_semantics=("arbitrary",)),
    )(xp, wband, cst, pool, slab, wlin, blin)


# =============================== glue =======================================

def _bn_fold(gamma, beta, mean, var, eps):
    scale = gamma / jnp.sqrt(var + eps)
    return scale, beta - mean * scale


@jax.jit
def fbtsa_forward(x, p):
    HI = lax.Precision.HIGHEST
    sc1, sh1 = _bn_fold(p['bn1_g'], p['bn1_b'], p['bn1_m'], p['bn1_v'], 0.0)
    sc4, sh4 = _bn_fold(p['bn4_g'], p['bn4_b'], p['bn4_m'], p['bn4_v'], 0.0)
    sc3, sh3 = _bn_fold(p['bn3_g'], p['bn3_b'], p['bn3_m'], p['bn3_v'], 0.0)

    # ---- fold layer1+BN1+layer2-1x1 and layer4+BN4+layer5-1x1 into single filters
    weff1 = jnp.einsum('f,fk->k', p['w2'] * sc1, p['w1a'], precision=HI)    # (256,)
    weff2 = jnp.einsum('f,fk->k', p['w5'] * sc4, p['w4a'], precision=HI)    # (128,)
    c1 = jnp.dot(p['w2'], sh1, precision=HI) + p['b2']
    c2 = jnp.dot(p['w5'], sh4, precision=HI) + p['b5']
    # fold AvgPool(1,8) (real averaging) into the filters: 8-tap box filter
    box1 = jnp.convolve(weff1, jnp.ones(8, jnp.float32), precision=HI) / 8.0   # (263,)
    box2 = jnp.convolve(weff2, jnp.ones(8, jnp.float32), precision=HI) / 8.0   # (135,)

    # ---- banded weight: column q of branch b reads xpad[8q (+64 for b2) + m]
    r = jnp.arange(TPAD)[:, None]
    q = jnp.arange(TP8)[None, :]
    m1 = r - 8 * q
    m2 = r - 8 * q - B2OFF
    band1 = jnp.where((m1 >= 0) & (m1 < BOX1), box1[jnp.clip(m1, 0, BOX1 - 1)], 0.0)
    band2 = jnp.where((m2 >= 0) & (m2 < BOX2), box2[jnp.clip(m2, 0, BOX2 - 1)], 0.0)
    wband = jnp.concatenate([band1, band2], axis=1)                        # (1792, 384)
    cst = jnp.concatenate([jnp.full((1, TP8), c1, jnp.float32),
                           jnp.full((1, TP8), c2, jnp.float32)], axis=1)   # (1, 384)

    # ---- AvgPool(1,16) of layer3 as a matmul (commutes with its affine ops)
    rr = jnp.arange(NCOL)[:, None]
    qq = jnp.arange(NTS)[None, :]
    sel1 = (rr < TP8) & (qq < TS) & ((rr // 16) == qq)
    sel2 = (rr >= TP8) & (qq >= TS) & (((rr - TP8) // 16) == (qq - TS))
    pool = (sel1 | sel2).astype(jnp.float32) / 16.0                        # (384, 24)

    # ---- layer3: grouped (Chans,1) conv + 1x1 conv + BN3 folded to one affine map
    G = jnp.zeros((F1 * D, 2 * CHANS), jnp.float32)
    G = G.at[0:F1, 0:CHANS].set(p['wg'][0:F1])                    # group 0 <- branch 1
    G = G.at[F1:F1 * D, CHANS:2 * CHANS].set(p['wg'][F1:F1 * D])  # group 1 <- branch 2
    weff3 = jnp.einsum('oi,ic->oc', sc3[:, None] * p['w1x1'], G, precision=HI)   # (16, 128)
    beff3 = (sc3[:, None] * (jnp.dot(p['w1x1'], p['b3'][:, None], precision=HI)
                             + p['b1x1'][:, None]) + sh3[:, None])               # (16, 1)

    # ---- TCN: fold BatchNorm1d (eps=1e-5, eval) + stack the 4 taps along K
    def tcn_fold(blk):
        sc, sh = _bn_fold(p[f'{blk}_bng'], p[f'{blk}_bnb'],
                          p[f'{blk}_bnm'], p[f'{blk}_bnv'], 1e-5)
        w = p[f'{blk}_w']                                             # (16, 16, 4)
        wst = jnp.concatenate([sc[:, None] * w[:, :, k] for k in range(4)], axis=1)  # (16,64)
        bt = (sc * p[f'{blk}_b'] + sh)[:, None]                       # (16, 1)
        return wst, bt

    wst1a, bt1a = tcn_fold('t1a')
    wst1b, bt1b = tcn_fold('t1b')
    wst2a, bt2a = tcn_fold('t2a')
    wst2b, bt2b = tcn_fold('t2b')

    # ---- pack all small parameters into one (64, 128) f32 slab
    slab = jnp.zeros((64, 128), jnp.float32)
    slab = slab.at[0:16, :].set(weff3)
    slab = slab.at[16:32, 0:64].set(wst1a).at[16:32, 64:128].set(wst1b)
    slab = slab.at[32:48, 0:64].set(wst2a).at[32:48, 64:128].set(wst2b)
    slab = slab.at[48:64, 0:1].set(beff3)
    slab = slab.at[48:64, 1:2].set(bt1a).at[48:64, 2:3].set(bt1b)
    slab = slab.at[48:64, 3:4].set(bt2a).at[48:64, 4:5].set(bt2b)

    # ---- input rows on sublanes, padded time on lanes (shared by both branches)
    xrows = x[:, 0].reshape(ROWS, T)
    xp = jnp.pad(xrows, ((0, 0), (PAD_L, TPAD - T - PAD_L)))

    return fbtsa_pallas(xp.astype(jnp.bfloat16), wband.astype(jnp.bfloat16),
                        cst, pool, slab,
                        p['wlin'].reshape(CLASS_NUM, F2, TS),
                        p['blin'].reshape(1, CLASS_NUM))


# ---------------- pure-JAX reference (PyTorch eval semantics) ---------------

def _elu(v):
    return jnp.where(v > 0, v, jnp.exp(v) - 1.0)


@jax.jit
def reference_forward(x, p):
    HI = lax.Precision.HIGHEST
    sc1, sh1 = _bn_fold(p['bn1_g'], p['bn1_b'], p['bn1_m'], p['bn1_v'], 0.0)
    sc4, sh4 = _bn_fold(p['bn4_g'], p['bn4_b'], p['bn4_m'], p['bn4_v'], 0.0)
    sc3, sh3 = _bn_fold(p['bn3_g'], p['bn3_b'], p['bn3_m'], p['bn3_v'], 0.0)

    def branch(w1, sc, sh, w1x1v, b1x1s, padl, padr, klen):
        xpad = jnp.pad(x, ((0, 0), (0, 0), (0, 0), (padl, padr)))
        y = lax.conv_general_dilated(
            xpad, w1.reshape(F1, 1, 1, klen), window_strides=(1, 1), padding='VALID',
            dimension_numbers=('NCHW', 'OIHW', 'NCHW'), precision=HI)      # (N,F1,64,T)
        y = y * sc[None, :, None, None] + sh[None, :, None, None]          # BN (eval)
        y = jnp.einsum('f,nfct->nct', w1x1v, y, precision=HI) + b1x1s      # 1x1 conv
        y = y.reshape(N, CHANS, T // 8, 8).mean(axis=-1)                   # AvgPool(1,8)
        return _elu(y)                                                     # (N, 64, 192)

    y1 = branch(p['w1a'], sc1, sh1, p['w2'], p['b2'], PAD_L, PAD_L - 1, KERN_LEN)
    y2 = branch(p['w4a'], sc4, sh4, p['w5'], p['b5'], PAD2_L, PAD2_L - 1, KERN_LEN // 2)

    # layer3
    g0 = jnp.einsum('oc,nct->not', p['wg'][0:F1], y1, precision=HI)
    g1 = jnp.einsum('oc,nct->not', p['wg'][F1:F1 * D], y2, precision=HI)
    z = jnp.concatenate([g0, g1], axis=1) + p['b3'][None, :, None]
    z = jnp.einsum('oi,nit->not', p['w1x1'], z, precision=HI) + p['b1x1'][None, :, None]
    z = z * sc3[None, :, None] + sh3[None, :, None]
    z = z.reshape(N, F1 * D, TS, 16).mean(axis=-1)                         # AvgPool(1,16)
    y = _elu(z)                                                            # (N, 16, 12)

    def tcn_layer(yin, w, b, g, be, mn, vr, padl, padr, dil):
        sc, sh = _bn_fold(g, be, mn, vr, 1e-5)
        ypad = jnp.pad(yin, ((0, 0), (0, 0), (padl, padr)))
        o = jnp.zeros((N, F2, TS), jnp.float32) + b[None, :, None]
        for k in range(4):
            o = o + jnp.einsum('oi,nit->not', w[:, :, k],
                               ypad[:, :, k * dil:k * dil + TS], precision=HI)
        return _elu(o * sc[None, :, None] + sh[None, :, None])

    t1 = tcn_layer(y, p['t1a_w'], p['t1a_b'], p['t1a_bng'], p['t1a_bnb'],
                   p['t1a_bnm'], p['t1a_bnv'], 2, 1, 1)
    rb1 = tcn_layer(t1, p['t1b_w'], p['t1b_b'], p['t1b_bng'], p['t1b_bnb'],
                    p['t1b_bnm'], p['t1b_bnv'], 2, 1, 1)
    y = y + rb1
    t2 = tcn_layer(y, p['t2a_w'], p['t2a_b'], p['t2a_bng'], p['t2a_bnb'],
                   p['t2a_bnm'], p['t2a_bnv'], 3, 3, 2)
    rb2 = tcn_layer(t2, p['t2b_w'], p['t2b_b'], p['t2b_bng'], p['t2b_bnb'],
                    p['t2b_bnm'], p['t2b_bnv'], 3, 3, 2)
    y = y + rb2
    flat = y.reshape(N, F2 * TS)
    return jnp.einsum('nk,ck->nc', flat, p['wlin'], precision=HI) + p['blin'][None, :]


# =============================== params =====================================

def init_params(key):
    keys = list(jax.random.split(key, 64))
    it = iter(keys)

    def nrm(shape, scale):
        return scale * jax.random.normal(next(it), shape, jnp.float32)

    def uni(shape):
        return jax.random.uniform(next(it), shape, jnp.float32, 0.5, 1.5)

    p = {}
    p['w1a'] = nrm((F1, KERN_LEN), 0.05)          # layer1 Conv2d(1,F1,(1,256),bias=False)
    p['bn1_g'] = 1.0 + nrm((F1,), 0.1); p['bn1_b'] = nrm((F1,), 0.1)
    p['bn1_m'] = nrm((F1,), 0.1);       p['bn1_v'] = uni((F1,))
    p['w2'] = nrm((F1,), 0.3); p['b2'] = nrm((), 0.1)          # layer2 1x1 conv
    p['w4a'] = nrm((F1, KERN_LEN // 2), 0.07)     # layer4 Conv2d(1,F1,(1,128),bias=False)
    p['bn4_g'] = 1.0 + nrm((F1,), 0.1); p['bn4_b'] = nrm((F1,), 0.1)
    p['bn4_m'] = nrm((F1,), 0.1);       p['bn4_v'] = uni((F1,))
    p['w5'] = nrm((F1,), 0.3); p['b5'] = nrm((), 0.1)          # layer5 1x1 conv
    p['wg'] = nrm((F1 * D, CHANS), 0.1)           # layer3 Conv2d(2,16,(Chans,1),groups=2)
    p['b3'] = nrm((F1 * D,), 0.1)
    p['w1x1'] = nrm((F1 * D, F1 * D), 0.2)        # layer3 Conv2d(16,16,(1,1))
    p['b1x1'] = nrm((F1 * D,), 0.1)
    p['bn3_g'] = 1.0 + nrm((F1 * D,), 0.1); p['bn3_b'] = nrm((F1 * D,), 0.1)
    p['bn3_m'] = nrm((F1 * D,), 0.1);       p['bn3_v'] = uni((F1 * D,))
    for blk in ('t1a', 't1b', 't2a', 't2b'):      # TCN Conv1d(16,16,4) + BatchNorm1d(16)
        p[f'{blk}_w'] = nrm((F2, F2, 4), 0.15)
        p[f'{blk}_b'] = nrm((F2,), 0.1)
        p[f'{blk}_bng'] = 1.0 + nrm((F2,), 0.1)
        p[f'{blk}_bnb'] = nrm((F2,), 0.1)
        p[f'{blk}_bnm'] = nrm((F2,), 0.1)
        p[f'{blk}_bnv'] = uni((F2,))
    p['wlin'] = nrm((CLASS_NUM, F2 * TS), 0.07)   # Linear(192, class_num)
    p['blin'] = nrm((CLASS_NUM,), 0.1)
    return p


# ================================ main ======================================

if __name__ == "__main__":
    key = jax.random.PRNGKey(0)
    kx, kp = jax.random.split(key)
    x = jax.random.normal(kx, (N, 1, CHANS, T), jnp.float32)
    params = init_params(kp)

    logits = jax.block_until_ready(fbtsa_forward(x, params))
    ref = jax.block_until_ready(reference_forward(x, params))

    assert logits.shape == (N, CLASS_NUM)
    assert bool(jnp.allclose(logits, ref, rtol=3e-2, atol=3e-2)), (logits, ref)

    print("KERNEL_OK")
</pallas_src>

<mosaic_0001>
module attributes {stable_mosaic.version = 11 : i64} {
  func.func @fbtsa_kernel(%arg0: i32, %arg1: memref<128x1792xbf16, #tpu.memory_space<vmem>>, %arg2: memref<1792x128xbf16, #tpu.memory_space<vmem>>, %arg3: memref<1x128xf32, #tpu.memory_space<vmem>>, %arg4: memref<128x24xf32, #tpu.memory_space<vmem>>, %arg5: memref<64x128xf32, #tpu.memory_space<vmem>>, %arg6: memref<2x16x12xf32, #tpu.memory_space<vmem>>, %arg7: memref<1x2xf32, #tpu.memory_space<vmem>>, %arg8: memref<2x2xf32, #tpu.memory_space<vmem>>, %arg9: memref<128x24xf32, #tpu.memory_space<vmem>>) attributes {dimension_semantics = [#tpu.dimension_semantics<arbitrary>], iteration_bounds = array<i64: 3>, scalar_prefetch = 0 : i64, scratch_operands = 1 : i64, tpu.core_type = #tpu.core_type<tc>, window_params = [{pipeline_mode = #tpu.pipeline_mode<synchronous>, transform_indices = @transform_0, window_bounds = array<i64: 128, 1792>}, {transform_indices = @transform_1, window_bounds = array<i64: 1792, 128>}, {transform_indices = @transform_2, window_bounds = array<i64: 1, 128>}, {transform_indices = @transform_3, window_bounds = array<i64: 128, 24>}, {pipeline_mode = #tpu.pipeline_mode<synchronous>, transform_indices = @transform_4, window_bounds = array<i64: 64, 128>}, {pipeline_mode = #tpu.pipeline_mode<synchronous>, transform_indices = @transform_5, window_bounds = array<i64: 2, 16, 12>}, {pipeline_mode = #tpu.pipeline_mode<synchronous>, transform_indices = @transform_6, window_bounds = array<i64: 1, 2>}, {pipeline_mode = #tpu.pipeline_mode<synchronous>, transform_indices = @transform_7, window_bounds = array<i64: 2, 2>}]} {
    %c0 = arith.constant 0 : index
    %c0_0 = arith.constant 0 : index
    %0 = vector.load %arg1[%c0, %c0_0] : memref<128x1792xbf16, #tpu.memory_space<vmem>>, vector<128x1792xbf16>
    %c0_1 = arith.constant 0 : index
    %c0_2 = arith.constant 0 : index
    %1 = vector.load %arg2[%c0_1, %c0_2] : memref<1792x128xbf16, #tpu.memory_space<vmem>>, vector<1792x128xbf16>
    %cst = arith.constant dense<0.000000e+00> : vector<128x128xf32>
    %2 = tpu.matmul %0, %1, %cst {dimension_numbers = #tpu.dot_dimension_numbers<[1], [0], [0], [1], [0, 0, 1, 1], [], []>} : vector<128x1792xbf16>, vector<1792x128xbf16>, vector<128x128xf32> -> vector<128x128xf32>
    %c0_3 = arith.constant 0 : index
    %c0_4 = arith.constant 0 : index
    %3 = vector.load %arg3[%c0_3, %c0_4] : memref<1x128xf32, #tpu.memory_space<vmem>>, vector<1x128xf32>
    %4 = vector.broadcast %3 : vector<1x128xf32> to vector<128x128xf32>
    %5 = arith.addf %2, %4 : vector<128x128xf32>
    %cst_5 = arith.constant 0.000000e+00 : f32
    %6 = vector.broadcast %cst_5 : f32 to vector<128x128xf32>
    %7 = arith.cmpf ogt, %5, %6 : vector<128x128xf32>
    %8 = math.exp %5 : vector<128x128xf32>
    %cst_6 = arith.constant 1.000000e+00 : f32
    %9 = vector.broadcast %cst_6 : f32 to vector<128x128xf32>
    %10 = arith.subf %8, %9 : vector<128x128xf32>
    %11 = arith.select %7, %5, %10 : vector<128x128xi1>, vector<128x128xf32>
    %c0_7 = arith.constant 0 : index
    %c0_8 = arith.constant 0 : index
    %12 = vector.load %arg4[%c0_7, %c0_8] : memref<128x24xf32, #tpu.memory_space<vmem>>, vector<128x24xf32>
    %cst_9 = arith.constant dense<0.000000e+00> : vector<128x24xf32>
    %13 = tpu.matmul %11, %12, %cst_9 {dimension_numbers = #tpu.dot_dimension_numbers<[1], [0], [0], [1], [0, 0, 1, 1], [], []>} : vector<128x128xf32>, vector<128x24xf32>, vector<128x24xf32> -> vector<128x24xf32>
    %c0_i32 = arith.constant 0 : i32
    %14 = arith.cmpi eq, %arg0, %c0_i32 : i32
    %15 = arith.extui %14 : i1 to i32
    %c0_i32_10 = arith.constant 0 : i32
    %16 = arith.cmpi ne, %15, %c0_i32_10 : i32
    scf.if %16 {
      %cst_16 = arith.constant 0.000000e+00 : f32
      %23 = vector.broadcast %cst_16 : f32 to vector<128x24xf32>
      %c0_17 = arith.constant 0 : index
      %c0_18 = arith.constant 0 : index
      %24 = vector.load %arg9[%c0_17, %c0_18] : memref<128x24xf32, #tpu.memory_space<vmem>>, vector<128x24xf32>
      tpu.vector_store %arg9[%c0_17, %c0_18], %23 {strides = array<i32>} : memref<128x24xf32, #tpu.memory_space<vmem>>, vector<128x24xf32>,
    } else {
    }
    %c0_11 = arith.constant 0 : index
    %c0_12 = arith.constant 0 : index
    %17 = vector.load %arg9[%c0_11, %c0_12] : memref<128x24xf32, #tpu.memory_space<vmem>>, vector<128x24xf32>
    %18 = arith.addf %17, %13 : vector<128x24xf32>
    %c0_13 = arith.constant 0 : index
    %c0_14 = arith.constant 0 : index
    %19 = vector.load %arg9[%c0_13, %c0_14] : memref<128x24xf32, #tpu.memory_space<vmem>>, vector<128x24xf32>
    tpu.vector_store %arg9[%c0_13, %c0_14], %18 {strides = array<i32>} : memref<128x24xf32, #tpu.memory_space<vmem>>, vector<128x24xf32>,
    %c2_i32 = arith.constant 2 : i32
    %20 = arith.cmpi eq, %arg0, %c2_i32 : i32
    %21 = arith.extui %20 : i1 to i32
    %c0_i32_15 = arith.constant 0 : i32
    %22 = arith.cmpi ne, %21, %c0_i32_15 : i32
    scf.if %22 {
      %c0_16 = arith.constant 0 : index
      %c0_17 = arith.constant 0 : index
      %23 = vector.load %arg9[%c0_16, %c0_17] : memref<128x24xf32, #tpu.memory_space<vmem>>, vector<128x24xf32>
      %24 = vector.extract_strided_slice %23 {offsets = [0, 0], sizes = [64, 12], strides = [1, 1]} : vector<128x24xf32> to vector<64x12xf32>
      %25 = vector.extract_strided_slice %23 {offsets = [64, 0], sizes = [64, 12], strides = [1, 1]} : vector<128x24xf32> to vector<64x12xf32>
      %26 = tpu.concatenate %24, %25 in 1 : vector<64x12xf32>, vector<64x12xf32> -> vector<64x24xf32>
      %27 = vector.extract_strided_slice %23 {offsets = [0, 12], sizes = [64, 12], strides = [1, 1]} : vector<128x24xf32> to vector<64x12xf32>
      %28 = vector.extract_strided_slice %23 {offsets = [64, 12], sizes = [64, 12], strides = [1, 1]} : vector<128x24xf32> to vector<64x12xf32>
      %29 = tpu.concatenate %27, %28 in 1 : vector<64x12xf32>, vector<64x12xf32> -> vector<64x24xf32>
      %30 = tpu.concatenate %26, %29 in 0 : vector<64x24xf32>, vector<64x24xf32> -> vector<128x24xf32>
      %c0_18 = arith.constant 0 : index
      %c0_19 = arith.constant 0 : index
      %31 = vector.load %arg5[%c0_18, %c0_19] : memref<64x128xf32, #tpu.memory_space<vmem>>, vector<16x128xf32>
      %c48 = arith.constant 48 : index
      %c0_20 = arith.constant 0 : index
      %32 = vector.load %arg5[%c48, %c0_20] : memref<64x128xf32, #tpu.memory_space<vmem>>, vector<16x1xf32>
      %cst_21 = arith.constant dense<0.000000e+00> : vector<16x24xf32>
      %33 = tpu.matmul %31, %30, %cst_21 {dimension_numbers = #tpu.dot_dimension_numbers<[1], [0], [0], [1], [0, 0, 1, 1], [], []>} : vector<16x128xf32>, vector<128x24xf32>, vector<16x24xf32> -> vector<16x24xf32>
      %34 = vector.broadcast %32 : vector<16x1xf32> to vector<16x24xf32>
      %35 = arith.addf %33, %34 : vector<16x24xf32>
      %cst_22 = arith.constant 0.000000e+00 : f32
      %36 = vector.broadcast %cst_22 : f32 to vector<16x24xf32>
      %37 = arith.cmpf ogt, %35, %36 : vector<16x24xf32>
      %38 = math.exp %35 : vector<16x24xf32>
      %cst_23 = arith.constant 1.000000e+00 : f32
      %39 = vector.broadcast %cst_23 : f32 to vector<16x24xf32>
      %40 = arith.subf %38, %39 : vector<16x24xf32>
      %41 = arith.select %37, %35, %40 : vector<16x24xi1>, vector<16x24xf32>
      %cst_24 = arith.constant 0.000000e+00 : f32
      %42 = vector.broadcast %cst_24 : f32 to vector<16x3xf32>
      %43 = tpu.iota {dimensions = array<i32: 1>} : vector<1x24xi32>
      %c12_i32 = arith.constant 12 : i32
      %44 = vector.broadcast %c12_i32 : i32 to vector<1x24xi32>
      %45 = arith.cmpi sge, %43, %44 : vector<1x24xi32>
      %c12_i32_25 = arith.constant 12 : i32
      %46 = vector.broadcast %c12_i32_25 : i32 to vector<1x24xi32>
      %47 = arith.subi %43, %46 : vector<1x24xi32>
      %48 = arith.select %45, %47, %43 : vector<1x24xi1>, vector<1x24xi32>
      %c16 = arith.constant 16 : index
      %c0_26 = arith.constant 0 : index
      %49 = vector.load %arg5[%c16, %c0_26] : memref<64x128xf32, #tpu.memory_space<vmem>>, vector<16x64xf32>
      %c16_27 = arith.constant 16 : index
      %c64 = arith.constant 64 : index
      %50 = vector.load %arg5[%c16_27, %c64] : memref<64x128xf32, #tpu.memory_space<vmem>>, vector<16x64xf32>
      %c32 = arith.constant 32 : index
      %c0_28 = arith.constant 0 : index
      %51 = vector.load %arg5[%c32, %c0_28] : memref<64x128xf32, #tpu.memory_space<vmem>>, vector<16x64xf32>
      %c32_29 = arith.constant 32 : index
      %c64_30 = arith.constant 64 : index
      %52 = vector.load %arg5[%c32_29, %c64_30] : memref<64x128xf32, #tpu.memory_space<vmem>>, vector<16x64xf32>
      %c48_31 = arith.constant 48 : index
      %c1 = arith.constant 1 : index
      %53 = vector.load %arg5[%c48_31, %c1] : memref<64x128xf32, #tpu.memory_space<vmem>>, vector<16x1xf32>
      %c48_32 = arith.constant 48 : index
      %c2 = arith.constant 2 : index
      %54 = vector.load %arg5[%c48_32, %c2] : memref<64x128xf32, #tpu.memory_space<vmem>>, vector<16x1xf32>
      %c48_33 = arith.constant 48 : index
      %c3 = arith.constant 3 : index
      %55 = vector.load %arg5[%c48_33, %c3] : memref<64x128xf32, #tpu.memory_space<vmem>>, vector<16x1xf32>
      %c48_34 = arith.constant 48 : index
      %c4 = arith.constant 4 : index
      %56 = vector.load %arg5[%c48_34, %c4] : memref<64x128xf32, #tpu.memory_space<vmem>>, vector<16x1xf32>
      %57 = tpu.concatenate %42, %41, %42 in 1 : vector<16x3xf32>, vector<16x24xf32>, vector<16x3xf32> -> vector<16x30xf32>
      %58 = vector.extract_strided_slice %57 {offsets = [0, 1], sizes = [16, 24], strides = [1, 1]} : vector<16x30xf32> to vector<16x24xf32>
      %c-2_i32 = arith.constant -2 : i32
      %59 = vector.broadcast %c-2_i32 : i32 to vector<1x24xi32>
      %60 = arith.addi %48, %59 : vector<1x24xi32>
      %c0_i32_35 = arith.constant 0 : i32
      %61 = vector.broadcast %c0_i32_35 : i32 to vector<1x24xi32>
      %62 = arith.cmpi sge, %60, %61 : vector<1x24xi32>
      %c-2_i32_36 = arith.constant -2 : i32
      %63 = vector.broadcast %c-2_i32_36 : i32 to vector<1x24xi32>
      %64 = arith.addi %48, %63 : vector<1x24xi32>
      %c12_i32_37 = arith.constant 12 : i32
      %65 = vector.broadcast %c12_i32_37 : i32 to vector<1x24xi32>
      %66 = arith.cmpi slt, %64, %65 : vector<1x24xi32>
      %67 = arith.andi %62, %66 : vector<1x24xi1>
      %68 = arith.extui %67 : vector<1x24xi1> to vector<1x24xi32>
      %69 = arith.sitofp %68 : vector<1x24xi32> to vector<1x24xf32>
      %70 = vector.broadcast %69 : vector<1x24xf32> to vector<16x24xf32>
      %71 = arith.mulf %58, %70 : vector<16x24xf32>
      %72 = vector.extract_strided_slice %57 {offsets = [0, 2], sizes = [16, 24], strides = [1, 1]} : vector<16x30xf32> to vector<16x24xf32>
      %c-1_i32 = arith.constant -1 : i32
      %73 = vector.broadcast %c-1_i32 : i32 to vector<1x24xi32>
      %74 = arith.addi %48, %73 : vector<1x24xi32>
      %c0_i32_38 = arith.constant 0 : i32
      %75 = vector.broadcast %c0_i32_38 : i32 to vector<1x24xi32>
      %76 = arith.cmpi sge, %74, %75 : vector<1x24xi32>
      %c-1_i32_39 = arith.constant -1 : i32
      %77 = vector.broadcast %c-1_i32_39 : i32 to vector<1x24xi32>
      %78 = arith.addi %48, %77 : vector<1x24xi32>
      %c12_i32_40 = arith.constant 12 : i32
      %79 = vector.broadcast %c12_i32_40 : i32 to vector<1x24xi32>
      %80 = arith.cmpi slt, %78, %79 : vector<1x24xi32>
      %81 = arith.andi %76, %80 : vector<1x24xi1>
      %82 = arith.extui %81 : vector<1x24xi1> to vector<1x24xi32>
      %83 = arith.sitofp %82 : vector<1x24xi32> to vector<1x24xf32>
      %84 = vector.broadcast %83 : vector<1x24xf32> to vector<16x24xf32>
      %85 = arith.mulf %72, %84 : vector<16x24xf32>
      %86 = vector.extract_strided_slice %57 {offsets = [0, 3], sizes = [16, 24], strides = [1, 1]} : vector<16x30xf32> to vector<16x24xf32>
      %c0_i32_41 = arith.constant 0 : i32
      %87 = vector.broadcast %c0_i32_41 : i32 to vector<1x24xi32>
      %88 = arith.addi %48, %87 : vector<1x24xi32>
      %c0_i32_42 = arith.constant 0 : i32
      %89 = vector.broadcast %c0_i32_42 : i32 to vector<1x24xi32>
      %90 = arith.cmpi sge, %88, %89 : vector<1x24xi32>
      %c0_i32_43 = arith.constant 0 : i32
      %91 = vector.broadcast %c0_i32_43 : i32 to vector<1x24xi32>
      %92 = arith.addi %48, %91 : vector<1x24xi32>
      %c12_i32_44 = arith.constant 12 : i32
      %93 = vector.broadcast %c12_i32_44 : i32 to vector<1x24xi32>
      %94 = arith.cmpi slt, %92, %93 : vector<1x24xi32>
      %95 = arith.andi %90, %94 : vector<1x24xi1>
      %96 = arith.extui %95 : vector<1x24xi1> to vector<1x24xi32>
      %97 = arith.sitofp %96 : vector<1x24xi32> to vector<1x24xf32>
      %98 = vector.broadcast %97 : vector<1x24xf32> to vector<16x24xf32>
      %99 = arith.mulf %86, %98 : vector<16x24xf32>
      %100 = vector.extract_strided_slice %57 {offsets = [0, 4], sizes = [16, 24], strides = [1, 1]} : vector<16x30xf32> to vector<16x24xf32>
      %c1_i32 = arith.constant 1 : i32
      %101 = vector.broadcast %c1_i32 : i32 to vector<1x24xi32>
      %102 = arith.addi %48, %101 : vector<1x24xi32>
      %c0_i32_45 = arith.constant 0 : i32
      %103 = vector.broadcast %c0_i32_45 : i32 to vector<1x24xi32>
      %104 = arith.cmpi sge, %102, %103 : vector<1x24xi32>
      %c1_i32_46 = arith.constant 1 : i32
      %105 = vector.broadcast %c1_i32_46 : i32 to vector<1x24xi32>
      %106 = arith.addi %48, %105 : vector<1x24xi32>
      %c12_i32_47 = arith.constant 12 : i32
      %107 = vector.broadcast %c12_i32_47 : i32 to vector<1x24xi32>
      %108 = arith.cmpi slt, %106, %107 : vector<1x24xi32>
      %109 = arith.andi %104, %108 : vector<1x24xi1>
      %110 = arith.extui %109 : vector<1x24xi1> to vector<1x24xi32>
      %111 = arith.sitofp %110 : vector<1x24xi32> to vector<1x24xf32>
      %112 = vector.broadcast %111 : vector<1x24xf32> to vector<16x24xf32>
      %113 = arith.mulf %100, %112 : vector<16x24xf32>
      %114 = tpu.concatenate %71, %85, %99, %113 in 0 : vector<16x24xf32>, vector<16x24xf32>, vector<16x24xf32>, vector<16x24xf32> -> vector<64x24xf32>
      %cst_48 = arith.constant dense<0.000000e+00> : vector<16x24xf32>
      %115 = tpu.matmul %49, %114, %cst_48 {dimension_numbers = #tpu.dot_dimension_numbers<[1], [0], [0], [1], [0, 0, 1, 1], [], []>} : vector<16x64xf32>, vector<64x24xf32>, vector<16x24xf32> -> vector<16x24xf32>
      %116 = vector.broadcast %53 : vector<16x1xf32> to vector<16x24xf32>
      %117 = arith.addf %115, %116 : vector<16x24xf32>
      %cst_49 = arith.constant 0.000000e+00 : f32
      %118 = vector.broadcast %cst_49 : f32 to vector<16x24xf32>
      %119 = arith.cmpf ogt, %117, %118 : vector<16x24xf32>
      %120 = math.exp %117 : vector<16x24xf32>
      %cst_50 = arith.constant 1.000000e+00 : f32
      %121 = vector.broadcast %cst_50 : f32 to vector<16x24xf32>
      %122 = arith.subf %120, %121 : vector<16x24xf32>
      %123 = arith.select %119, %117, %122 : vector<16x24xi1>, vector<16x24xf32>
      %124 = tpu.concatenate %42, %123, %42 in 1 : vector<16x3xf32>, vector<16x24xf32>, vector<16x3xf32> -> vector<16x30xf32>
      %125 = vector.extract_strided_slice %124 {offsets = [0, 1], sizes = [16, 24], strides = [1, 1]} : vector<16x30xf32> to vector<16x24xf32>
      %c-2_i32_51 = arith.constant -2 : i32
      %126 = vector.broadcast %c-2_i32_51 : i32 to vector<1x24xi32>
      %127 = arith.addi %48, %126 : vector<1x24xi32>
      %c0_i32_52 = arith.constant 0 : i32
      %128 = vector.broadcast %c0_i32_52 : i32 to vector<1x24xi32>
      %129 = arith.cmpi sge, %127, %128 : vector<1x24xi32>
      %c-2_i32_53 = arith.constant -2 : i32
      %130 = vector.broadcast %c-2_i32_53 : i32 to vector<1x24xi32>
      %131 = arith.addi %48, %130 : vector<1x24xi32>
      %c12_i32_54 = arith.constant 12 : i32
      %132 = vector.broadcast %c12_i32_54 : i32 to vector<1x24xi32>
      %133 = arith.cmpi slt, %131, %132 : vector<1x24xi32>
      %134 = arith.andi %129, %133 : vector<1x24xi1>
      %135 = arith.extui %134 : vector<1x24xi1> to vector<1x24xi32>
      %136 = arith.sitofp %135 : vector<1x24xi32> to vector<1x24xf32>
      %137 = vector.broadcast %136 : vector<1x24xf32> to vector<16x24xf32>
      %138 = arith.mulf %125, %137 : vector<16x24xf32>
      %139 = vector.extract_strided_slice %124 {offsets = [0, 2], sizes = [16, 24], strides = [1, 1]} : vector<16x30xf32> to vector<16x24xf32>
      %c-1_i32_55 = arith.constant -1 : i32
      %140 = vector.broadcast %c-1_i32_55 : i32 to vector<1x24xi32>
      %141 = arith.addi %48, %140 : vector<1x24xi32>
      %c0_i32_56 = arith.constant 0 : i32
      %142 = vector.broadcast %c0_i32_56 : i32 to vector<1x24xi32>
      %143 = arith.cmpi sge, %141, %142 : vector<1x24xi32>
      %c-1_i32_57 = arith.constant -1 : i32
      %144 = vector.broadcast %c-1_i32_57 : i32 to vector<1x24xi32>
      %145 = arith.addi %48, %144 : vector<1x24xi32>
      %c12_i32_58 = arith.constant 12 : i32
      %146 = vector.broadcast %c12_i32_58 : i32 to vector<1x24xi32>
      %147 = arith.cmpi slt, %145, %146 : vector<1x24xi32>
      %148 = arith.andi %143, %147 : vector<1x24xi1>
      %149 = arith.extui %148 : vector<1x24xi1> to vector<1x24xi32>
      %150 = arith.sitofp %149 : vector<1x24xi32> to vector<1x24xf32>
      %151 = vector.broadcast %150 : vector<1x24xf32> to vector<16x24xf32>
      %152 = arith.mulf %139, %151 : vector<16x24xf32>
      %153 = vector.extract_strided_slice %124 {offsets = [0, 3], sizes = [16, 24], strides = [1, 1]} : vector<16x30xf32> to vector<16x24xf32>
      %c0_i32_59 = arith.constant 0 : i32
      %154 = vector.broadcast %c0_i32_59 : i32 to vector<1x24xi32>
      %155 = arith.addi %48, %154 : vector<1x24xi32>
      %c0_i32_60 = arith.constant 0 : i32
      %156 = vector.broadcast %c0_i32_60 : i32 to vector<1x24xi32>
      %157 = arith.cmpi sge, %155, %156 : vector<1x24xi32>
      %c0_i32_61 = arith.constant 0 : i32
      %158 = vector.broadcast %c0_i32_61 : i32 to vector<1x24xi32>
      %159 = arith.addi %48, %158 : vector<1x24xi32>
      %c12_i32_62 = arith.constant 12 : i32
      %160 = vector.broadcast %c12_i32_62 : i32 to vector<1x24xi32>
      %161 = arith.cmpi slt, %159, %160 : vector<1x24xi32>
      %162 = arith.andi %157, %161 : vector<1x24xi1>
      %163 = arith.extui %162 : vector<1x24xi1> to vector<1x24xi32>
      %164 = arith.sitofp %163 : vector<1x24xi32> to vector<1x24xf32>
      %165 = vector.broadcast %164 : vector<1x24xf32> to vector<16x24xf32>
      %166 = arith.mulf %153, %165 : vector<16x24xf32>
      %167 = vector.extract_strided_slice %124 {offsets = [0, 4], sizes = [16, 24], strides = [1, 1]} : vector<16x30xf32> to vector<16x24xf32>
      %c1_i32_63 = arith.constant 1 : i32
      %168 = vector.broadcast %c1_i32_63 : i32 to vector<1x24xi32>
      %169 = arith.addi %48, %168 : vector<1x24xi32>
      %c0_i32_64 = arith.constant 0 : i32
      %170 = vector.broadcast %c0_i32_64 : i32 to vector<1x24xi32>
      %171 = arith.cmpi sge, %169, %170 : vector<1x24xi32>
      %c1_i32_65 = arith.constant 1 : i32
      %172 = vector.broadcast %c1_i32_65 : i32 to vector<1x24xi32>
      %173 = arith.addi %48, %172 : vector<1x24xi32>
      %c12_i32_66 = arith.constant 12 : i32
      %174 = vector.broadcast %c12_i32_66 : i32 to vector<1x24xi32>
      %175 = arith.cmpi slt, %173, %174 : vector<1x24xi32>
      %176 = arith.andi %171, %175 : vector<1x24xi1>
      %177 = arith.extui %176 : vector<1x24xi1> to vector<1x24xi32>
      %178 = arith.sitofp %177 : vector<1x24xi32> to vector<1x24xf32>
      %179 = vector.broadcast %178 : vector<1x24xf32> to vector<16x24xf32>
      %180 = arith.mulf %167, %179 : vector<16x24xf32>
      %181 = tpu.concatenate %138, %152, %166, %180 in 0 : vector<16x24xf32>, vector<16x24xf32>, vector<16x24xf32>, vector<16x24xf32> -> vector<64x24xf32>
      %cst_67 = arith.constant dense<0.000000e+00> : vector<16x24xf32>
      %182 = tpu.matmul %50, %181, %cst_67 {dimension_numbers = #tpu.dot_dimension_numbers<[1], [0], [0], [1], [0, 0, 1, 1], [], []>} : vector<16x64xf32>, vector<64x24xf32>, vector<16x24xf32> -> vector<16x24xf32>
      %183 = vector.broadcast %54 : vector<16x1xf32> to vector<16x24xf32>
      %184 = arith.addf %182, %183 : vector<16x24xf32>
      %cst_68 = arith.constant 0.000000e+00 : f32
      %185 = vector.broadcast %cst_68 : f32 to vector<16x24xf32>
      %186 = arith.cmpf ogt, %184, %185 : vector<16x24xf32>
      %187 = math.exp %184 : vector<16x24xf32>
      %cst_69 = arith.constant 1.000000e+00 : f32
      %188 = vector.broadcast %cst_69 : f32 to vector<16x24xf32>
      %189 = arith.subf %187, %188 : vector<16x24xf32>
      %190 = arith.select %186, %184, %189 : vector<16x24xi1>, vector<16x24xf32>
      %191 = arith.addf %41, %190 : vector<16x24xf32>
      %192 = tpu.concatenate %42, %191, %42 in 1 : vector<16x3xf32>, vector<16x24xf32>, vector<16x3xf32> -> vector<16x30xf32>
      %193 = vector.extract_strided_slice %192 {offsets = [0, 0], sizes = [16, 24], strides = [1, 1]} : vector<16x30xf32> to vector<16x24xf32>
      %c-3_i32 = arith.constant -3 : i32
      %194 = vector.broadcast %c-3_i32 : i32 to vector<1x24xi32>
      %195 = arith.addi %48, %194 : vector<1x24xi32>
      %c0_i32_70 = arith.constant 0 : i32
      %196 = vector.broadcast %c0_i32_70 : i32 to vector<1x24xi32>
      %197 = arith.cmpi sge, %195, %196 : vector<1x24xi32>
      %c-3_i32_71 = arith.constant -3 : i32
      %198 = vector.broadcast %c-3_i32_71 : i32 to vector<1x24xi32>
      %199 = arith.addi %48, %198 : vector<1x24xi32>
      %c12_i32_72 = arith.constant 12 : i32
      %200 = vector.broadcast %c12_i32_72 : i32 to vector<1x24xi32>
      %201 = arith.cmpi slt, %199, %200 : vector<1x24xi32>
      %202 = arith.andi %197, %201 : vector<1x24xi1>
      %203 = arith.extui %202 : vector<1x24xi1> to vector<1x24xi32>
      %204 = arith.sitofp %203 : vector<1x24xi32> to vector<1x24xf32>
      %205 = vector.broadcast %204 : vector<1x24xf32> to vector<16x24xf32>
      %206 = arith.mulf %193, %205 : vector<16x24xf32>
      %207 = vector.extract_strided_slice %192 {offsets = [0, 2], sizes = [16, 24], strides = [1, 1]} : vector<16x30xf32> to vector<16x24xf32>
      %c-1_i32_73 = arith.constant -1 : i32
      %208 = vector.broadcast %c-1_i32_73 : i32 to vector<1x24xi32>
      %209 = arith.addi %48, %208 : vector<1x24xi32>
      %c0_i32_74 = arith.constant 0 : i32
      %210 = vector.broadcast %c0_i32_74 : i32 to vector<1x24xi32>
      %211 = arith.cmpi sge, %209, %210 : vector<1x24xi32>
      %c-1_i32_75 = arith.constant -1 : i32
      %212 = vector.broadcast %c-1_i32_75 : i32 to vector<1x24xi32>
      %213 = arith.addi %48, %212 : vector<1x24xi32>
      %c12_i32_76 = arith.constant 12 : i32
      %214 = vector.broadcast %c12_i32_76 : i32 to vector<1x24xi32>
      %215 = arith.cmpi slt, %213, %214 : vector<1x24xi32>
      %216 = arith.andi %211, %215 : vector<1x24xi1>
      %217 = arith.extui %216 : vector<1x24xi1> to vector<1x24xi32>
      %218 = arith.sitofp %217 : vector<1x24xi32> to vector<1x24xf32>
      %219 = vector.broadcast %218 : vector<1x24xf32> to vector<16x24xf32>
      %220 = arith.mulf %207, %219 : vector<16x24xf32>
      %221 = vector.extract_strided_slice %192 {offsets = [0, 4], sizes = [16, 24], strides = [1, 1]} : vector<16x30xf32> to vector<16x24xf32>
      %c1_i32_77 = arith.constant 1 : i32
      %222 = vector.broadcast %c1_i32_77 : i32 to vector<1x24xi32>
      %223 = arith.addi %48, %222 : vector<1x24xi32>
      %c0_i32_78 = arith.constant 0 : i32
      %224 = vector.broadcast %c0_i32_78 : i32 to vector<1x24xi32>
      %225 = arith.cmpi sge, %223, %224 : vector<1x24xi32>
      %c1_i32_79 = arith.constant 1 : i32
      %226 = vector.broadcast %c1_i32_79 : i32 to vector<1x24xi32>
      %227 = arith.addi %48, %226 : vector<1x24xi32>
      %c12_i32_80 = arith.constant 12 : i32
      %228 = vector.broadcast %c12_i32_80 : i32 to vector<1x24xi32>
      %229 = arith.cmpi slt, %227, %228 : vector<1x24xi32>
      %230 = arith.andi %225, %229 : vector<1x24xi1>
      %231 = arith.extui %230 : vector<1x24xi1> to vector<1x24xi32>
      %232 = arith.sitofp %231 : vector<1x24xi32> to vector<1x24xf32>
      %233 = vector.broadcast %232 : vector<1x24xf32> to vector<16x24xf32>
      %234 = arith.mulf %221, %233 : vector<16x24xf32>
      %235 = vector.extract_strided_slice %192 {offsets = [0, 6], sizes = [16, 24], strides = [1, 1]} : vector<16x30xf32> to vector<16x24xf32>
      %c3_i32 = arith.constant 3 : i32
      %236 = vector.broadcast %c3_i32 : i32 to vector<1x24xi32>
      %237 = arith.addi %48, %236 : vector<1x24xi32>
      %c0_i32_81 = arith.constant 0 : i32
      %238 = vector.broadcast %c0_i32_81 : i32 to vector<1x24xi32>
      %239 = arith.cmpi sge, %237, %238 : vector<1x24xi32>
      %c3_i32_82 = arith.constant 3 : i32
      %240 = vector.broadcast %c3_i32_82 : i32 to vector<1x24xi32>
      %241 = arith.addi %48, %240 : vector<1x24xi32>
      %c12_i32_83 = arith.constant 12 : i32
      %242 = vector.broadcast %c12_i32_83 : i32 to vector<1x24xi32>
      %243 = arith.cmpi slt, %241, %242 : vector<1x24xi32>
      %244 = arith.andi %239, %243 : vector<1x24xi1>
      %245 = arith.extui %244 : vector<1x24xi1> to vector<1x24xi32>
      %246 = arith.sitofp %245 : vector<1x24xi32> to vector<1x24xf32>
      %247 = vector.broadcast %246 : vector<1x24xf32> to vector<16x24xf32>
      %248 = arith.mulf %235, %247 : vector<16x24xf32>
      %249 = tpu.concatenate %206, %220, %234, %248 in 0 : vector<16x24xf32>, vector<16x24xf32>, vector<16x24xf32>, vector<16x24xf32> -> vector<64x24xf32>
      %cst_84 = arith.constant dense<0.000000e+00> : vector<16x24xf32>
      %250 = tpu.matmul %51, %249, %cst_84 {dimension_numbers = #tpu.dot_dimension_numbers<[1], [0], [0], [1], [0, 0, 1, 1], [], []>} : vector<16x64xf32>, vector<64x24xf32>, vector<16x24xf32> -> vector<16x24xf32>
      %251 = vector.broadcast %55 : vector<16x1xf32> to vector<16x24xf32>
      %252 = arith.addf %250, %251 : vector<16x24xf32>
      %cst_85 = arith.constant 0.000000e+00 : f32
      %253 = vector.broadcast %cst_85 : f32 to vector<16x24xf32>
      %254 = arith.cmpf ogt, %252, %253 : vector<16x24xf32>
      %255 = math.exp %252 : vector<16x24xf32>
      %cst_86 = arith.constant 1.000000e+00 : f32
      %256 = vector.broadcast %cst_86 : f32 to vector<16x24xf32>
      %257 = arith.subf %255, %256 : vector<16x24xf32>
      %258 = arith.select %254, %252, %257 : vector<16x24xi1>, vector<16x24xf32>
      %259 = tpu.concatenate %42, %258, %42 in 1 : vector<16x3xf32>, vector<16x24xf32>, vector<16x3xf32> -> vector<16x30xf32>
      %260 = vector.extract_strided_slice %259 {offsets = [0, 0], sizes = [16, 24], strides = [1, 1]} : vector<16x30xf32> to vector<16x24xf32>
      %c-3_i32_87 = arith.constant -3 : i32
      %261 = vector.broadcast %c-3_i32_87 : i32 to vector<1x24xi32>
      %262 = arith.addi %48, %261 : vector<1x24xi32>
      %c0_i32_88 = arith.constant 0 : i32
      %263 = vector.broadcast %c0_i32_88 : i32 to vector<1x24xi32>
      %264 = arith.cmpi sge, %262, %263 : vector<1x24xi32>
      %c-3_i32_89 = arith.constant -3 : i32
      %265 = vector.broadcast %c-3_i32_89 : i32 to vector<1x24xi32>
      %266 = arith.addi %48, %265 : vector<1x24xi32>
      %c12_i32_90 = arith.constant 12 : i32
      %267 = vector.broadcast %c12_i32_90 : i32 to vector<1x24xi32>
      %268 = arith.cmpi slt, %266, %267 : vector<1x24xi32>
      %269 = arith.andi %264, %268 : vector<1x24xi1>
      %270 = arith.extui %269 : vector<1x24xi1> to vector<1x24xi32>
      %271 = arith.sitofp %270 : vector<1x24xi32> to vector<1x24xf32>
      %272 = vector.broadcast %271 : vector<1x24xf32> to vector<16x24xf32>
      %273 = arith.mulf %260, %272 : vector<16x24xf32>
      %274 = vector.extract_strided_slice %259 {offsets = [0, 2], sizes = [16, 24], strides = [1, 1]} : vector<16x30xf32> to vector<16x24xf32>
      %c-1_i32_91 = arith.constant -1 : i32
      %275 = vector.broadcast %c-1_i32_91 : i32 to vector<1x24xi32>
      %276 = arith.addi %48, %275 : vector<1x24xi32>
      %c0_i32_92 = arith.constant 0 : i32
      %277 = vector.broadcast %c0_i32_92 : i32 to vector<1x24xi32>
      %278 = arith.cmpi sge, %276, %277 : vector<1x24xi32>
      %c-1_i32_93 = arith.constant -1 : i32
      %279 = vector.broadcast %c-1_i32_93 : i32 to vector<1x24xi32>
      %280 = arith.addi %48, %279 : vector<1x24xi32>
      %c12_i32_94 = arith.constant 12 : i32
      %281 = vector.broadcast %c12_i32_94 : i32 to vector<1x24xi32>
      %282 = arith.cmpi slt, %280, %281 : vector<1x24xi32>
      %283 = arith.andi %278, %282 : vector<1x24xi1>
      %284 = arith.extui %283 : vector<1x24xi1> to vector<1x24xi32>
      %285 = arith.sitofp %284 : vector<1x24xi32> to vector<1x24xf32>
      %286 = vector.broadcast %285 : vector<1x24xf32> to vector<16x24xf32>
      %287 = arith.mulf %274, %286 : vector<16x24xf32>
      %288 = vector.extract_strided_slice %259 {offsets = [0, 4], sizes = [16, 24], strides = [1, 1]} : vector<16x30xf32> to vector<16x24xf32>
      %c1_i32_95 = arith.constant 1 : i32
      %289 = vector.broadcast %c1_i32_95 : i32 to vector<1x24xi32>
      %290 = arith.addi %48, %289 : vector<1x24xi32>
      %c0_i32_96 = arith.constant 0 : i32
      %291 = vector.broadcast %c0_i32_96 : i32 to vector<1x24xi32>
      %292 = arith.cmpi sge, %290, %291 : vector<1x24xi32>
      %c1_i32_97 = arith.constant 1 : i32
      %293 = vector.broadcast %c1_i32_97 : i32 to vector<1x24xi32>
      %294 = arith.addi %48, %293 : vector<1x24xi32>
      %c12_i32_98 = arith.constant 12 : i32
      %295 = vector.broadcast %c12_i32_98 : i32 to vector<1x24xi32>
      %296 = arith.cmpi slt, %294, %295 : vector<1x24xi32>
      %297 = arith.andi %292, %296 : vector<1x24xi1>
      %298 = arith.extui %297 : vector<1x24xi1> to vector<1x24xi32>
      %299 = arith.sitofp %298 : vector<1x24xi32> to vector<1x24xf32>
      %300 = vector.broadcast %299 : vector<1x24xf32> to vector<16x24xf32>
      %301 = arith.mulf %288, %300 : vector<16x24xf32>
      %302 = vector.extract_strided_slice %259 {offsets = [0, 6], sizes = [16, 24], strides = [1, 1]} : vector<16x30xf32> to vector<16x24xf32>
      %c3_i32_99 = arith.constant 3 : i32
      %303 = vector.broadcast %c3_i32_99 : i32 to vector<1x24xi32>
      %304 = arith.addi %48, %303 : vector<1x24xi32>
      %c0_i32_100 = arith.constant 0 : i32
      %305 = vector.broadcast %c0_i32_100 : i32 to vector<1x24xi32>
      %306 = arith.cmpi sge, %304, %305 : vector<1x24xi32>
      %c3_i32_101 = arith.constant 3 : i32
      %307 = vector.broadcast %c3_i32_101 : i32 to vector<1x24xi32>
      %308 = arith.addi %48, %307 : vector<1x24xi32>
      %c12_i32_102 = arith.constant 12 : i32
      %309 = vector.broadcast %c12_i32_102 : i32 to vector<1x24xi32>
      %310 = arith.cmpi slt, %308, %309 : vector<1x24xi32>
      %311 = arith.andi %306, %310 : vector<1x24xi1>
      %312 = arith.extui %311 : vector<1x24xi1> to vector<1x24xi32>
      %313 = arith.sitofp %312 : vector<1x24xi32> to vector<1x24xf32>
      %314 = vector.broadcast %313 : vector<1x24xf32> to vector<16x24xf32>
      %315 = arith.mulf %302, %314 : vector<16x24xf32>
      %316 = tpu.concatenate %273, %287, %301, %315 in 0 : vector<16x24xf32>, vector<16x24xf32>, vector<16x24xf32>, vector<16x24xf32> -> vector<64x24xf32>
      %cst_103 = arith.constant dense<0.000000e+00> : vector<16x24xf32>
      %317 = tpu.matmul %52, %316, %cst_103 {dimension_numbers = #tpu.dot_dimension_numbers<[1], [0], [0], [1], [0, 0, 1, 1], [], []>} : vector<16x64xf32>, vector<64x24xf32>, vector<16x24xf32> -> vector<16x24xf32>
      %318 = vector.broadcast %56 : vector<16x1xf32> to vector<16x24xf32>
      %319 = arith.addf %317, %318 : vector<16x24xf32>
      %cst_104 = arith.constant 0.000000e+00 : f32
      %320 = vector.broadcast %cst_104 : f32 to vector<16x24xf32>
      %321 = arith.cmpf ogt, %319, %320 : vector<16x24xf32>
      %322 = math.exp %319 : vector<16x24xf32>
      %cst_105 = arith.constant 1.000000e+00 : f32
      %323 = vector.broadcast %cst_105 : f32 to vector<16x24xf32>
      %324 = arith.subf %322, %323 : vector<16x24xf32>
      %325 = arith.select %321, %319, %324 : vector<16x24xi1>, vector<16x24xf32>
      %326 = arith.addf %191, %325 : vector<16x24xf32>
      %327 = vector.extract_strided_slice %326 {offsets = [0, 0], sizes = [16, 12], strides = [1, 1]} : vector<16x24xf32> to vector<16x12xf32>
      %c0_106 = arith.constant 0 : index
      %c0_107 = arith.constant 0 : index
      %c0_108 = arith.constant 0 : index
      %328 = vector.load %arg6[%c0_106, %c0_107, %c0_108] : memref<2x16x12xf32, #tpu.memory_space<vmem>>, vector<2x16x12xf32>
      %329 = vector.shape_cast %327 : vector<16x12xf32> to vector<1x16x12xf32>
      %330 = vector.broadcast %329 : vector<1x16x12xf32> to vector<2x16x12xf32>
      %331 = arith.mulf %328, %330 : vector<2x16x12xf32>
      %cst_109 = arith.constant dense<0.000000e+00> : vector<2x16xf32>
      %332 = vector.multi_reduction <add>, %331, %cst_109 [2] : vector<2x16x12xf32> to vector<2x16xf32>
      %cst_110 = arith.constant dense<0.000000e+00> : vector<2xf32>
      %333 = vector.multi_reduction <add>, %332, %cst_110 [1] : vector<2x16xf32> to vector<2xf32>
      %334 = vector.shape_cast %333 : vector<2xf32> to vector<1x2xf32>
      %335 = vector.extract_strided_slice %326 {offsets = [0, 12], sizes = [16, 12], strides = [1, 1]} : vector<16x24xf32> to vector<16x12xf32>
      %c0_111 = arith.constant 0 : index
      %c0_112 = arith.constant 0 : index
      %c0_113 = arith.constant 0 : index
      %336 = vector.load %arg6[%c0_111, %c0_112, %c0_113] : memref<2x16x12xf32, #tpu.memory_space<vmem>>, vector<2x16x12xf32>
      %337 = vector.shape_cast %335 : vector<16x12xf32> to vector<1x16x12xf32>
      %338 = vector.broadcast %337 : vector<1x16x12xf32> to vector<2x16x12xf32>
      %339 = arith.mulf %336, %338 : vector<2x16x12xf32>
      %cst_114 = arith.constant dense<0.000000e+00> : vector<2x16xf32>
      %340 = vector.multi_reduction <add>, %339, %cst_114 [2] : vector<2x16x12xf32> to vector<2x16xf32>
      %cst_115 = arith.constant dense<0.000000e+00> : vector<2xf32>
      %341 = vector.multi_reduction <add>, %340, %cst_115 [1] : vector<2x16xf32> to vector<2xf32>
      %342 = vector.shape_cast %341 : vector<2xf32> to vector<1x2xf32>
      %343 = tpu.concatenate %334, %342 in 0 : vector<1x2xf32>, vector<1x2xf32> -> vector<2x2xf32>
      %c0_116 = arith.constant 0 : index
      %c0_117 = arith.constant 0 : index
      %344 = vector.load %arg7[%c0_116, %c0_117] : memref<1x2xf32, #tpu.memory_space<vmem>>, vector<1x2xf32>
      %345 = vector.broadcast %344 : vector<1x2xf32> to vector<2x2xf32>
      %346 = arith.addf %343, %345 : vector<2x2xf32>
      %c0_118 = arith.constant 0 : index
      %c0_119 = arith.constant 0 : index
      %347 = vector.load %arg8[%c0_118, %c0_119] : memref<2x2xf32, #tpu.memory_space<vmem>>, vector<2x2xf32>
      tpu.vector_store %arg8[%c0_118, %c0_119], %346 {strides = array<i32>} : memref<2x2xf32, #tpu.memory_space<vmem>>, vector<2x2xf32>,
    } else {
    }
    return
  }
  func.func @transform_0(%arg0: i32) -> (i32, i32) {
    %c0_i32 = arith.constant 0 : i32
    %c0_i32_0 = arith.constant 0 : i32
    %c0_i32_1 = arith.constant 0 : i32
    return %c0_i32, %c0_i32_0 : i32, i32
  }
  func.func @transform_1(%arg0: i32) -> (i32, i32) {
    %c0_i32 = arith.constant 0 : i32
    %c0_i32_0 = arith.constant 0 : i32
    return %c0_i32, %arg0 : i32, i32
  }
  func.func @transform_2(%arg0: i32) -> (i32, i32) {
    %c0_i32 = arith.constant 0 : i32
    %c0_i32_0 = arith.constant 0 : i32
    return %c0_i32, %arg0 : i32, i32
  }
  func.func @transform_3(%arg0: i32) -> (i32, i32) {
    %c0_i32 = arith.constant 0 : i32
    %c0_i32_0 = arith.constant 0 : i32
    return %arg0, %c0_i32 : i32, i32
  }
  func.func @transform_4(%arg0: i32) -> (i32, i32) {
    %c0_i32 = arith.constant 0 : i32
    %c0_i32_0 = arith.constant 0 : i32
    %c0_i32_1 = arith.constant 0 : i32
    return %c0_i32, %c0_i32_0 : i32, i32
  }
  func.func @transform_5(%arg0: i32) -> (i32, i32, i32) {
    %c0_i32 = arith.constant 0 : i32
    %c0_i32_0 = arith.constant 0 : i32
    %c0_i32_1 = arith.constant 0 : i32
    %c0_i32_2 = arith.constant 0 : i32
    return %c0_i32, %c0_i32_0, %c0_i32_1 : i32, i32, i32
  }
  func.func @transform_6(%arg0: i32) -> (i32, i32) {
    %c0_i32 = arith.constant 0 : i32
    %c0_i32_0 = arith.constant 0 : i32
    %c0_i32_1 = arith.constant 0 : i32
    return %c0_i32, %c0_i32_0 : i32, i32
  }
  func.func @transform_7(%arg0: i32) -> (i32, i32) {
    %c0_i32 = arith.constant 0 : i32
    %c0_i32_0 = arith.constant 0 : i32
    %c0_i32_1 = arith.constant 0 : i32
    return %c0_i32, %c0_i32_0 : i32, i32
  }
}

</mosaic_0001>

<bundles_post_ra>
// kernel: fbtsa_forward.1
= control target key start
LH: loop header
LB: loop body
LE: loop exit
PB: predicated region body
PF: predicated region fallthrough
CT: control target
= control target key end

     0   :  { %12 = vsyncpa [#allocation5], 0  ;;  %s6649_s24 = smov 0   ;;  %s6651_s25 = smov 0   ;;  %s8123_s0 = inlined_call_operand.vmem [shape: bf16[128,1792], index: 0, kind: input, shape index: {}]   ;;  %s8124_s1 = inlined_call_operand.vmem [shape: bf16[1792,384], index: 1, kind: input, shape index: {}]   ;;  %s8125_s2 = inlined_call_operand.vmem [shape: f32[1,384], index: 2, kind: input, shape index: {}]   ;;  %s8126_s3 = inlined_call_operand.vmem [shape: f32[384,24], index: 3, kind: input, shape index: {}]   ;;  %s8127_s4 = inlined_call_operand.vmem [shape: f32[64,128], index: 4, kind: input, shape index: {}]   ;;  %s8128_s5 = inlined_call_operand.vmem [shape: f32[2,16,12], index: 5, kind: input, shape index: {}]   ;;  %s8129_s6 = inlined_call_operand.vmem [shape: f32[1,2], index: 6, kind: input, shape index: {}]   ;;  %s8130_s7 = inlined_call_operand.hbm [shape: f32[2,2], index: 7, kind: output, shape index: {}]  }
   0x1   :  { %s6653_s26 = smov 0  }
   0x2 LB: > { %s6665_s27 = sadd.s32 4294967295, %s6586_s26   ;;  %s6668_s28 = sadd.s32 1, %s6586_s26   ;;  %s6586_s26 = sphi %s6653_s26, %s8133_s26   ;;  %s6582_s25 = sphi %s6651_s25, %s8132_s25   ;;  %s6578_s24 = sphi %s6649_s24, %s8131_s24  }
   0x3   : > { %s43_s29 = ssub.s32 %s6586_s26, %s6668_s28  ;;  %s46_s30 = sadd.s32 1, %s6582_s25 }
   0x4   : > { %p44_p0 = scmp.eq.s32.totalorder %s43_s29, 0  ;;  %p53_p1 = scmp.ne.s32.totalorder %s6582_s25, %s6578_s24 }
   0x5   : > { %p54_p2 = scmp.eq.s32.totalorder %s6586_s26, 0  ;;  %p4888_p4 = scmp.ge.s32.totalorder %s6586_s26, 3 }
   0x6   : > { %s6677_s8 = scalar_select %p44_p0, %s6582_s25, %s46_s30  }
   0x7   : > { %p55_p3 = por %p54_p2, %p53_p1  ;;  %227 = sbr.rel (%p4888_p4) target bundleno = 167 (0xa7), region = 32 }
   0xe   : > { %230 = sbr.rel (!%p55_p3) target bundleno = 167 (0xa7), region = 36  ;;  %s232_s9 = sand.u32 (%p55_p3), 1, %s6582_s25  }
   0xf   : > { %s4889_s10 = sshll.u32 (%p55_p3), %s6586_s26, 2  ;;  %s5999_s11 = smul.u32 (%p55_p3), 896, %s232_s9 }
  0x10   : > { %s6685_s14 = scalar_lea.vmem (%p55_p3), %s8124_s1, %s4889_s10 }
  0x11   : > { %v252_v0 = vld [vmem:[%s6685_s14] sm:$0xf] (%p55_p3)  ;;  %v254_v1 = vld [vmem:[%s6685_s14 + $0xc] sm:$0xf] (%p55_p3)  ;;  %v256_v2 = vld [vmem:[%s6685_s14 + $0x18] sm:$0xf] (%p55_p3) }
  0x12   : > { %v258_v3 = vld [vmem:[%s6685_s14 + $0x24] sm:$0xf] (%p55_p3)  ;;  %v260_v4 = vld [vmem:[%s6685_s14 + $0x30] sm:$0xf] (%p55_p3)  ;;  %s6692_s15 = scalar_lea.vmem (%p55_p3), [#allocation3], %s5999_s11 }
  0x13   : > { %253 = vst [vmem:[%s6692_s15] sm:$0xf] (%p55_p3), %v252_v0  ;;  %255 = vst [vmem:[%s6692_s15 + $0x4] sm:$0xf] (%p55_p3), %v254_v1  ;;  %v262_v5 = vld [vmem:[%s6685_s14 + $0x3c] sm:$0xf] (%p55_p3) }
  0x14   : > { %257 = vst [vmem:[%s6692_s15 + $0x8] sm:$0xf] (%p55_p3), %v256_v2  ;;  %259 = vst [vmem:[%s6692_s15 + $0xc] sm:$0xf] (%p55_p3), %v258_v3  ;;  %v264_v6 = vld [vmem:[%s6685_s14 + $0x48] sm:$0xf] (%p55_p3) }
  0x15   : > { %261 = vst [vmem:[%s6692_s15 + $0x10] sm:$0xf] %v260_v4  ;;  %v266_v7 = vld [vmem:[%s6685_s14 + $0x54] sm:$0xf]  ;;  %263 = vst [vmem:[%s6692_s15 + $0x14] sm:$0xf] %v262_v5 }
  0x16   : > { %265 = vst [vmem:[%s6692_s15 + $0x18] sm:$0xf] %v264_v6  ;;  %267 = vst [vmem:[%s6692_s15 + $0x1c] sm:$0xf] %v266_v7  ;;  %v268_v8 = vld [vmem:[%s6685_s14 + $0x60] sm:$0xf] }
  0x17   : > { %v270_v9 = vld [vmem:[%s6685_s14 + $0x6c] sm:$0xf]  ;;  %v272_v10 = vld [vmem:[%s6685_s14 + $0x78] sm:$0xf]  ;;  %269 = vst [vmem:[%s6692_s15 + $0x20] sm:$0xf] %v268_v8 }
  0x18   : > { %271 = vst [vmem:[%s6692_s15 + $0x24] sm:$0xf] %v270_v9  ;;  %273 = vst [vmem:[%s6692_s15 + $0x28] sm:$0xf] %v272_v10  ;;  %v274_v11 = vld [vmem:[%s6685_s14 + $0x84] sm:$0xf] }
  0x19   : > { %v276_v12 = vld [vmem:[%s6685_s14 + $0x90] sm:$0xf]  ;;  %v278_v13 = vld [vmem:[%s6685_s14 + $0x9c] sm:$0xf]  ;;  %275 = vst [vmem:[%s6692_s15 + $0x2c] sm:$0xf] %v274_v11 }
  0x1a   : > { %277 = vst [vmem:[%s6692_s15 + $0x30] sm:$0xf] %v276_v12  ;;  %279 = vst [vmem:[%s6692_s15 + $0x34] sm:$0xf] %v278_v13  ;;  %v280_v14 = vld [vmem:[%s6685_s14 + $0xa8] sm:$0xf] }
  0x1b   : > { %v282_v15 = vld [vmem:[%s6685_s14 + $0xb4] sm:$0xf]  ;;  %v284_v16 = vld [vmem:[%s6685_s14 + $0xc0] sm:$0xf]  ;;  %281 = vst [vmem:[%s6692_s15 + $0x38] sm:$0xf] %v280_v14 }
  0x1c   : > { %283 = vst [vmem:[%s6692_s15 + $0x3c] sm:$0xf] %v282_v15  ;;  %285 = vst [vmem:[%s6692_s15 + $0x40] sm:$0xf] %v284_v16  ;;  %v286_v17 = vld [vmem:[%s6685_s14 + $0xcc] sm:$0xf] }
  0x1d   : > { %v288_v18 = vld [vmem:[%s6685_s14 + $0xd8] sm:$0xf]  ;;  %v290_v19 = vld [vmem:[%s6685_s14 + $0xe4] sm:$0xf]  ;;  %287 = vst [vmem:[%s6692_s15 + $0x44] sm:$0xf] %v286_v17 }
  0x1e   : > { %289 = vst [vmem:[%s6692_s15 + $0x48] sm:$0xf] %v288_v18  ;;  %291 = vst [vmem:[%s6692_s15 + $0x4c] sm:$0xf] %v290_v19  ;;  %v292_v20 = vld [vmem:[%s6685_s14 + $0xf0] sm:$0xf] }
  0x1f   : > { %v294_v21 = vld [vmem:[%s6685_s14 + $0xfc] sm:$0xf]  ;;  %v296_v22 = vld [vmem:[%s6685_s14 + $0x108] sm:$0xf]  ;;  %293 = vst [vmem:[%s6692_s15 + $0x50] sm:$0xf] %v292_v20 }
  0x20   : > { %295 = vst [vmem:[%s6692_s15 + $0x54] sm:$0xf] %v294_v21  ;;  %297 = vst [vmem:[%s6692_s15 + $0x58] sm:$0xf] %v296_v22  ;;  %v298_v23 = vld [vmem:[%s6685_s14 + $0x114] sm:$0xf] }
  0x21   : > { %v300_v24 = vld [vmem:[%s6685_s14 + $0x120] sm:$0xf]  ;;  %v302_v25 = vld [vmem:[%s6685_s14 + $0x12c] sm:$0xf]  ;;  %299 = vst [vmem:[%s6692_s15 + $0x5c] sm:$0xf] %v298_v23 }
  0x22   : > { %301 = vst [vmem:[%s6692_s15 + $0x60] sm:$0xf] %v300_v24  ;;  %303 = vst [vmem:[%s6692_s15 + $0x64] sm:$0xf] %v302_v25  ;;  %v304_v26 = vld [vmem:[%s6685_s14 + $0x138] sm:$0xf] }
  0x23   : > { %v306_v27 = vld [vmem:[%s6685_s14 + $0x144] sm:$0xf]  ;;  %v308_v28 = vld [vmem:[%s6685_s14 + $0x150] sm:$0xf]  ;;  %305 = vst [vmem:[%s6692_s15 + $0x68] sm:$0xf] %v304_v26 }
  0x24   : > { %307 = vst [vmem:[%s6692_s15 + $0x6c] sm:$0xf] %v306_v27  ;;  %309 = vst [vmem:[%s6692_s15 + $0x70] sm:$0xf] %v308_v28  ;;  %v310_v29 = vld [vmem:[%s6685_s14 + $0x15c] sm:$0xf] }
  0x25   : > { %v312_v30 = vld [vmem:[%s6685_s14 + $0x168] sm:$0xf]  ;;  %v314_v31 = vld [vmem:[%s6685_s14 + $0x174] sm:$0xf]  ;;  %311 = vst [vmem:[%s6692_s15 + $0x74] sm:$0xf] %v310_v29 }
  0x26   : > { %313 = vst [vmem:[%s6692_s15 + $0x78] sm:$0xf] %v312_v30  ;;  %315 = vst [vmem:[%s6692_s15 + $0x7c] sm:$0xf] %v314_v31  ;;  %v316_v32 = vld [vmem:[%s6685_s14 + $0x180] sm:$0xf] }
  0x27   : > { %v318_v33 = vld [vmem:[%s6685_s14 + $0x18c] sm:$0xf]  ;;  %v320_v34 = vld [vmem:[%s6685_s14 + $0x198] sm:$0xf]  ;;  %317 = vst [vmem:[%s6692_s15 + $0x80] sm:$0xf] %v316_v32 }
  0x28   : > { %319 = vst [vmem:[%s6692_s15 + $0x84] sm:$0xf] %v318_v33  ;;  %321 = vst [vmem:[%s6692_s15 + $0x88] sm:$0xf] %v320_v34  ;;  %v322_v35 = vld [vmem:[%s6685_s14 + $0x1a4] sm:$0xf] }
  0x29   : > { %v324_v36 = vld [vmem:[%s6685_s14 + $0x1b0] sm:$0xf]  ;;  %v326_v37 = vld [vmem:[%s6685_s14 + $0x1bc] sm:$0xf]  ;;  %323 = vst [vmem:[%s6692_s15 + $0x8c] sm:$0xf] %v322_v35 }
  0x2a   : > { %325 = vst [vmem:[%s6692_s15 + $0x90] sm:$0xf] %v324_v36  ;;  %327 = vst [vmem:[%s6692_s15 + $0x94] sm:$0xf] %v326_v37  ;;  %v328_v38 = vld [vmem:[%s6685_s14 + $0x1c8] sm:$0xf] }
  0x2b   : > { %v330_v39 = vld [vmem:[%s6685_s14 + $0x1d4] sm:$0xf]  ;;  %v332_v40 = vld [vmem:[%s6685_s14 + $0x1e0] sm:$0xf]  ;;  %329 = vst [vmem:[%s6692_s15 + $0x98] sm:$0xf] %v328_v38 }
  0x2c   : > { %331 = vst [vmem:[%s6692_s15 + $0x9c] sm:$0xf] %v330_v39  ;;  %333 = vst [vmem:[%s6692_s15 + $0xa0] sm:$0xf] %v332_v40  ;;  %v334_v41 = vld [vmem:[%s6685_s14 + $0x1ec] sm:$0xf] }
  0x2d   : > { %v336_v42 = vld [vmem:[%s6685_s14 + $0x1f8] sm:$0xf]  ;;  %v338_v43 = vld [vmem:[%s6685_s14 + $0x204] sm:$0xf]  ;;  %335 = vst [vmem:[%s6692_s15 + $0xa4] sm:$0xf] %v334_v41 }
  0x2e   : > { %337 = vst [vmem:[%s6692_s15 + $0xa8] sm:$0xf] %v336_v42  ;;  %339 = vst [vmem:[%s6692_s15 + $0xac] sm:$0xf] %v338_v43  ;;  %v340_v44 = vld [vmem:[%s6685_s14 + $0x210] sm:$0xf] }
  0x2f   : > { %v342_v45 = vld [vmem:[%s6685_s14 + $0x21c] sm:$0xf]  ;;  %v344_v46 = vld [vmem:[%s6685_s14 + $0x228] sm:$0xf]  ;;  %341 = vst [vmem:[%s6692_s15 + $0xb0] sm:$0xf] %v340_v44 }
  0x30   : > { %343 = vst [vmem:[%s6692_s15 + $0xb4] sm:$0xf] %v342_v45  ;;  %345 = vst [vmem:[%s6692_s15 + $0xb8] sm:$0xf] %v344_v46  ;;  %v346_v47 = vld [vmem:[%s6685_s14 + $0x234] sm:$0xf] }
  0x31   : > { %v348_v48 = vld [vmem:[%s6685_s14 + $0x240] sm:$0xf]  ;;  %v350_v49 = vld [vmem:[%s6685_s14 + $0x24c] sm:$0xf]  ;;  %347 = vst [vmem:[%s6692_s15 + $0xbc] sm:$0xf] %v346_v47 }
  0x32   : > { %349 = vst [vmem:[%s6692_s15 + $0xc0] sm:$0xf] %v348_v48  ;;  %351 = vst [vmem:[%s6692_s15 + $0xc4] sm:$0xf] %v350_v49  ;;  %v352_v50 = vld [vmem:[%s6685_s14 + $0x258] sm:$0xf] }
  0x33   : > { %v354_v51 = vld [vmem:[%s6685_s14 + $0x264] sm:$0xf]  ;;  %v356_v52 = vld [vmem:[%s6685_s14 + $0x270] sm:$0xf]  ;;  %353 = vst [vmem:[%s6692_s15 + $0xc8] sm:$0xf] %v352_v50 }
  0x34   : > { %355 = vst [vmem:[%s6692_s15 + $0xcc] sm:$0xf] %v354_v51  ;;  %357 = vst [vmem:[%s6692_s15 + $0xd0] sm:$0xf] %v356_v52  ;;  %v358_v53 = vld [vmem:[%s6685_s14 + $0x27c] sm:$0xf] }
  0x35   : > { %v360_v54 = vld [vmem:[%s6685_s14 + $0x288] sm:$0xf]  ;;  %v362_v55 = vld [vmem:[%s6685_s14 + $0x294] sm:$0xf]  ;;  %359 = vst [vmem:[%s6692_s15 + $0xd4] sm:$0xf] %v358_v53 }
  0x36   : > { %361 = vst [vmem:[%s6692_s15 + $0xd8] sm:$0xf] %v360_v54  ;;  %363 = vst [vmem:[%s6692_s15 + $0xdc] sm:$0xf] %v362_v55  ;;  %v364_v56 = vld [vmem:[%s6685_s14 + $0x2a0] sm:$0xf] }
  0x37   : > { %v366_v57 = vld [vmem:[%s6685_s14 + $0x2ac] sm:$0xf]  ;;  %v368_v58 = vld [vmem:[%s6685_s14 + $0x2b8] sm:$0xf]  ;;  %365 = vst [vmem:[%s6692_s15 + $0xe0] sm:$0xf] %v364_v56 }
  0x38   : > { %367 = vst [vmem:[%s6692_s15 + $0xe4] sm:$0xf] %v366_v57  ;;  %369 = vst [vmem:[%s6692_s15 + $0xe8] sm:$0xf] %v368_v58  ;;  %v370_v59 = vld [vmem:[%s6685_s14 + $0x2c4] sm:$0xf] }
  0x39   : > { %v372_v60 = vld [vmem:[%s6685_s14 + $0x2d0] sm:$0xf]  ;;  %v374_v61 = vld [vmem:[%s6685_s14 + $0x2dc] sm:$0xf]  ;;  %371 = vst [vmem:[%s6692_s15 + $0xec] sm:$0xf] %v370_v59 }
  0x3a   : > { %373 = vst [vmem:[%s6692_s15 + $0xf0] sm:$0xf] %v372_v60  ;;  %375 = vst [vmem:[%s6692_s15 + $0xf4] sm:$0xf] %v374_v61  ;;  %v376_v62 = vld [vmem:[%s6685_s14 + $0x2e8] sm:$0xf] }
  0x3b   : > { %v378_v63 = vld [vmem:[%s6685_s14 + $0x2f4] sm:$0xf]  ;;  %v380_v0 = vld [vmem:[%s6685_s14 + $0x300] sm:$0xf]  ;;  %377 = vst [vmem:[%s6692_s15 + $0xf8] sm:$0xf] %v376_v62 }
  0x3c   : > { %379 = vst [vmem:[%s6692_s15 + $0xfc] sm:$0xf] %v378_v63  ;;  %381 = vst [vmem:[%s6692_s15 + $0x100] sm:$0xf] %v380_v0  ;;  %v382_v1 = vld [vmem:[%s6685_s14 + $0x30c] sm:$0xf] }
  0x3d   : > { %v384_v2 = vld [vmem:[%s6685_s14 + $0x318] sm:$0xf]  ;;  %v386_v3 = vld [vmem:[%s6685_s14 + $0x324] sm:$0xf]  ;;  %383 = vst [vmem:[%s6692_s15 + $0x104] sm:$0xf] %v382_v1 }
  0x3e   : > { %385 = vst [vmem:[%s6692_s15 + $0x108] sm:$0xf] %v384_v2  ;;  %387 = vst [vmem:[%s6692_s15 + $0x10c] sm:$0xf] %v386_v3  ;;  %v388_v4 = vld [vmem:[%s6685_s14 + $0x330] sm:$0xf] }
  0x3f   : > { %v390_v5 = vld [vmem:[%s6685_s14 + $0x33c] sm:$0xf]  ;;  %v392_v6 = vld [vmem:[%s6685_s14 + $0x348] sm:$0xf]  ;;  %389 = vst [vmem:[%s6692_s15 + $0x110] sm:$0xf] %v388_v4 }
  0x40   : > { %391 = vst [vmem:[%s6692_s15 + $0x114] sm:$0xf] %v390_v5  ;;  %393 = vst [vmem:[%s6692_s15 + $0x118] sm:$0xf] %v392_v6  ;;  %v394_v7 = vld [vmem:[%s6685_s14 + $0x354] sm:$0xf] }
  0x41   : > { %v396_v8 = vld [vmem:[%s6685_s14 + $0x360] sm:$0xf]  ;;  %v398_v9 = vld [vmem:[%s6685_s14 + $0x36c] sm:$0xf]  ;;  %395 = vst [vmem:[%s6692_s15 + $0x11c] sm:$0xf] %v394_v7 }
  0x42   : > { %397 = vst [vmem:[%s6692_s15 + $0x120] sm:$0xf] %v396_v8  ;;  %399 = vst [vmem:[%s6692_s15 + $0x124] sm:$0xf] %v398_v9  ;;  %v400_v10 = vld [vmem:[%s6685_s14 + $0x378] sm:$0xf] }
  0x43   : > { %v402_v11 = vld [vmem:[%s6685_s14 + $0x384] sm:$0xf]  ;;  %v404_v12 = vld [vmem:[%s6685_s14 + $0x390] sm:$0xf]  ;;  %401 = vst [vmem:[%s6692_s15 + $0x128] sm:$0xf] %v400_v10 }
  0x44   : > { %403 = vst [vmem:[%s6692_s15 + $0x12c] sm:$0xf] %v402_v11  ;;  %405 = vst [vmem:[%s6692_s15 + $0x130] sm:$0xf] %v404_v12  ;;  %v406_v13 = vld [vmem:[%s6685_s14 + $0x39c] sm:$0xf] }
  0x45   : > { %v408_v14 = vld [vmem:[%s6685_s14 + $0x3a8] sm:$0xf]  ;;  %v410_v15 = vld [vmem:[%s6685_s14 + $0x3b4] sm:$0xf]  ;;  %407 = vst [vmem:[%s6692_s15 + $0x134] sm:$0xf] %v406_v13 }
  0x46   : > { %409 = vst [vmem:[%s6692_s15 + $0x138] sm:$0xf] %v408_v14  ;;  %411 = vst [vmem:[%s6692_s15 + $0x13c] sm:$0xf] %v410_v15  ;;  %v412_v16 = vld [vmem:[%s6685_s14 + $0x3c0] sm:$0xf] }
  0x47   : > { %v414_v17 = vld [vmem:[%s6685_s14 + $0x3cc] sm:$0xf]  ;;  %v416_v18 = vld [vmem:[%s6685_s14 + $0x3d8] sm:$0xf]  ;;  %413 = vst [vmem:[%s6692_s15 + $0x140] sm:$0xf] %v412_v16 }
  0x48   : > { %415 = vst [vmem:[%s6692_s15 + $0x144] sm:$0xf] %v414_v17  ;;  %417 = vst [vmem:[%s6692_s15 + $0x148] sm:$0xf] %v416_v18  ;;  %v418_v19 = vld [vmem:[%s6685_s14 + $0x3e4] sm:$0xf] }
  0x49   : > { %v420_v20 = vld [vmem:[%s6685_s14 + $0x3f0] sm:$0xf]  ;;  %v422_v21 = vld [vmem:[%s6685_s14 + $0x3fc] sm:$0xf]  ;;  %419 = vst [vmem:[%s6692_s15 + $0x14c] sm:$0xf] %v418_v19 }
  0x4a   : > { %421 = vst [vmem:[%s6692_s15 + $0x150] sm:$0xf] %v420_v20  ;;  %423 = vst [vmem:[%s6692_s15 + $0x154] sm:$0xf] %v422_v21  ;;  %v424_v22 = vld [vmem:[%s6685_s14 + $0x408] sm:$0xf] }
  0x4b   : > { %v426_v23 = vld [vmem:[%s6685_s14 + $0x414] sm:$0xf]  ;;  %v428_v24 = vld [vmem:[%s6685_s14 + $0x420] sm:$0xf]  ;;  %425 = vst [vmem:[%s6692_s15 + $0x158] sm:$0xf] %v424_v22 }
  0x4c   : > { %427 = vst [vmem:[%s6692_s15 + $0x15c] sm:$0xf] %v426_v23  ;;  %429 = vst [vmem:[%s6692_s15 + $0x160] sm:$0xf] %v428_v24  ;;  %v430_v25 = vld [vmem:[%s6685_s14 + $0x42c] sm:$0xf] }
  0x4d   : > { %v432_v26 = vld [vmem:[%s6685_s14 + $0x438] sm:$0xf]  ;;  %v434_v27 = vld [vmem:[%s6685_s14 + $0x444] sm:$0xf]  ;;  %431 = vst [vmem:[%s6692_s15 + $0x164] sm:$0xf] %v430_v25 }
  0x4e   : > { %433 = vst [vmem:[%s6692_s15 + $0x168] sm:$0xf] %v432_v26  ;;  %435 = vst [vmem:[%s6692_s15 + $0x16c] sm:$0xf] %v434_v27  ;;  %v436_v28 = vld [vmem:[%s6685_s14 + $0x450] sm:$0xf] }
  0x4f   : > { %v438_v29 = vld [vmem:[%s6685_s14 + $0x45c] sm:$0xf]  ;;  %v440_v30 = vld [vmem:[%s6685_s14 + $0x468] sm:$0xf]  ;;  %437 = vst [vmem:[%s6692_s15 + $0x170] sm:$0xf] %v436_v28 }
  0x50   : > { %439 = vst [vmem:[%s6692_s15 + $0x174] sm:$0xf] %v438_v29  ;;  %441 = vst [vmem:[%s6692_s15 + $0x178] sm:$0xf] %v440_v30  ;;  %v442_v31 = vld [vmem:[%s6685_s14 + $0x474] sm:$0xf] }
  0x51   : > { %v444_v32 = vld [vmem:[%s6685_s14 + $0x480] sm:$0xf]  ;;  %v446_v33 = vld [vmem:[%s6685_s14 + $0x48c] sm:$0xf]  ;;  %443 = vst [vmem:[%s6692_s15 + $0x17c] sm:$0xf] %v442_v31 }
  0x52   : > { %445 = vst [vmem:[%s6692_s15 + $0x180] sm:$0xf] %v444_v32  ;;  %447 = vst [vmem:[%s6692_s15 + $0x184] sm:$0xf] %v446_v33  ;;  %v448_v34 = vld [vmem:[%s6685_s14 + $0x498] sm:$0xf] }
  0x53   : > { %v450_v35 = vld [vmem:[%s6685_s14 + $0x4a4] sm:$0xf]  ;;  %v452_v36 = vld [vmem:[%s6685_s14 + $0x4b0] sm:$0xf]  ;;  %449 = vst [vmem:[%s6692_s15 + $0x188] sm:$0xf] %v448_v34 }
  0x54   : > { %451 = vst [vmem:[%s6692_s15 + $0x18c] sm:$0xf] %v450_v35  ;;  %453 = vst [vmem:[%s6692_s15 + $0x190] sm:$0xf] %v452_v36  ;;  %v454_v37 = vld [vmem:[%s6685_s14 + $0x4bc] sm:$0xf] }
  0x55   : > { %v456_v38 = vld [vmem:[%s6685_s14 + $0x4c8] sm:$0xf]  ;;  %v458_v39 = vld [vmem:[%s6685_s14 + $0x4d4] sm:$0xf]  ;;  %455 = vst [vmem:[%s6692_s15 + $0x194] sm:$0xf] %v454_v37 }
  0x56   : > { %457 = vst [vmem:[%s6692_s15 + $0x198] sm:$0xf] %v456_v38  ;;  %459 = vst [vmem:[%s6692_s15 + $0x19c] sm:$0xf] %v458_v39  ;;  %v460_v40 = vld [vmem:[%s6685_s14 + $0x4e0] sm:$0xf] }
  0x57   : > { %v462_v41 = vld [vmem:[%s6685_s14 + $0x4ec] sm:$0xf]  ;;  %v464_v42 = vld [vmem:[%s6685_s14 + $0x4f8] sm:$0xf]  ;;  %461 = vst [vmem:[%s6692_s15 + $0x1a0] sm:$0xf] %v460_v40 }
  0x58   : > { %463 = vst [vmem:[%s6692_s15 + $0x1a4] sm:$0xf] %v462_v41  ;;  %465 = vst [vmem:[%s6692_s15 + $0x1a8] sm:$0xf] %v464_v42  ;;  %v466_v43 = vld [vmem:[%s6685_s14 + $0x504] sm:$0xf] }
  0x59   : > { %v468_v44 = vld [vmem:[%s6685_s14 + $0x510] sm:$0xf]  ;;  %v470_v45 = vld [vmem:[%s6685_s14 + $0x51c] sm:$0xf]  ;;  %467 = vst [vmem:[%s6692_s15 + $0x1ac] sm:$0xf] %v466_v43 }
  0x5a   : > { %469 = vst [vmem:[%s6692_s15 + $0x1b0] sm:$0xf] %v468_v44  ;;  %471 = vst [vmem:[%s6692_s15 + $0x1b4] sm:$0xf] %v470_v45  ;;  %v472_v46 = vld [vmem:[%s6685_s14 + $0x528] sm:$0xf] }
  0x5b   : > { %v474_v47 = vld [vmem:[%s6685_s14 + $0x534] sm:$0xf]  ;;  %v476_v48 = vld [vmem:[%s6685_s14 + $0x540] sm:$0xf]  ;;  %473 = vst [vmem:[%s6692_s15 + $0x1b8] sm:$0xf] %v472_v46 }
  0x5c   : > { %475 = vst [vmem:[%s6692_s15 + $0x1bc] sm:$0xf] %v474_v47  ;;  %477 = vst [vmem:[%s6692_s15 + $0x1c0] sm:$0xf] %v476_v48  ;;  %v478_v49 = vld [vmem:[%s6685_s14 + $0x54c] sm:$0xf] }
  0x5d   : > { %v480_v50 = vld [vmem:[%s6685_s14 + $0x558] sm:$0xf]  ;;  %v482_v51 = vld [vmem:[%s6685_s14 + $0x564] sm:$0xf]  ;;  %479 = vst [vmem:[%s6692_s15 + $0x1c4] sm:$0xf] %v478_v49 }
  0x5e   : > { %481 = vst [vmem:[%s6692_s15 + $0x1c8] sm:$0xf] %v480_v50  ;;  %483 = vst [vmem:[%s6692_s15 + $0x1cc] sm:$0xf] %v482_v51  ;;  %v484_v52 = vld [vmem:[%s6685_s14 + $0x570] sm:$0xf] }
  0x5f   : > { %v486_v53 = vld [vmem:[%s6685_s14 + $0x57c] sm:$0xf]  ;;  %v488_v54 = vld [vmem:[%s6685_s14 + $0x588] sm:$0xf]  ;;  %485 = vst [vmem:[%s6692_s15 + $0x1d0] sm:$0xf] %v484_v52 }
  0x60   : > { %487 = vst [vmem:[%s6692_s15 + $0x1d4] sm:$0xf] %v486_v53  ;;  %489 = vst [vmem:[%s6692_s15 + $0x1d8] sm:$0xf] %v488_v54  ;;  %v490_v55 = vld [vmem:[%s6685_s14 + $0x594] sm:$0xf] }
  0x61   : > { %v492_v56 = vld [vmem:[%s6685_s14 + $0x5a0] sm:$0xf]  ;;  %v494_v57 = vld [vmem:[%s6685_s14 + $0x5ac] sm:$0xf]  ;;  %491 = vst [vmem:[%s6692_s15 + $0x1dc] sm:$0xf] %v490_v55 }
  0x62   : > { %493 = vst [vmem:[%s6692_s15 + $0x1e0] sm:$0xf] %v492_v56  ;;  %495 = vst [vmem:[%s6692_s15 + $0x1e4] sm:$0xf] %v494_v57  ;;  %v496_v58 = vld [vmem:[%s6685_s14 + $0x5b8] sm:$0xf] }
  0x63   : > { %v498_v59 = vld [vmem:[%s6685_s14 + $0x5c4] sm:$0xf]  ;;  %v500_v60 = vld [vmem:[%s6685_s14 + $0x5d0] sm:$0xf]  ;;  %497 = vst [vmem:[%s6692_s15 + $0x1e8] sm:$0xf] %v496_v58 }
  0x64   : > { %499 = vst [vmem:[%s6692_s15 + $0x1ec] sm:$0xf] %v498_v59  ;;  %501 = vst [vmem:[%s6692_s15 + $0x1f0] sm:$0xf] %v500_v60  ;;  %v502_v61 = vld [vmem:[%s6685_s14 + $0x5dc] sm:$0xf] }
  0x65   : > { %v504_v62 = vld [vmem:[%s6685_s14 + $0x5e8] sm:$0xf]  ;;  %v506_v63 = vld [vmem:[%s6685_s14 + $0x5f4] sm:$0xf]  ;;  %503 = vst [vmem:[%s6692_s15 + $0x1f4] sm:$0xf] %v502_v61 }
  0x66   : > { %505 = vst [vmem:[%s6692_s15 + $0x1f8] sm:$0xf] %v504_v62  ;;  %507 = vst [vmem:[%s6692_s15 + $0x1fc] sm:$0xf] %v506_v63  ;;  %v508_v0 = vld [vmem:[%s6685_s14 + $0x600] sm:$0xf] }
  0x67   : > { %v510_v1 = vld [vmem:[%s6685_s14 + $0x60c] sm:$0xf]  ;;  %v512_v2 = vld [vmem:[%s6685_s14 + $0x618] sm:$0xf]  ;;  %509 = vst [vmem:[%s6692_s15 + $0x200] sm:$0xf] %v508_v0 }
  0x68   : > { %511 = vst [vmem:[%s6692_s15 + $0x204] sm:$0xf] %v510_v1  ;;  %513 = vst [vmem:[%s6692_s15 + $0x208] sm:$0xf] %v512_v2  ;;  %v514_v3 = vld [vmem:[%s6685_s14 + $0x624] sm:$0xf] }
  0x69   : > { %v516_v4 = vld [vmem:[%s6685_s14 + $0x630] sm:$0xf]  ;;  %v518_v5 = vld [vmem:[%s6685_s14 + $0x63c] sm:$0xf]  ;;  %515 = vst [vmem:[%s6692_s15 + $0x20c] sm:$0xf] %v514_v3 }
  0x6a   : > { %517 = vst [vmem:[%s6692_s15 + $0x210] sm:$0xf] %v516_v4  ;;  %519 = vst [vmem:[%s6692_s15 + $0x214] sm:$0xf] %v518_v5  ;;  %v520_v6 = vld [vmem:[%s6685_s14 + $0x648] sm:$0xf] }
  0x6b   : > { %v522_v7 = vld [vmem:[%s6685_s14 + $0x654] sm:$0xf]  ;;  %v524_v8 = vld [vmem:[%s6685_s14 + $0x660] sm:$0xf]  ;;  %521 = vst [vmem:[%s6692_s15 + $0x218] sm:$0xf] %v520_v6 }
  0x6c   : > { %523 = vst [vmem:[%s6692_s15 + $0x21c] sm:$0xf] %v522_v7  ;;  %525 = vst [vmem:[%s6692_s15 + $0x220] sm:$0xf] %v524_v8  ;;  %v526_v9 = vld [vmem:[%s6685_s14 + $0x66c] sm:$0xf] }
  0x6d   : > { %v528_v10 = vld [vmem:[%s6685_s14 + $0x678] sm:$0xf]  ;;  %v530_v11 = vld [vmem:[%s6685_s14 + $0x684] sm:$0xf]  ;;  %527 = vst [vmem:[%s6692_s15 + $0x224] sm:$0xf] %v526_v9 }
  0x6e   : > { %529 = vst [vmem:[%s6692_s15 + $0x228] sm:$0xf] %v528_v10  ;;  %531 = vst [vmem:[%s6692_s15 + $0x22c] sm:$0xf] %v530_v11  ;;  %v532_v12 = vld [vmem:[%s6685_s14 + $0x690] sm:$0xf] }
  0x6f   : > { %v534_v13 = vld [vmem:[%s6685_s14 + $0x69c] sm:$0xf]  ;;  %v536_v14 = vld [vmem:[%s6685_s14 + $0x6a8] sm:$0xf]  ;;  %533 = vst [vmem:[%s6692_s15 + $0x230] sm:$0xf] %v532_v12 }
  0x70   : > { %535 = vst [vmem:[%s6692_s15 + $0x234] sm:$0xf] %v534_v13  ;;  %537 = vst [vmem:[%s6692_s15 + $0x238] sm:$0xf] %v536_v14  ;;  %v538_v15 = vld [vmem:[%s6685_s14 + $0x6b4] sm:$0xf] }
  0x71   : > { %v540_v16 = vld [vmem:[%s6685_s14 + $0x6c0] sm:$0xf]  ;;  %v542_v17 = vld [vmem:[%s6685_s14 + $0x6cc] sm:$0xf]  ;;  %539 = vst [vmem:[%s6692_s15 + $0x23c] sm:$0xf] %v538_v15 }
  0x72   : > { %541 = vst [vmem:[%s6692_s15 + $0x240] sm:$0xf] %v540_v16  ;;  %543 = vst [vmem:[%s6692_s15 + $0x244] sm:$0xf] %v542_v17  ;;  %v544_v18 = vld [vmem:[%s6685_s14 + $0x6d8] sm:$0xf] }
  0x73   : > { %v546_v19 = vld [vmem:[%s6685_s14 + $0x6e4] sm:$0xf]  ;;  %v548_v20 = vld [vmem:[%s6685_s14 + $0x6f0] sm:$0xf]  ;;  %545 = vst [vmem:[%s6692_s15 + $0x248] sm:$0xf] %v544_v18 }
  0x74   : > { %547 = vst [vmem:[%s6692_s15 + $0x24c] sm:$0xf] %v546_v19  ;;  %549 = vst [vmem:[%s6692_s15 + $0x250] sm:$0xf] %v548_v20  ;;  %v550_v21 = vld [vmem:[%s6685_s14 + $0x6fc] sm:$0xf] }
  0x75   : > { %v552_v22 = vld [vmem:[%s6685_s14 + $0x708] sm:$0xf]  ;;  %v554_v23 = vld [vmem:[%s6685_s14 + $0x714] sm:$0xf]  ;;  %551 = vst [vmem:[%s6692_s15 + $0x254] sm:$0xf] %v550_v21 }
  0x76   : > { %553 = vst [vmem:[%s6692_s15 + $0x258] sm:$0xf] %v552_v22  ;;  %555 = vst [vmem:[%s6692_s15 + $0x25c] sm:$0xf] %v554_v23  ;;  %v556_v24 = vld [vmem:[%s6685_s14 + $0x720] sm:$0xf] }
  0x77   : > { %v558_v25 = vld [vmem:[%s6685_s14 + $0x72c] sm:$0xf]  ;;  %v560_v26 = vld [vmem:[%s6685_s14 + $0x738] sm:$0xf]  ;;  %557 = vst [vmem:[%s6692_s15 + $0x260] sm:$0xf] %v556_v24 }
  0x78   : > { %559 = vst [vmem:[%s6692_s15 + $0x264] sm:$0xf] %v558_v25  ;;  %561 = vst [vmem:[%s6692_s15 + $0x268] sm:$0xf] %v560_v26  ;;  %v562_v27 = vld [vmem:[%s6685_s14 + $0x744] sm:$0xf] }
  0x79   : > { %v564_v28 = vld [vmem:[%s6685_s14 + $0x750] sm:$0xf]  ;;  %v566_v29 = vld [vmem:[%s6685_s14 + $0x75c] sm:$0xf]  ;;  %563 = vst [vmem:[%s6692_s15 + $0x26c] sm:$0xf] %v562_v27 }
  0x7a   : > { %565 = vst [vmem:[%s6692_s15 + $0x270] sm:$0xf] %v564_v28  ;;  %567 = vst [vmem:[%s6692_s15 + $0x274] sm:$0xf] %v566_v29  ;;  %v568_v30 = vld [vmem:[%s6685_s14 + $0x768] sm:$0xf] }
  0x7b   : > { %v570_v31 = vld [vmem:[%s6685_s14 + $0x774] sm:$0xf]  ;;  %v572_v32 = vld [vmem:[%s6685_s14 + $0x780] sm:$0xf]  ;;  %569 = vst [vmem:[%s6692_s15 + $0x278] sm:$0xf] %v568_v30 }
  0x7c   : > { %571 = vst [vmem:[%s6692_s15 + $0x27c] sm:$0xf] %v570_v31  ;;  %573 = vst [vmem:[%s6692_s15 + $0x280] sm:$0xf] %v572_v32  ;;  %v574_v33 = vld [vmem:[%s6685_s14 + $0x78c] sm:$0xf] }
  0x7d   : > { %v576_v34 = vld [vmem:[%s6685_s14 + $0x798] sm:$0xf]  ;;  %v578_v35 = vld [vmem:[%s6685_s14 + $0x7a4] sm:$0xf]  ;;  %575 = vst [vmem:[%s6692_s15 + $0x284] sm:$0xf] %v574_v33 }
  0x7e   : > { %577 = vst [vmem:[%s6692_s15 + $0x288] sm:$0xf] %v576_v34  ;;  %579 = vst [vmem:[%s6692_s15 + $0x28c] sm:$0xf] %v578_v35  ;;  %v580_v36 = vld [vmem:[%s6685_s14 + $0x7b0] sm:$0xf] }
  0x7f   : > { %v582_v37 = vld [vmem:[%s6685_s14 + $0x7bc] sm:$0xf]  ;;  %v584_v38 = vld [vmem:[%s6685_s14 + $0x7c8] sm:$0xf]  ;;  %581 = vst [vmem:[%s6692_s15 + $0x290] sm:$0xf] %v580_v36 }
  0x80   : > { %583 = vst [vmem:[%s6692_s15 + $0x294] sm:$0xf] %v582_v37  ;;  %585 = vst [vmem:[%s6692_s15 + $0x298] sm:$0xf] %v584_v38  ;;  %v586_v39 = vld [vmem:[%s6685_s14 + $0x7d4] sm:$0xf] }
  0x81   : > { %v588_v40 = vld [vmem:[%s6685_s14 + $0x7e0] sm:$0xf]  ;;  %v590_v41 = vld [vmem:[%s6685_s14 + $0x7ec] sm:$0xf]  ;;  %587 = vst [vmem:[%s6692_s15 + $0x29c] sm:$0xf] %v586_v39 }
  0x82   : > { %589 = vst [vmem:[%s6692_s15 + $0x2a0] sm:$0xf] %v588_v40  ;;  %591 = vst [vmem:[%s6692_s15 + $0x2a4] sm:$0xf] %v590_v41  ;;  %v592_v42 = vld [vmem:[%s6685_s14 + $0x7f8] sm:$0xf] }
  0x83   : > { %v594_v43 = vld [vmem:[%s6685_s14 + $0x804] sm:$0xf]  ;;  %v596_v44 = vld [vmem:[%s6685_s14 + $0x810] sm:$0xf]  ;;  %593 = vst [vmem:[%s6692_s15 + $0x2a8] sm:$0xf] %v592_v42 }
  0x84   : > { %595 = vst [vmem:[%s6692_s15 + $0x2ac] sm:$0xf] %v594_v43  ;;  %597 = vst [vmem:[%s6692_s15 + $0x2b0] sm:$0xf] %v596_v44  ;;  %v598_v45 = vld [vmem:[%s6685_s14 + $0x81c] sm:$0xf] }
  0x85   : > { %v600_v46 = vld [vmem:[%s6685_s14 + $0x828] sm:$0xf]  ;;  %v602_v47 = vld [vmem:[%s6685_s14 + $0x834] sm:$0xf]  ;;  %599 = vst [vmem:[%s6692_s15 + $0x2b4] sm:$0xf] %v598_v45 }
  0x86   : > { %601 = vst [vmem:[%s6692_s15 + $0x2b8] sm:$0xf] %v600_v46  ;;  %603 = vst [vmem:[%s6692_s15 + $0x2bc] sm:$0xf] %v602_v47  ;;  %v604_v48 = vld [vmem:[%s6685_s14 + $0x840] sm:$0xf] }
  0x87   : > { %v606_v49 = vld [vmem:[%s6685_s14 + $0x84c] sm:$0xf]  ;;  %v608_v50 = vld [vmem:[%s6685_s14 + $0x858] sm:$0xf]  ;;  %605 = vst [vmem:[%s6692_s15 + $0x2c0] sm:$0xf] %v604_v48 }
  0x88   : > { %607 = vst [vmem:[%s6692_s15 + $0x2c4] sm:$0xf] %v606_v49  ;;  %609 = vst [vmem:[%s6692_s15 + $0x2c8] sm:$0xf] %v608_v50  ;;  %v610_v51 = vld [vmem:[%s6685_s14 + $0x864] sm:$0xf] }
  0x89   : > { %v612_v52 = vld [vmem:[%s6685_s14 + $0x870] sm:$0xf]  ;;  %v614_v53 = vld [vmem:[%s6685_s14 + $0x87c] sm:$0xf]  ;;  %611 = vst [vmem:[%s6692_s15 + $0x2cc] sm:$0xf] %v610_v51 }
  0x8a   : > { %613 = vst [vmem:[%s6692_s15 + $0x2d0] sm:$0xf] %v612_v52  ;;  %615 = vst [vmem:[%s6692_s15 + $0x2d4] sm:$0xf] %v614_v53  ;;  %v616_v54 = vld [vmem:[%s6685_s14 + $0x888] sm:$0xf] }
  0x8b   : > { %v618_v55 = vld [vmem:[%s6685_s14 + $0x894] sm:$0xf]  ;;  %v620_v56 = vld [vmem:[%s6685_s14 + $0x8a0] sm:$0xf]  ;;  %617 = vst [vmem:[%s6692_s15 + $0x2d8] sm:$0xf] %v616_v54 }
  0x8c   : > { %619 = vst [vmem:[%s6692_s15 + $0x2dc] sm:$0xf] %v618_v55  ;;  %621 = vst [vmem:[%s6692_s15 + $0x2e0] sm:$0xf] %v620_v56  ;;  %v622_v57 = vld [vmem:[%s6685_s14 + $0x8ac] sm:$0xf] }
  0x8d   : > { %v624_v58 = vld [vmem:[%s6685_s14 + $0x8b8] sm:$0xf]  ;;  %v626_v59 = vld [vmem:[%s6685_s14 + $0x8c4] sm:$0xf]  ;;  %623 = vst [vmem:[%s6692_s15 + $0x2e4] sm:$0xf] %v622_v57 }
  0x8e   : > { %625 = vst [vmem:[%s6692_s15 + $0x2e8] sm:$0xf] %v624_v58  ;;  %627 = vst [vmem:[%s6692_s15 + $0x2ec] sm:$0xf] %v626_v59  ;;  %v628_v60 = vld [vmem:[%s6685_s14 + $0x8d0] sm:$0xf] }
  0x8f   : > { %v630_v61 = vld [vmem:[%s6685_s14 + $0x8dc] sm:$0xf]  ;;  %v632_v62 = vld [vmem:[%s6685_s14 + $0x8e8] sm:$0xf]  ;;  %629 = vst [vmem:[%s6692_s15 + $0x2f0] sm:$0xf] %v628_v60 }
  0x90   : > { %631 = vst [vmem:[%s6692_s15 + $0x2f4] sm:$0xf] %v630_v61  ;;  %633 = vst [vmem:[%s6692_s15 + $0x2f8] sm:$0xf] %v632_v62  ;;  %v634_v63 = vld [vmem:[%s6685_s14 + $0x8f4] sm:$0xf] }
  0x91   : > { %v636_v0 = vld [vmem:[%s6685_s14 + $0x900] sm:$0xf]  ;;  %v638_v1 = vld [vmem:[%s6685_s14 + $0x90c] sm:$0xf]  ;;  %635 = vst [vmem:[%s6692_s15 + $0x2fc] sm:$0xf] %v634_v63 }
  0x92   : > { %637 = vst [vmem:[%s6692_s15 + $0x300] sm:$0xf] %v636_v0  ;;  %639 = vst [vmem:[%s6692_s15 + $0x304] sm:$0xf] %v638_v1  ;;  %v640_v2 = vld [vmem:[%s6685_s14 + $0x918] sm:$0xf] }
  0x93   : > { %v642_v3 = vld [vmem:[%s6685_s14 + $0x924] sm:$0xf]  ;;  %v644_v4 = vld [vmem:[%s6685_s14 + $0x930] sm:$0xf]  ;;  %641 = vst [vmem:[%s6692_s15 + $0x308] sm:$0xf] %v640_v2 }
  0x94   : > { %643 = vst [vmem:[%s6692_s15 + $0x30c] sm:$0xf] %v642_v3  ;;  %645 = vst [vmem:[%s6692_s15 + $0x310] sm:$0xf] %v644_v4  ;;  %v646_v5 = vld [vmem:[%s6685_s14 + $0x93c] sm:$0xf] }
  0x95   : > { %v648_v6 = vld [vmem:[%s6685_s14 + $0x948] sm:$0xf]  ;;  %v650_v7 = vld [vmem:[%s6685_s14 + $0x954] sm:$0xf]  ;;  %647 = vst [vmem:[%s6692_s15 + $0x314] sm:$0xf] %v646_v5 }
  0x96   : > { %649 = vst [vmem:[%s6692_s15 + $0x318] sm:$0xf] %v648_v6  ;;  %651 = vst [vmem:[%s6692_s15 + $0x31c] sm:$0xf] %v650_v7  ;;  %v652_v8 = vld [vmem:[%s6685_s14 + $0x960] sm:$0xf] }
  0x97   : > { %v654_v9 = vld [vmem:[%s6685_s14 + $0x96c] sm:$0xf]  ;;  %v656_v10 = vld [vmem:[%s6685_s14 + $0x978] sm:$0xf]  ;;  %653 = vst [vmem:[%s6692_s15 + $0x320] sm:$0xf] %v652_v8 }
  0x98   : > { %655 = vst [vmem:[%s6692_s15 + $0x324] sm:$0xf] %v654_v9  ;;  %657 = vst [vmem:[%s6692_s15 + $0x328] sm:$0xf] %v656_v10  ;;  %v658_v11 = vld [vmem:[%s6685_s14 + $0x984] sm:$0xf] }
  0x99   : > { %v660_v12 = vld [vmem:[%s6685_s14 + $0x990] sm:$0xf]  ;;  %v662_v13 = vld [vmem:[%s6685_s14 + $0x99c] sm:$0xf]  ;;  %659 = vst [vmem:[%s6692_s15 + $0x32c] sm:$0xf] %v658_v11 }
  0x9a   : > { %661 = vst [vmem:[%s6692_s15 + $0x330] sm:$0xf] %v660_v12  ;;  %663 = vst [vmem:[%s6692_s15 + $0x334] sm:$0xf] %v662_v13  ;;  %v664_v14 = vld [vmem:[%s6685_s14 + $0x9a8] sm:$0xf] }
  0x9b   : > { %v666_v15 = vld [vmem:[%s6685_s14 + $0x9b4] sm:$0xf]  ;;  %v668_v16 = vld [vmem:[%s6685_s14 + $0x9c0] sm:$0xf]  ;;  %665 = vst [vmem:[%s6692_s15 + $0x338] sm:$0xf] %v664_v14 }
  0x9c   : > { %667 = vst [vmem:[%s6692_s15 + $0x33c] sm:$0xf] %v666_v15  ;;  %669 = vst [vmem:[%s6692_s15 + $0x340] sm:$0xf] %v668_v16  ;;  %v670_v17 = vld [vmem:[%s6685_s14 + $0x9cc] sm:$0xf] }
  0x9d   : > { %v672_v18 = vld [vmem:[%s6685_s14 + $0x9d8] sm:$0xf]  ;;  %v674_v19 = vld [vmem:[%s6685_s14 + $0x9e4] sm:$0xf]  ;;  %671 = vst [vmem:[%s6692_s15 + $0x344] sm:$0xf] %v670_v17 }
  0x9e   : > { %673 = vst [vmem:[%s6692_s15 + $0x348] sm:$0xf] %v672_v18  ;;  %675 = vst [vmem:[%s6692_s15 + $0x34c] sm:$0xf] %v674_v19  ;;  %v676_v20 = vld [vmem:[%s6685_s14 + $0x9f0] sm:$0xf] }
  0x9f   : > { %v678_v21 = vld [vmem:[%s6685_s14 + $0x9fc] sm:$0xf]  ;;  %v680_v22 = vld [vmem:[%s6685_s14 + $0xa08] sm:$0xf]  ;;  %677 = vst [vmem:[%s6692_s15 + $0x350] sm:$0xf] %v676_v20 }
  0xa0   : > { %679 = vst [vmem:[%s6692_s15 + $0x354] sm:$0xf] %v678_v21  ;;  %681 = vst [vmem:[%s6692_s15 + $0x358] sm:$0xf] %v680_v22  ;;  %v682_v23 = vld [vmem:[%s6685_s14 + $0xa14] sm:$0xf] }
  0xa1   : > { %v684_v24 = vld [vmem:[%s6685_s14 + $0xa20] sm:$0xf]  ;;  %v686_v25 = vld [vmem:[%s6685_s14 + $0xa2c] sm:$0xf]  ;;  %683 = vst [vmem:[%s6692_s15 + $0x35c] sm:$0xf] %v682_v23 }
  0xa2   : > { %685 = vst [vmem:[%s6692_s15 + $0x360] sm:$0xf] %v684_v24  ;;  %687 = vst [vmem:[%s6692_s15 + $0x364] sm:$0xf] %v686_v25  ;;  %v688_v26 = vld [vmem:[%s6685_s14 + $0xa38] sm:$0xf] }
  0xa3   : > { %v690_v27 = vld [vmem:[%s6685_s14 + $0xa44] sm:$0xf]  ;;  %v692_v28 = vld [vmem:[%s6685_s14 + $0xa50] sm:$0xf]  ;;  %689 = vst [vmem:[%s6692_s15 + $0x368] sm:$0xf] %v688_v26 }
  0xa4   : > { %691 = vst [vmem:[%s6692_s15 + $0x36c] sm:$0xf] %v690_v27  ;;  %693 = vst [vmem:[%s6692_s15 + $0x370] sm:$0xf] %v692_v28  ;;  %v694_v29 = vld [vmem:[%s6685_s14 + $0xa5c] sm:$0xf] }
  0xa5   : > { %v696_v30 = vld [vmem:[%s6685_s14 + $0xa68] sm:$0xf]  ;;  %v698_v31 = vld [vmem:[%s6685_s14 + $0xa74] sm:$0xf]  ;;  %695 = vst [vmem:[%s6692_s15 + $0x374] sm:$0xf] %v694_v29 }
  0xa6   : > { %697 = vst [vmem:[%s6692_s15 + $0x378] sm:$0xf] %v696_v30  ;;  %699 = vst [vmem:[%s6692_s15 + $0x37c] sm:$0xf] %v698_v31 }
  0xa7 PF: > { %p4890_p5 = scmp.ge.s32.totalorder %s6586_s26, 1  ;;  %p1184_p6 = scmp.lt.s32.totalorder %s6586_s26, 4 }
  0xa9   : > { %p1185_p7 = pnand %p4890_p5, %p1184_p6 }
  0xaa   : > { %s1191_s16 = sand.u32 (!%p1185_p7), 1, %s6578_s24   ;;  %v6085_v32 = vld [vmem:[%s8123_s0 + $0x4] ss:$56 sps:$4 sm:$0xff] (!%p1185_p7)   ;;  %v6083_v63 = vld [vmem:[%s8123_s0] ss:$56 sps:$4 sm:$0xff] (!%p1185_p7)   ;;  %p1225_p8 = scmp.lt.s32.totalorder (!%p1185_p7), %s6665_s27, 2 }
  0xab   : > { %1188 = sbr.rel (%p1185_p7) target bundleno = 3922 (0xf52), region = 85  ;;  %v6090_v33 = vld [vmem:[%s8123_s0 + $0xc] ss:$56 sps:$4 sm:$0xff] (!%p1185_p7)   ;;  %2842 = vmatprep.mubr.bf16.mxu0 (!%p1185_p7), %v6085_v32  ;;  %v6088_v3 = vld [vmem:[%s8123_s0 + $0x8] ss:$56 sps:$4 sm:$0xff] (!%p1185_p7)   ;;  %p5134_p10 = scmp.ne.s32.totalorder (!%p1185_p7), %s6665_s27, 0 }
  0xac   : > { %s6000_s17 = smul.u32 (!%p1185_p7), 896, %s1191_s16  ;;  %2939 = vmatprep.mubr.bf16.mxu1 (!%p1185_p7), %v6090_v33  ;;  %v6092_v1 = vld [vmem:[%s8123_s0 + $0x74] ss:$56 sps:$4 sm:$0xff] (!%p1185_p7)   ;;  %v6094_v10 = vld [vmem:[%s8123_s0 + $0x70] ss:$56 sps:$4 sm:$0xff] (!%p1185_p7)  }
  0xad   : > { %v6096_v8 = vld [vmem:[%s8123_s0 + $0x7c] ss:$56 sps:$4 sm:$0xff] (!%p1185_p7)   ;;  %v6099_v13 = vld [vmem:[%s8123_s0 + $0x78] ss:$56 sps:$4 sm:$0xff] (!%p1185_p7)   ;;  %v6104_v14 = vld [vmem:[%s8123_s0 + $0xec] ss:$56 sps:$4 sm:$0xff] (!%p1185_p7)  }
  0xae   : > { %s7146_s22 = scalar_lea.vmem (!%p1185_p7), [#allocation3], %s6000_s17  ;;  %v6100_v11 = vld [vmem:[%s8123_s0 + $0xe4] ss:$56 sps:$4 sm:$0xff] (!%p1185_p7)   ;;  %v6102_v17 = vld [vmem:[%s8123_s0 + $0xe0] ss:$56 sps:$4 sm:$0xff] (!%p1185_p7)  }
  0xaf   : > { %v6052_v34 = vld [vmem:[%s7146_s22 + $0x40] sm:$0xff] (!%p1185_p7)   ;;  %v6056_v38 = vld [vmem:[%s7146_s22 + $0x48] sm:$0xff] (!%p1185_p7)   ;;  %v6060_v42 = vld [vmem:[%s7146_s22 + $0x50] sm:$0xff] (!%p1185_p7)  }
  0xb0   : > { %v6053_v35 = vld [vmem:[%s7146_s22] sm:$0xff] (!%p1185_p7)   ;;  %5166 = vmatprep.subr.bf16.mxu0 (!%p1185_p7), %v6052_v34  ;;  %v6057_v39 = vld [vmem:[%s7146_s22 + $0x8] sm:$0xff] (!%p1185_p7)   ;;  %v6061_v43 = vld [vmem:[%s7146_s22 + $0x10] sm:$0xff] (!%p1185_p7)  }
  0xb1   : > { %v6054_v36 = vld [vmem:[%s7146_s22 + $0xc0] sm:$0xff] (!%p1185_p7)   ;;  %5167 = vmatpush3.bf16.msra.mxu0 (!%p1185_p7), %v6053_v35  ;;  %v6058_v40 = vld [vmem:[%s7146_s22 + $0xc8] sm:$0xff] (!%p1185_p7)   ;;  %v6062_v44 = vld [vmem:[%s7146_s22 + $0xd0] sm:$0xff] (!%p1185_p7)  }
  0xb2   : > { %v6055_v37 = vld [vmem:[%s7146_s22 + $0x80] sm:$0xff]   ;;  %5230 = vmatprep.subr.bf16.mxu1 %v6054_v36  ;;  %5168 = vmatprep.subr.bf16.mxu0 %v6056_v38  ;;  %v6059_v41 = vld [vmem:[%s7146_s22 + $0x88] sm:$0xff]   ;;  %v6063_v45 = vld [vmem:[%s7146_s22 + $0x90] sm:$0xff]   ;;  %s1226_s23 = scalar_select %p1225_p8, %s6665_s27, 2 }
  0xb3   : > { %5231 = vmatpush3.bf16.msra.mxu1 %v6055_v37  ;;  %v6064_v46 = vld [vmem:[%s7146_s22 + $0x58] sm:$0xff]   ;;  %v6068_v50 = vld [vmem:[%s7146_s22 + $0x60] sm:$0xff]   ;;  %v6072_v54 = vld [vmem:[%s7146_s22 + $0x68] sm:$0xff]  }
  0xb4   : > { %5232 = vmatprep.subr.bf16.mxu1 %v6058_v40  ;;  %v6065_v47 = vld [vmem:[%s7146_s22 + $0x18] sm:$0xff]   ;;  %v6069_v51 = vld [vmem:[%s7146_s22 + $0x20] sm:$0xff]   ;;  %v6073_v55 = vld [vmem:[%s7146_s22 + $0x28] sm:$0xff]   ;;  %s1227_s9 = scalar_lea.vmem %s8125_s2, %s1226_s23 }
  0xb5   : > { %5169 = vmatpush3.bf16.msra.mxu0 %v6057_v39  ;;  %v6066_v48 = vld [vmem:[%s7146_s22 + $0xd8] sm:$0xff]   ;;  %v6070_v52 = vld [vmem:[%s7146_s22 + $0xe0] sm:$0xff]   ;;  %v6074_v56 = vld [vmem:[%s7146_s22 + $0xe8] sm:$0xff]  }
  0xb6   : > { %5170 = vmatprep.subr.bf16.mxu0 %v6060_v42  ;;  %v6067_v49 = vld [vmem:[%s7146_s22 + $0x98] sm:$0xff]   ;;  %v6071_v53 = vld [vmem:[%s7146_s22 + $0xa0] sm:$0xff]   ;;  %v6075_v57 = vld [vmem:[%s7146_s22 + $0xa8] sm:$0xff]  }
  0xb7   : > { %5233 = vmatpush3.bf16.msra.mxu1 %v6059_v41  ;;  %v6076_v58 = vld [vmem:[%s7146_s22 + $0x70] sm:$0xff]   ;;  %v6080_v62 = vld [vmem:[%s7146_s22 + $0x78] sm:$0xff]   ;;  %v6087_v5 = vld [vmem:[%s7146_s22 + $0x140] sm:$0xff]  }
  0xb8   : > { %5234 = vmatprep.subr.bf16.mxu1 %v6062_v44  ;;  %v6077_v59 = vld [vmem:[%s7146_s22 + $0x30] sm:$0xff]   ;;  %v6081_v0 = vld [vmem:[%s7146_s22 + $0x38] sm:$0xff]   ;;  %v6091_v6 = vld [vmem:[%s7146_s22 + $0x100] sm:$0xff]  }
  0xb9   : > { %5171 = vmatpush3.bf16.msra.mxu0 %v6061_v43  ;;  %v6078_v60 = vld [vmem:[%s7146_s22 + $0xf0] sm:$0xff]   ;;  %v6082_v2 = vld [vmem:[%s7146_s22 + $0xf8] sm:$0xff]   ;;  %v6095_v7 = vld [vmem:[%s7146_s22 + $0x148] sm:$0xff]  }
  0xba   : > { %5172 = vmatprep.subr.bf16.mxu0 %v6064_v46  ;;  %v6079_v61 = vld [vmem:[%s7146_s22 + $0xb0] sm:$0xff]   ;;  %v6086_v4 = vld [vmem:[%s7146_s22 + $0xb8] sm:$0xff]   ;;  %v6098_v9 = vld [vmem:[%s7146_s22 + $0x108] sm:$0xff]  }
  0xbb   : > { %5235 = vmatpush3.bf16.msra.mxu1 %v6063_v45  ;;  %v6103_v12 = vld [vmem:[%s7146_s22 + $0x150] sm:$0xff]   ;;  %v6111_v16 = vld [vmem:[%s7146_s22 + $0x158] sm:$0xff]   ;;  %v6107_v19 = vld [vmem:[%s8123_s0 + $0xe8] ss:$56 sps:$4 sm:$0xff]  }
  0xbc   : > { %5236 = vmatprep.subr.bf16.mxu1 %v6066_v48  ;;  %v6106_v15 = vld [vmem:[%s7146_s22 + $0x110] sm:$0xff]   ;;  %v6114_v18 = vld [vmem:[%s7146_s22 + $0x118] sm:$0xff]   ;;  %v6119_v21 = vld [vmem:[%s7146_s22 + $0x160] sm:$0xff]  }
  0xbd   : > { %5173 = vmatpush3.bf16.msra.mxu0 %v6065_v47  ;;  %v6108_v20 = vld [vmem:[%s8123_s0 + $0x154] ss:$56 sps:$4 sm:$0xff]   ;;  %v6122_v23 = vld [vmem:[%s7146_s22 + $0x120] sm:$0xff]   ;;  %v6110_v24 = vld [vmem:[%s8123_s0 + $0x150] ss:$56 sps:$4 sm:$0xff]  }
  0xbe   : > { %5174 = vmatprep.subr.bf16.mxu0 %v6068_v50  ;;  %v6112_v22 = vld [vmem:[%s8123_s0 + $0x15c] ss:$56 sps:$4 sm:$0xff]   ;;  %v6124_v25 = vld [vmem:[%s7146_s22 + $0x1c0] sm:$0xff]   ;;  %v6115_v27 = vld [vmem:[%s8123_s0 + $0x158] ss:$56 sps:$4 sm:$0xff]  }
  0xbf   : > { %5237 = vmatpush3.bf16.msra.mxu1 %v6067_v49  ;;  %v6125_v26 = vld [vmem:[%s7146_s22 + $0x180] sm:$0xff]   ;;  %v6126_v28 = vld [vmem:[%s7146_s22 + $0x1c8] sm:$0xff]   ;;  %v6136_v35 = vld [vmem:[%s7146_s22 + $0x1d0] sm:$0xff]  }
  0xc0   : > { %5238 = vmatprep.subr.bf16.mxu1 %v6070_v52  ;;  %v6116_v29 = vld [vmem:[%s8123_s0 + $0x1c4] ss:$56 sps:$4 sm:$0xff]   ;;  %v6129_v31 = vld [vmem:[%s7146_s22 + $0x188] sm:$0xff]   ;;  %v6118_v34 = vld [vmem:[%s8123_s0 + $0x1c0] ss:$56 sps:$4 sm:$0xff]  }
  0xc1   : > { %5175 = vmatpush3.bf16.msra.mxu0 %v6069_v51  ;;  %v6120_v30 = vld [vmem:[%s8123_s0 + $0x1cc] ss:$56 sps:$4 sm:$0xff]   ;;  %v6137_v36 = vld [vmem:[%s7146_s22 + $0x190] sm:$0xff]   ;;  %v6123_v37 = vld [vmem:[%s8123_s0 + $0x1c8] ss:$56 sps:$4 sm:$0xff]  }
  0xc2   : > { %5176 = vmatprep.subr.bf16.mxu0 %v6072_v54  ;;  %v6131_v32 = vld [vmem:[%s7146_s22 + $0x168] sm:$0xff]   ;;  %v6138_v38 = vld [vmem:[%s7146_s22 + $0x1d8] sm:$0xff]   ;;  %v6143_v42 = vld [vmem:[%s7146_s22 + $0x170] sm:$0xff]  }
  0xc3   : > { %5239 = vmatpush3.bf16.msra.mxu1 %v6071_v53  ;;  %v6134_v33 = vld [vmem:[%s7146_s22 + $0x128] sm:$0xff]   ;;  %v6141_v40 = vld [vmem:[%s7146_s22 + $0x198] sm:$0xff]   ;;  %v6146_v44 = vld [vmem:[%s7146_s22 + $0x130] sm:$0xff]  }
  0xc4   : > { %5240 = vmatprep.subr.bf16.mxu1 %v6074_v56  ;;  %v6127_v39 = vld [vmem:[%s8123_s0 + $0x234] ss:$56 sps:$4 sm:$0xff]   ;;  %v6130_v43 = vld [vmem:[%s8123_s0 + $0x230] ss:$56 sps:$4 sm:$0xff]   ;;  %v6139_v45 = vld [vmem:[%s8123_s0 + $0x2a4] ss:$56 sps:$4 sm:$0xff]  }
  0xc5   : > { %5177 = vmatpush3.bf16.msra.mxu0 %v6073_v55  ;;  %v6132_v41 = vld [vmem:[%s8123_s0 + $0x23c] ss:$56 sps:$4 sm:$0xff]   ;;  %v6148_v46 = vld [vmem:[%s7146_s22 + $0x1e0] sm:$0xff]   ;;  %v6150_v48 = vld [vmem:[%s7146_s22 + $0x1e8] sm:$0xff]  }
  0xc6   : > { %5178 = vmatprep.subr.bf16.mxu0 %v6076_v58  ;;  %v6149_v47 = vld [vmem:[%s7146_s22 + $0x1a0] sm:$0xff]   ;;  %v6135_v49 = vld [vmem:[%s8123_s0 + $0x238] ss:$56 sps:$4 sm:$0xff]   ;;  %v6153_v51 = vld [vmem:[%s7146_s22 + $0x1a8] sm:$0xff]  }
  0xc7   : > { %5241 = vmatpush3.bf16.msra.mxu1 %v6075_v57  ;;  %v6144_v50 = vld [vmem:[%s8123_s0 + $0x2ac] ss:$56 sps:$4 sm:$0xff]   ;;  %v6155_v52 = vld [vmem:[%s7146_s22 + $0x178] sm:$0xff]   ;;  %v6147_v56 = vld [vmem:[%s8123_s0 + $0x2a8] ss:$56 sps:$4 sm:$0xff]  }
  0xc8   : > { %5242 = vmatprep.subr.bf16.mxu1 %v6078_v60  ;;  %v6142_v53 = vld [vmem:[%s8123_s0 + $0x2a0] ss:$56 sps:$4 sm:$0xff]   ;;  %v6151_v55 = vld [vmem:[%s8123_s0 + $0x314] ss:$56 sps:$4 sm:$0xff]  }
  0xc9   : > { %5179 = vmatpush3.bf16.msra.mxu0 %v6077_v59  ;;  %v6158_v54 = vld [vmem:[%s7146_s22 + $0x138] sm:$0xff]   ;;  %v6160_v57 = vld [vmem:[%s7146_s22 + $0x1f0] sm:$0xff]  }
  0xca   : > { %5180 = vmatprep.subr.bf16.mxu0 %v6080_v62  ;;  %v6161_v58 = vld [vmem:[%s7146_s22 + $0x1b0] sm:$0xff]   ;;  %v6162_v59 = vld [vmem:[%s7146_s22 + $0x1f8] sm:$0xff]   ;;  %v6167_v62 = vld [vmem:[%s7146_s22 + $0x240] sm:$0xff]  }
  0xcb   : > { %5243 = vmatpush3.bf16.msra.mxu1 %v6079_v61  ;;  %v6156_v60 = vld [vmem:[%s8123_s0 + $0x31c] ss:$56 sps:$4 sm:$0xff]  }
  0xcc   : > { %5244 = vmatprep.subr.bf16.mxu1 %v6082_v2  ;;  %v6166_v61 = vld [vmem:[%s7146_s22 + $0x1b8] sm:$0xff]  }
  0xcd   : > { %5181 = vmatpush3.bf16.msra.mxu0 %v6081_v0  ;;  %v6165_v0 = vld [vmem:[%s8123_s0 + $0x14] ss:$56 sps:$4 sm:$0xff]  }
  0xce   : > { %5294 = vmatprep.subr.bf16.mxu0 %v6087_v5  ;;  %v6170_v2 = vld [vmem:[%s8123_s0 + $0x1c] ss:$56 sps:$4 sm:$0xff]  }
  0xcf   : > { %5245 = vmatpush3.bf16.msra.mxu1 %v6086_v4  ;;  %v6171_v4 = vld [vmem:[%s7146_s22 + $0x200] sm:$0xff]  }
  0xd0   : > { %2843 = vmatmul.mubr.bf16.vlgmr.msra.gmra.mrb[0].mxu0 %v6083_v63  ;;  %5358 = vmatprep.subr.bf16.mxu1 %v6124_v25  ;;  %v6154_v63 = vld [vmem:[%s8123_s0 + $0x310] ss:$56 sps:$4 sm:$0xff]   ;;  %v6172_v5 = vld [vmem:[%s8123_s0 + $0x84] ss:$56 sps:$4 sm:$0xff]  }
  0xd1   : > { %5295 = vmatpush3.bf16.msra.mxu0 %v6091_v6  ;;  %2850 = vmatprep.mubr.bf16.mxu0 %v6092_v1  ;;  %v6159_v1 = vld [vmem:[%s8123_s0 + $0x318] ss:$56 sps:$4 sm:$0xff]   ;;  %v6209_v25 = vld [vmem:[%s7146_s22 + $0x288] sm:$0xff]  }
  0xd2   : > { %2940 = vmatmul.mubr.bf16.vlgmr.msra.gmra.mrb[0].mxu1 %v6088_v3  ;;  %5296 = vmatprep.subr.bf16.mxu0 %v6095_v7  ;;  %v6163_v3 = vld [vmem:[%s8123_s0 + $0x10] ss:$56 sps:$4 sm:$0xff]  }
  0xd3   : > { %2947 = vmatprep.mubr.bf16.mxu1 %v6096_v8  ;;  %5359 = vmatpush3.bf16.msra.mxu1 %v6125_v26  ;;  %v6168_v6 = vld [vmem:[%s8123_s0 + $0x18] ss:$56 sps:$4 sm:$0xff]   ;;  %v6175_v7 = vld [vmem:[%s7146_s22 + $0x248] sm:$0xff]  }
  0xd4   : > { %5360 = vmatprep.subr.bf16.mxu1 %v6126_v28  ;;  %v6176_v8 = vld [vmem:[%s8123_s0 + $0x8c] ss:$56 sps:$4 sm:$0xff]  }
  0xd5   : > { %5297 = vmatpush3.bf16.msra.mxu0 %v6098_v9  ;;  %v6178_v9 = vld [vmem:[%s7146_s22 + $0x208] sm:$0xff]  }
  0xd6   : > { %5298 = vmatprep.subr.bf16.mxu0 %v6103_v12  ;;  %v6179_v12 = vld [vmem:[%s8123_s0 + $0x88] ss:$56 sps:$4 sm:$0xff]   ;;  %v6192_v26 = vld [vmem:[%s8123_s0 + $0x16c] ss:$56 sps:$4 sm:$0xff]  }
  0xd7   : > { %5361 = vmatpush3.bf16.msra.mxu1 %v6129_v31  ;;  %v6211_v28 = vld [vmem:[%s7146_s22 + $0x268] sm:$0xff]   ;;  %v6217_v31 = vld [vmem:[%s7146_s22 + $0x290] sm:$0xff]  }
  0xd8   : > { %2851 = vmatmul.mubr.bf16.gmra.mrb[4].mxu0 %v6094_v10  ;;  %5362 = vmatprep.subr.bf16.mxu1 %v6136_v35  ;;  %v6183_v10 = vld [vmem:[%s7146_s22 + $0x250] sm:$0xff]   ;;  %v6221_v35 = vld [vmem:[%s7146_s22 + $0x298] sm:$0xff]  }
  0xd9   : > { %2858 = vmatprep.mubr.bf16.mxu0 %v6100_v11  ;;  %5299 = vmatpush3.bf16.msra.mxu0 %v6106_v15  ;;  %v6174_v11 = vld [vmem:[%s8123_s0 + $0x80] ss:$56 sps:$4 sm:$0xff]   ;;  %v6184_v15 = vld [vmem:[%s8123_s0 + $0xfc] ss:$56 sps:$4 sm:$0xff]  }
  0xda   : > { %2948 = vmatmul.mubr.bf16.gmra.mrb[4].mxu1 %v6099_v13  ;;  %5300 = vmatprep.subr.bf16.mxu0 %v6111_v16  ;;  %v6180_v13 = vld [vmem:[%s8123_s0 + $0xf4] ss:$56 sps:$4 sm:$0xff]   ;;  %v6191_v16 = vld [vmem:[%s7146_s22 + $0x258] sm:$0xff]  }
  0xdb   : > { %2955 = vmatprep.mubr.bf16.mxu1 %v6104_v14  ;;  %5363 = vmatpush3.bf16.msra.mxu1 %v6137_v36  ;;  %v6186_v14 = vld [vmem:[%s7146_s22 + $0x210] sm:$0xff]  }
  0xdc   : > { %5364 = vmatprep.subr.bf16.mxu1 %v6138_v38  ;;  %v6223_v36 = vld [vmem:[%s7146_s22 + $0x270] sm:$0xff]  }
  0xdd   : > { %5301 = vmatpush3.bf16.msra.mxu0 %v6114_v18  ;;  %v6204_v18 = vld [vmem:[%s7146_s22 + $0x2c0] sm:$0xff]   ;;  %v6200_v38 = vld [vmem:[%s8123_s0 + $0x1dc] ss:$56 sps:$4 sm:$0xff]  }
  0xde   : > { %5302 = vmatprep.subr.bf16.mxu0 %v6119_v21  ;;  %v6199_v21 = vld [vmem:[%s7146_s22 + $0x260] sm:$0xff]  }
  0xdf   : > { %5365 = vmatpush3.bf16.msra.mxu1 %v6141_v40  ;;  %v6228_v40 = vld [vmem:[%s7146_s22 + $0x2e0] sm:$0xff]  }
  0xe0   : > { %2859 = vmatmul.mubr.bf16.gmra.mrb[8].mxu0 %v6102_v17  ;;  %5366 = vmatprep.subr.bf16.mxu1 %v6148_v46  ;;  %v6194_v17 = vld [vmem:[%s7146_s22 + $0x218] sm:$0xff]  }
  0xe1   : > { %2866 = vmatprep.mubr.bf16.mxu0 %v6108_v20  ;;  %5303 = vmatpush3.bf16.msra.mxu0 %v6122_v23  ;;  %v6206_v20 = vld [vmem:[%s7146_s22 + $0x2c8] sm:$0xff]   ;;  %v6188_v23 = vld [vmem:[%s8123_s0 + $0x164] ss:$56 sps:$4 sm:$0xff]  }
  0xe2   : > { %2956 = vmatmul.mubr.bf16.gmra.mrb[8].mxu1 %v6107_v19  ;;  %5304 = vmatprep.subr.bf16.mxu0 %v6131_v32  ;;  %v6205_v19 = vld [vmem:[%s7146_s22 + $0x280] sm:$0xff]   ;;  %v6218_v32 = vld [vmem:[%s7146_s22 + $0x2d8] sm:$0xff]  }
  0xe3   : > { %2963 = vmatprep.mubr.bf16.mxu1 %v6112_v22  ;;  %5367 = vmatpush3.bf16.msra.mxu1 %v6149_v47  ;;  %v6182_v22 = vld [vmem:[%s8123_s0 + $0xf0] ss:$56 sps:$4 sm:$0xff]   ;;  %v6207_v46 = vld [vmem:[%s8123_s0 + $0x244] ss:$56 sps:$4 sm:$0xff]  }
  0xe4   : > { %5368 = vmatprep.subr.bf16.mxu1 %v6150_v48  ;;  %v6235_v47 = vld [vmem:[%s7146_s22 + $0x278] sm:$0xff]   ;;  %v6212_v48 = vld [vmem:[%s8123_s0 + $0x24c] ss:$56 sps:$4 sm:$0xff]  }
  0xe5   : > { %5305 = vmatpush3.bf16.msra.mxu0 %v6134_v33  ;;  %v6190_v33 = vld [vmem:[%s8123_s0 + $0x160] ss:$56 sps:$4 sm:$0xff]  }
  0xe6   : > { %5306 = vmatprep.subr.bf16.mxu0 %v6143_v42  ;;  %v6230_v42 = vld [vmem:[%s7146_s22 + $0x2e8] sm:$0xff]  }
  0xe7   : > { %5369 = vmatpush3.bf16.msra.mxu1 %v6153_v51  ;;  %v6210_v51 = vld [vmem:[%s8123_s0 + $0x240] ss:$56 sps:$4 sm:$0xff]  }
  0xe8   : > { %2867 = vmatmul.mubr.bf16.gmra.mrb[12].mxu0 %v6110_v24  ;;  %5370 = vmatprep.subr.bf16.mxu1 %v6160_v57  ;;  %v6187_v24 = vld [vmem:[%s8123_s0 + $0xf8] ss:$56 sps:$4 sm:$0xff]   ;;  %v6247_v57 = vld [vmem:[%s7146_s22 + $0x340] sm:$0xff]  }
  0xe9   : > { %2874 = vmatprep.mubr.bf16.mxu0 %v6116_v29  ;;  %5307 = vmatpush3.bf16.msra.mxu0 %v6146_v44  ;;  %v6214_v29 = vld [vmem:[%s7146_s22 + $0x228] sm:$0xff]   ;;  %v6203_v44 = vld [vmem:[%s8123_s0 + $0x1d8] ss:$56 sps:$4 sm:$0xff]  }
  0xea   : > { %2964 = vmatmul.mubr.bf16.gmra.mrb[12].mxu1 %v6115_v27  ;;  %5308 = vmatprep.subr.bf16.mxu0 %v6155_v52  ;;  %v6202_v27 = vld [vmem:[%s7146_s22 + $0x220] sm:$0xff]   ;;  %v6241_v52 = vld [vmem:[%s7146_s22 + $0x2b0] sm:$0xff]  }
  0xeb   : > { %2971 = vmatprep.mubr.bf16.mxu1 %v6120_v30  ;;  %5371 = vmatpush3.bf16.msra.mxu1 %v6161_v58  ;;  %v6216_v30 = vld [vmem:[%s7146_s22 + $0x2d0] sm:$0xff]  }
  0xec   : > { %5372 = vmatprep.subr.bf16.mxu1 %v6162_v59  ;;  %v6224_v58 = vld [vmem:[%s8123_s0 + $0x2bc] ss:$56 sps:$4 sm:$0xff]   ;;  %v6222_v59 = vld [vmem:[%s8123_s0 + $0x2b0] ss:$56 sps:$4 sm:$0xff]  }
  0xed   : > { %5309 = vmatpush3.bf16.msra.mxu0 %v6158_v54  ;;  %v6215_v54 = vld [vmem:[%s8123_s0 + $0x248] ss:$56 sps:$4 sm:$0xff]  }
  0xee   : > { %5422 = vmatprep.subr.bf16.mxu0 %v6167_v62  ;;  %v6236_v62 = vld [vmem:[%s8123_s0 + $0x32c] ss:$56 sps:$4 sm:$0xff]  }
  0xef   : > { %5373 = vmatpush3.bf16.msra.mxu1 %v6166_v61  ;;  %v6227_v61 = vld [vmem:[%s8123_s0 + $0x2b8] ss:$56 sps:$4 sm:$0xff]  }
  0xf0   : > { %2875 = vmatmul.mubr.bf16.gmra.mrb[16].mxu0 %v6118_v34  ;;  %5486 = vmatprep.subr.bf16.mxu1 %v6204_v18  ;;  %v6196_v34 = vld [vmem:[%s8123_s0 + $0x1d4] ss:$56 sps:$4 sm:$0xff]   ;;  %v6279_v18 = vld [vmem:[%s7146_s22 + $0x360] sm:$0xff]  }
  0xf1   : > { %2882 = vmatprep.mubr.bf16.mxu0 %v6127_v39  ;;  %v6226_v39 = vld [vmem:[%s7146_s22 + $0x230] sm:$0xff]  }
  0xf2   : > { %2972 = vmatmul.mubr.bf16.gmra.mrb[16].mxu1 %v6123_v37  ;;  %v6195_v37 = vld [vmem:[%s8123_s0 + $0x168] ss:$56 sps:$4 sm:$0xff]  }
  0xf3   : > { %2979 = vmatprep.mubr.bf16.mxu1 %v6132_v41  ;;  %v6229_v41 = vld [vmem:[%s7146_s22 + $0x2a0] sm:$0xff]  }
  0xf8   : > { %2883 = vmatmul.mubr.bf16.gmra.mrb[20].mxu0 %v6130_v43  ;;  %v6198_v43 = vld [vmem:[%s8123_s0 + $0x1d0] ss:$56 sps:$4 sm:$0xff]  }
  0xf9   : > { %2890 = vmatprep.mubr.bf16.mxu0 %v6139_v45  ;;  %v6233_v45 = vld [vmem:[%s7146_s22 + $0x2a8] sm:$0xff]  }
  0xfa   : > { %2980 = vmatmul.mubr.bf16.gmra.mrb[20].mxu1 %v6135_v49  ;;  %v6238_v49 = vld [vmem:[%s7146_s22 + $0x238] sm:$0xff]  }
  0xfb   : > { %2987 = vmatprep.mubr.bf16.mxu1 %v6144_v50  ;;  %v6240_v50 = vld [vmem:[%s7146_s22 + $0x2f0] sm:$0xff]  }
 0x100   : > { %2891 = vmatmul.mubr.bf16.gmra.mrb[24].mxu0 %v6142_v53  ;;  %v6242_v53 = vld [vmem:[%s7146_s22 + $0x2f8] sm:$0xff]  }
 0x101   : > { %2898 = vmatprep.mubr.bf16.mxu0 %v6151_v55  ;;  %v6219_v55 = vld [vmem:[%s8123_s0 + $0x2b4] ss:$56 sps:$4 sm:$0xff]  }
 0x102   : > { %2988 = vmatmul.mubr.bf16.gmra.mrb[24].mxu1 %v6147_v56  ;;  %v6246_v56 = vld [vmem:[%s7146_s22 + $0x2b8] sm:$0xff]  }
 0x103   : > { %2995 = vmatprep.mubr.bf16.mxu1 %v6156_v60  ;;  %v6231_v60 = vld [vmem:[%s8123_s0 + $0x324] ss:$56 sps:$4 sm:$0xff]  }
 0x108   : > { %2899 = vmatmul.mubr.bf16.gmra.mrb[28].mxu0 %v6154_v63  ;;  %v6234_v63 = vld [vmem:[%s8123_s0 + $0x320] ss:$56 sps:$4 sm:$0xff]  }
 0x109   : > { %3036 = vmatprep.mubr.bf16.mxu0 %v6165_v0  ;;  %v6245_v0 = vld [vmem:[%s8123_s0 + $0x24] ss:$56 sps:$4 sm:$0xff]  }
 0x10a   : > { %2996 = vmatmul.mubr.bf16.gmra.mrb[28].mxu1 %v6159_v1  ;;  %v6239_v1 = vld [vmem:[%s8123_s0 + $0x328] ss:$56 sps:$4 sm:$0xff]  }
 0x10b   : > { %3133 = vmatprep.mubr.bf16.mxu1 %v6170_v2  ;;  %v6250_v2 = vld [vmem:[%s8123_s0 + $0x2c] ss:$56 sps:$4 sm:$0xff]  }
 0x110   : > { %3037 = vmatmul.mubr.bf16.vlgmr.msra.gmra.mrb[32].mxu0 %v6163_v3  ;;  %v6243_v3 = vld [vmem:[%s8123_s0 + $0x20] ss:$56 sps:$4 sm:$0xff]  }
 0x111   : > { %5423 = vmatpush3.bf16.msra.mxu0 %v6171_v4  ;;  %3044 = vmatprep.mubr.bf16.mxu0 %v6172_v5  ;;  %v6248_v4 = vld [vmem:[%s8123_s0 + $0x28] ss:$56 sps:$4 sm:$0xff]  }
 0x112   : > { %3134 = vmatmul.mubr.bf16.vlgmr.msra.gmra.mrb[32].mxu1 %v6168_v6  ;;  %5424 = vmatprep.subr.bf16.mxu0 %v6175_v7  ;;  %v6251_v5 = vld [vmem:[%s7146_s22 + $0x300] sm:$0xff]   ;;  %v6252_v6 = vld [vmem:[%s8123_s0 + $0x94] ss:$56 sps:$4 sm:$0xff]  }
 0x113   : > { %3141 = vmatprep.mubr.bf16.mxu1 %v6176_v8  ;;  %5487 = vmatpush3.bf16.msra.mxu1 %v6205_v19  ;;  %v6255_v7 = vld [vmem:[%s7146_s22 + $0x348] sm:$0xff]   ;;  %v6256_v8 = vld [vmem:[%s8123_s0 + $0x9c] ss:$56 sps:$4 sm:$0xff]   ;;  %v6262_v19 = vld [vmem:[%s8123_s0 + $0x100] ss:$56 sps:$4 sm:$0xff]  }
 0x114   : > { %5488 = vmatprep.subr.bf16.mxu1 %v6206_v20  ;;  %v6267_v20 = vld [vmem:[%s8123_s0 + $0x108] ss:$56 sps:$4 sm:$0xff]  }
 0x115   : > { %5425 = vmatpush3.bf16.msra.mxu0 %v6178_v9  ;;  %v6258_v9 = vld [vmem:[%s7146_s22 + $0x308] sm:$0xff]  }
 0x116   : > { %5426 = vmatprep.subr.bf16.mxu0 %v6183_v10  ;;  %v6263_v10 = vld [vmem:[%s7146_s22 + $0x350] sm:$0xff]  }
 0x117   : > { %5489 = vmatpush3.bf16.msra.mxu1 %v6209_v25  ;;  %v6290_v25 = vld [vmem:[%s7146_s22 + $0x328] sm:$0xff]  }
 0x118   : > { %3045 = vmatmul.mubr.bf16.gmra.mrb[36].mxu0 %v6174_v11  ;;  %5490 = vmatprep.subr.bf16.mxu1 %v6216_v30  ;;  %v6254_v11 = vld [vmem:[%s8123_s0 + $0x90] ss:$56 sps:$4 sm:$0xff]  }
 0x119   : > { %3052 = vmatprep.mubr.bf16.mxu0 %v6180_v13  ;;  %5427 = vmatpush3.bf16.msra.mxu0 %v6186_v14  ;;  %v6266_v13 = vld [vmem:[%s7146_s22 + $0x310] sm:$0xff]  }
 0x11a   : > { %3142 = vmatmul.mubr.bf16.gmra.mrb[36].mxu1 %v6179_v12  ;;  %5428 = vmatprep.subr.bf16.mxu0 %v6191_v16  ;;  %v6260_v12 = vld [vmem:[%s8123_s0 + $0x104] ss:$56 sps:$4 sm:$0xff]   ;;  %v6259_v14 = vld [vmem:[%s8123_s0 + $0x98] ss:$56 sps:$4 sm:$0xff]  }
 0x11b   : > { %3149 = vmatprep.mubr.bf16.mxu1 %v6184_v15  ;;  %5491 = vmatpush3.bf16.msra.mxu1 %v6217_v31  ;;  %v6271_v15 = vld [vmem:[%s7146_s22 + $0x358] sm:$0xff]   ;;  %v6264_v16 = vld [vmem:[%s8123_s0 + $0x10c] ss:$56 sps:$4 sm:$0xff]  }
 0x11c   : > { %5492 = vmatprep.subr.bf16.mxu1 %v6218_v32  ;;  %v6275_v30 = vld [vmem:[%s8123_s0 + $0x178] ss:$56 sps:$4 sm:$0xff]   ;;  %v6280_v32 = vld [vmem:[%s8123_s0 + $0x1ec] ss:$56 sps:$4 sm:$0xff]  }
 0x11d   : > { %5429 = vmatpush3.bf16.msra.mxu0 %v6194_v17  ;;  %v6274_v17 = vld [vmem:[%s7146_s22 + $0x318] sm:$0xff]  }
 0x11e   : > { %5430 = vmatprep.subr.bf16.mxu0 %v6199_v21  ;;  %v6268_v21 = vld [vmem:[%s8123_s0 + $0x174] ss:$56 sps:$4 sm:$0xff]   ;;  %v6303_v31 = vld [vmem:[%s7146_s22 + $0x378] sm:$0xff]  }
 0x11f   : > { %5493 = vmatpush3.bf16.msra.mxu1 %v6221_v35  ;;  %v6284_v35 = vld [vmem:[%s8123_s0 + $0x254] ss:$56 sps:$4 sm:$0xff]  }
 0x120   : > { %3053 = vmatmul.mubr.bf16.gmra.mrb[40].mxu0 %v6182_v22  ;;  %5494 = vmatprep.subr.bf16.mxu1 %v6228_v40  ;;  %v6282_v22 = vld [vmem:[%s7146_s22 + $0x320] sm:$0xff]   ;;  %v6291_v40 = vld [vmem:[%s8123_s0 + $0x258] ss:$56 sps:$4 sm:$0xff]  }
 0x121   : > { %3060 = vmatprep.mubr.bf16.mxu0 %v6188_v23  ;;  %5431 = vmatpush3.bf16.msra.mxu0 %v6202_v27  ;;  %v6287_v23 = vld [vmem:[%s7146_s22 + $0x368] sm:$0xff]  }
 0x122   : > { %3150 = vmatmul.mubr.bf16.gmra.mrb[40].mxu1 %v6187_v24  ;;  %5432 = vmatprep.subr.bf16.mxu0 %v6211_v28  ;;  %v6272_v24 = vld [vmem:[%s8123_s0 + $0x17c] ss:$56 sps:$4 sm:$0xff]   ;;  %v6270_v27 = vld [vmem:[%s8123_s0 + $0x170] ss:$56 sps:$4 sm:$0xff]  }
 0x123   : > { %3157 = vmatprep.mubr.bf16.mxu1 %v6192_v26  ;;  %5495 = vmatpush3.bf16.msra.mxu1 %v6229_v41  ;;  %v6295_v26 = vld [vmem:[%s7146_s22 + $0x370] sm:$0xff]   ;;  %v6276_v28 = vld [vmem:[%s8123_s0 + $0x1e4] ss:$56 sps:$4 sm:$0xff]  }
 0x124   : > { %5496 = vmatprep.subr.bf16.mxu1 %v6230_v42  ;;  %v6296_v41 = vld [vmem:[%s8123_s0 + $0x2cc] ss:$56 sps:$4 sm:$0xff]   ;;  %v6294_v42 = vld [vmem:[%s8123_s0 + $0x2c0] ss:$56 sps:$4 sm:$0xff]  }
 0x125   : > { %5433 = vmatpush3.bf16.msra.mxu0 %v6214_v29  ;;  %v6298_v29 = vld [vmem:[%s7146_s22 + $0x330] sm:$0xff]  }
 0x126   : > { %5434 = vmatprep.subr.bf16.mxu0 %v6223_v36  ;;  %v6283_v36 = vld [vmem:[%s8123_s0 + $0x1e8] ss:$56 sps:$4 sm:$0xff]  }
 0x127   : > { %5497 = vmatpush3.bf16.msra.mxu1 %v6233_v45  ;;  %v6304_v45 = vld [vmem:[%s8123_s0 + $0x33c] ss:$56 sps:$4 sm:$0xff]  }
 0x128   : > { %3061 = vmatmul.mubr.bf16.gmra.mrb[44].mxu0 %v6190_v33  ;;  %5498 = vmatprep.subr.bf16.mxu1 %v6240_v50  ;;  %v6306_v33 = vld [vmem:[%s7146_s22 + $0x338] sm:$0xff]  }
 0x129   : > { %3068 = vmatprep.mubr.bf16.mxu0 %v6196_v34  ;;  %5435 = vmatpush3.bf16.msra.mxu0 %v6226_v39  ;;  %v6278_v34 = vld [vmem:[%s8123_s0 + $0x1e0] ss:$56 sps:$4 sm:$0xff]   ;;  %v6292_v39 = vld [vmem:[%s8123_s0 + $0x2c4] ss:$56 sps:$4 sm:$0xff]  }
 0x12a   : > { %3158 = vmatmul.mubr.bf16.gmra.mrb[44].mxu1 %v6195_v37  ;;  %5436 = vmatprep.subr.bf16.mxu0 %v6235_v47  ;;  %v6288_v37 = vld [vmem:[%s8123_s0 + $0x25c] ss:$56 sps:$4 sm:$0xff]  }
 0x12b   : > { %3165 = vmatprep.mubr.bf16.mxu1 %v6200_v38  ;;  %5499 = vmatpush3.bf16.msra.mxu1 %v6241_v52  ;;  %v6286_v38 = vld [vmem:[%s8123_s0 + $0x250] ss:$56 sps:$4 sm:$0xff]   ;;  %v6310_v47 = vld [vmem:[%s8123_s0 + $0x34] ss:$56 sps:$4 sm:$0xff]   ;;  %v6311_v50 = vld [vmem:[%s8123_s0 + $0xa4] ss:$56 sps:$4 sm:$0xff]  }
 0x12c   : > { %5500 = vmatprep.subr.bf16.mxu1 %v6242_v53  ;;  %v6314_v52 = vld [vmem:[%s8123_s0 + $0x114] ss:$56 sps:$4 sm:$0xff]   ;;  %v6316_v53 = vld [vmem:[%s8123_s0 + $0x110] ss:$56 sps:$4 sm:$0xff]  }
 0x12d   : > { %5437 = vmatpush3.bf16.msra.mxu0 %v6238_v49  ;;  %v6308_v49 = vld [vmem:[%s8123_s0 + $0x30] ss:$56 sps:$4 sm:$0xff]  }
 0x12e   : > { %5550 = vmatprep.subr.bf16.mxu0 %v6247_v57 }
 0x12f   : > { %5501 = vmatpush3.bf16.msra.mxu1 %v6246_v56  ;;  %v7568_v56 = vld [vmem:[%s1227_s9] ss:$0 sm:$0xff]  ;;  %s4891_s9 = sshll.u32 %s6665_s27, 4 }
 0x130   : > { %3069 = vmatmul.mubr.bf16.gmra.mrb[48].mxu0 %v6198_v43  ;;  %v6300_v43 = vld [vmem:[%s8123_s0 + $0x334] ss:$56 sps:$4 sm:$0xff]   ;;  %p1229_p9 = scmp.lt.s32.totalorder %s4891_s9, 47 }
 0x131   : > { %3076 = vmatprep.mubr.bf16.mxu0 %v6207_v46  ;;  %v6302_v46 = vld [vmem:[%s8123_s0 + $0x330] ss:$56 sps:$4 sm:$0xff]  }
 0x132   : > { %3166 = vmatmul.mubr.bf16.gmra.mrb[48].mxu1 %v6203_v44  ;;  %v6299_v44 = vld [vmem:[%s8123_s0 + $0x2c8] ss:$56 sps:$4 sm:$0xff]   ;;  %s8135_s9 = smov (!%p1229_p9, %s4891_s9), 47 }
 0x133   : > { %3173 = vmatprep.mubr.bf16.mxu1 %v6212_v48  ;;  %v6307_v48 = vld [vmem:[%s8123_s0 + $0x338] ss:$56 sps:$4 sm:$0xff]   ;;  %s4892_s22 = sshll.u32 %s8135_s9, 3 }
 0x134   : > { %s7638_s12 = scalar_lea.vmem %s8126_s3, %s4892_s22 }
 0x138   : > { %3077 = vmatmul.mubr.bf16.gmra.mrb[52].mxu0 %v6210_v51  ;;  %v6313_v51 = vld [vmem:[%s8123_s0 + $0xa0] ss:$56 sps:$4 sm:$0xff]  }
 0x139   : > { %3084 = vmatprep.mubr.bf16.mxu0 %v6219_v55 }
 0x13a   : > { %3174 = vmatmul.mubr.bf16.gmra.mrb[52].mxu1 %v6215_v54  ;;  %v6317_v54 = vld [vmem:[%s8123_s0 + $0x184] ss:$56 sps:$4 sm:$0xff]  }
 0x13b   : > { %3181 = vmatprep.mubr.bf16.mxu1 %v6224_v58  ;;  %v6319_v58 = vld [vmem:[%s8123_s0 + $0x180] ss:$56 sps:$4 sm:$0xff]  }
 0x140   : > { %3085 = vmatmul.mubr.bf16.gmra.mrb[56].mxu0 %v6222_v59 }
 0x141   : > { %3092 = vmatprep.mubr.bf16.mxu0 %v6231_v60 }
 0x142   : > { %3182 = vmatmul.mubr.bf16.gmra.mrb[56].mxu1 %v6227_v61 }
 0x143   : > { %3189 = vmatprep.mubr.bf16.mxu1 %v6236_v62  ;;  %v6320_v62 = vld [vmem:[%s8123_s0 + $0x1f4] ss:$56 sps:$4 sm:$0xff]  }
 0x148   : > { %3093 = vmatmul.mubr.bf16.gmra.mrb[60].mxu0 %v6234_v63 }
 0x149   : > { %3230 = vmatprep.mubr.bf16.mxu0 %v6245_v0 }
 0x14a   : > { %3190 = vmatmul.mubr.bf16.gmra.mrb[60].mxu1 %v6239_v1 }
 0x14b   : > { %3327 = vmatprep.mubr.bf16.mxu1 %v6250_v2 }
 0x150   : > { %3231 = vmatmul.mubr.bf16.vlgmr.msra.gmra.mrb[64].mxu0 %v6243_v3 }
 0x151   : > { %5551 = vmatpush3.bf16.msra.mxu0 %v6251_v5  ;;  %3238 = vmatprep.mubr.bf16.mxu0 %v6252_v6 }
 0x152   : > { %3328 = vmatmul.mubr.bf16.vlgmr.msra.gmra.mrb[64].mxu1 %v6248_v4  ;;  %5552 = vmatprep.subr.bf16.mxu0 %v6255_v7 }
 0x153   : > { %3335 = vmatprep.mubr.bf16.mxu1 %v6256_v8 }
 0x155   : > { %5553 = vmatpush3.bf16.msra.mxu0 %v6258_v9 }
 0x156   : > { %5554 = vmatprep.subr.bf16.mxu0 %v6263_v10 }
 0x158   : > { %3239 = vmatmul.mubr.bf16.gmra.mrb[68].mxu0 %v6254_v11 }
 0x159   : > { %3246 = vmatprep.mubr.bf16.mxu0 %v6260_v12  ;;  %5555 = vmatpush3.bf16.msra.mxu0 %v6266_v13  ;;  %v6322_v12 = vld [vmem:[%s8123_s0 + $0x1f0] ss:$56 sps:$4 sm:$0xff]  }
 0x15a   : > { %3336 = vmatmul.mubr.bf16.gmra.mrb[68].mxu1 %v6259_v14  ;;  %5556 = vmatprep.subr.bf16.mxu0 %v6271_v15 }
 0x15b   : > { %3343 = vmatprep.mubr.bf16.mxu1 %v6264_v16  ;;  %v6323_v16 = vld [vmem:[%s8123_s0 + $0x264] ss:$56 sps:$4 sm:$0xff]  }
 0x15d   : > { %5557 = vmatpush3.bf16.msra.mxu0 %v6274_v17 }
 0x15e   : > { %5558 = vmatprep.subr.bf16.mxu0 %v6279_v18 }
 0x160   : > { %3247 = vmatmul.mubr.bf16.gmra.mrb[72].mxu0 %v6262_v19 }
 0x161   : > { %3254 = vmatprep.mubr.bf16.mxu0 %v6268_v21  ;;  %5559 = vmatpush3.bf16.msra.mxu0 %v6282_v22 }
 0x162   : > { %3344 = vmatmul.mubr.bf16.gmra.mrb[72].mxu1 %v6267_v20  ;;  %5560 = vmatprep.subr.bf16.mxu0 %v6287_v23 }
 0x163   : > { %3351 = vmatprep.mubr.bf16.mxu1 %v6272_v24 }
 0x165   : > { %5561 = vmatpush3.bf16.msra.mxu0 %v6290_v25 }
 0x166   : > { %5562 = vmatprep.subr.bf16.mxu0 %v6295_v26 }
 0x168   : > { %3255 = vmatmul.mubr.bf16.gmra.mrb[76].mxu0 %v6270_v27 }
 0x169   : > { %3262 = vmatprep.mubr.bf16.mxu0 %v6276_v28  ;;  %5563 = vmatpush3.bf16.msra.mxu0 %v6298_v29 }
 0x16a   : > { %3352 = vmatmul.mubr.bf16.gmra.mrb[76].mxu1 %v6275_v30  ;;  %5564 = vmatprep.subr.bf16.mxu0 %v6303_v31  ;;  %v6325_v30 = vld [vmem:[%s8123_s0 + $0x260] ss:$56 sps:$4 sm:$0xff]  }
 0x16b   : > { %3359 = vmatprep.mubr.bf16.mxu1 %v6280_v32 }
 0x16d   : > { %5565 = vmatpush3.bf16.msra.mxu0 %v6306_v33 }
 0x170   : > { %3263 = vmatmul.mubr.bf16.gmra.mrb[80].mxu0 %v6278_v34  ;;  %v6326_v34 = vld [vmem:[%s8123_s0 + $0x2d4] ss:$56 sps:$4 sm:$0xff]  }
 0x171   : > { %3270 = vmatprep.mubr.bf16.mxu0 %v6284_v35 }
 0x172   : > { %3360 = vmatmul.mubr.bf16.gmra.mrb[80].mxu1 %v6283_v36 }
 0x173   : > { %3367 = vmatprep.mubr.bf16.mxu1 %v6288_v37 }
 0x178   : > { %3271 = vmatmul.mubr.bf16.gmra.mrb[84].mxu0 %v6286_v38 }
 0x179   : > { %3278 = vmatprep.mubr.bf16.mxu0 %v6292_v39 }
 0x17a   : > { %3368 = vmatmul.mubr.bf16.gmra.mrb[84].mxu1 %v6291_v40 }
 0x17b   : > { %3375 = vmatprep.mubr.bf16.mxu1 %v6296_v41 }
 0x180   : > { %3279 = vmatmul.mubr.bf16.gmra.mrb[88].mxu0 %v6294_v42 }
 0x181   : > { %3286 = vmatprep.mubr.bf16.mxu0 %v6300_v43 }
 0x182   : > { %3376 = vmatmul.mubr.bf16.gmra.mrb[88].mxu1 %v6299_v44 }
 0x183   : > { %3383 = vmatprep.mubr.bf16.mxu1 %v6304_v45 }
 0x188   : > { %3287 = vmatmul.mubr.bf16.gmra.mrb[92].mxu0 %v6302_v46 }
 0x189   : > { %3424 = vmatprep.mubr.bf16.mxu0 %v6310_v47 }
 0x18a   : > { %3384 = vmatmul.mubr.bf16.gmra.mrb[92].mxu1 %v6307_v48  ;;  %v6328_v48 = vld [vmem:[%s8123_s0 + $0x2d0] ss:$56 sps:$4 sm:$0xff]  }
 0x190   : > { %3425 = vmatmul.mubr.bf16.vlgmr.msra.gmra.mrb[96].mxu0 %v6308_v49 }
 0x191   : > { %3432 = vmatprep.mubr.bf16.mxu0 %v6311_v50 }
 0x198   : > { %3433 = vmatmul.mubr.bf16.gmra.mrb[100].mxu0 %v6313_v51 }
 0x199   : > { %3440 = vmatprep.mubr.bf16.mxu0 %v6314_v52  ;;  %v6329_v52 = vld [vmem:[%s8123_s0 + $0x344] ss:$56 sps:$4 sm:$0xff]  }
 0x1a0   : > { %3441 = vmatmul.mubr.bf16.gmra.mrb[104].mxu0 %v6316_v53 }
 0x1a1   : > { %3448 = vmatprep.mubr.bf16.mxu0 %v6317_v54 }
 0x1a3   : > { %v5182_v55 = vpop.f32.mrb[0].mxu0 }
 0x1a4   : > { %v5183_v57 = vpop.f32.mrb[1].mxu0 }
 0x1a5   : > { %v5184_v59 = vadd.f32 %v5183_v57, %v5182_v55  ;;  %v5185_v60 = vpop.f32.mrb[2].mxu0  ;;  %v5246_v61 = vpop.f32.mrb[0].mxu1 }
 0x1a6   : > { %v5186_v63 = vpop.f32.mrb[3].mxu0  ;;  %v5247_v0 = vpop.f32.mrb[1].mxu1 }
 0x1a7   : > { %v2845_v1 = vadd.f32 %v5184_v59, %v7568_v56  ;;  %v5187_v2 = vadd.f32 %v5186_v63, %v5185_v60  ;;  %v5248_v3 = vadd.f32 %v5247_v0, %v5246_v61  ;;  %v5249_v4 = vpop.f32.mrb[2].mxu1 }
 0x1a8   : > { %v5250_v5 = vpop.f32.mrb[3].mxu1  ;;  %3449 = vmatmul.mubr.bf16.gmra.mrb[108].mxu0 %v6319_v58 }
 0x1a9   : > { %v2848_v6 = vadd.f32 %v5187_v2, %v7568_v56  ;;  %v7578_v7 = vadd.f32 %v5248_v3, %v2845_v1  ;;  %v5251_v8 = vadd.f32 %v5250_v5, %v5249_v4  ;;  %3456 = vmatprep.mubr.bf16.mxu0 %v6320_v62  ;;  %v6331_v3 = vld [vmem:[%s8123_s0 + $0x340] ss:$56 sps:$4 sm:$0xff]  }
 0x1ab   : > { %v7580_v9 = vadd.f32 %v5251_v8, %v2848_v6  ;;  %v5188_v10 = vpop.f32.mrb[4].mxu0 }
 0x1ac   : > { %v5189_v11 = vpop.f32.mrb[5].mxu0 }
 0x1ad   : > { %v5190_v13 = vadd.f32 %v5189_v11, %v5188_v10  ;;  %v5191_v14 = vpop.f32.mrb[6].mxu0  ;;  %v5252_v15 = vpop.f32.mrb[4].mxu1 }
 0x1ae   : > { %v5192_v17 = vpop.f32.mrb[7].mxu0  ;;  %v5253_v18 = vpop.f32.mrb[5].mxu1 }
 0x1af   : > { %v2853_v19 = vadd.f32 %v5190_v13, %v7568_v56  ;;  %v5193_v20 = vadd.f32 %v5192_v17, %v5191_v14  ;;  %v5254_v21 = vadd.f32 %v5253_v18, %v5252_v15  ;;  %v5255_v22 = vpop.f32.mrb[6].mxu1 }
 0x1b0   : > { %v5256_v23 = vpop.f32.mrb[7].mxu1  ;;  %3457 = vmatmul.mubr.bf16.gmra.mrb[112].mxu0 %v6322_v12 }
 0x1b1   : > { %v2856_v24 = vadd.f32 %v5193_v20, %v7568_v56  ;;  %v7590_v25 = vadd.f32 %v5254_v21, %v2853_v19  ;;  %v5257_v26 = vadd.f32 %v5256_v23, %v5255_v22  ;;  %3464 = vmatprep.mubr.bf16.mxu0 %v6323_v16 }
 0x1b3   : > { %v7592_v27 = vadd.f32 %v5257_v26, %v2856_v24  ;;  %v5194_v28 = vpop.f32.mrb[8].mxu0 }
 0x1b4   : > { %v5195_v29 = vpop.f32.mrb[9].mxu0 }
 0x1b5   : > { %v5196_v31 = vadd.f32 %v5195_v29, %v5194_v28  ;;  %v5197_v32 = vpop.f32.mrb[10].mxu0  ;;  %v5258_v33 = vpop.f32.mrb[8].mxu1 }
 0x1b6   : > { %v5198_v35 = vpop.f32.mrb[11].mxu0  ;;  %v5259_v36 = vpop.f32.mrb[9].mxu1 }
 0x1b7   : > { %v2861_v37 = vadd.f32 %v5196_v31, %v7568_v56  ;;  %v5199_v38 = vadd.f32 %v5198_v35, %v5197_v32  ;;  %v5260_v39 = vadd.f32 %v5259_v36, %v5258_v33  ;;  %v5261_v40 = vpop.f32.mrb[10].mxu1 }
 0x1b8   : > { %v5262_v41 = vpop.f32.mrb[11].mxu1  ;;  %3465 = vmatmul.mubr.bf16.gmra.mrb[116].mxu0 %v6325_v30 }
 0x1b9   : > { %v2864_v42 = vadd.f32 %v5199_v38, %v7568_v56  ;;  %v7602_v43 = vadd.f32 %v5260_v39, %v2861_v37  ;;  %v5263_v44 = vadd.f32 %v5262_v41, %v5261_v40  ;;  %3472 = vmatprep.mubr.bf16.mxu0 %v6326_v34 }
 0x1bb   : > { %v7604_v45 = vadd.f32 %v5263_v44, %v2864_v42  ;;  %v5200_v46 = vpop.f32.mrb[12].mxu0 }
 0x1bc   : > { %v5201_v47 = vpop.f32.mrb[13].mxu0 }
 0x1bd   : > { %v5202_v49 = vadd.f32 %v5201_v47, %v5200_v46  ;;  %v5203_v50 = vpop.f32.mrb[14].mxu0  ;;  %v5264_v51 = vpop.f32.mrb[12].mxu1 }
 0x1be   : > { %v5204_v53 = vpop.f32.mrb[15].mxu0  ;;  %v5265_v54 = vpop.f32.mrb[13].mxu1 }
 0x1bf   : > { %v2869_v55 = vadd.f32 %v5202_v49, %v7568_v56  ;;  %v5205_v57 = vadd.f32 %v5204_v53, %v5203_v50  ;;  %v5266_v58 = vadd.f32 %v5265_v54, %v5264_v51  ;;  %v5267_v59 = vpop.f32.mrb[14].mxu1  ;;  %v3570_v53 = vld [vmem:[%s7638_s12 + $0x8] sm:$0xff] }
 0x1c0   : > { %v5268_v60 = vpop.f32.mrb[15].mxu1  ;;  %3473 = vmatmul.mubr.bf16.gmra.mrb[120].mxu0 %v6328_v48 }
 0x1c1   : > { %v2872_v61 = vadd.f32 %v5205_v57, %v7568_v56  ;;  %v7614_v62 = vadd.f32 %v5266_v58, %v2869_v55  ;;  %v5269_v63 = vadd.f32 %v5268_v60, %v5267_v59  ;;  %3480 = vmatprep.mubr.bf16.mxu0 %v6329_v52  ;;  %v3569_v52 = vld [vmem:[%s7638_s12] sm:$0xff] }
 0x1c2   : > { %v5871_v58 = vpack.c.bf16 %v3570_v53, %v3569_v52  ;;  %v3579_v52 = vld [vmem:[%s7638_s12 + $0x50] sm:$0xff]  ;;  %v3580_v53 = vld [vmem:[%s7638_s12 + $0x58] sm:$0xff] }
 0x1c3   : > { %v7616_v0 = vadd.f32 %v5269_v63, %v2872_v61  ;;  %v5206_v1 = vpop.f32.mrb[16].mxu0  ;;  %v3571_v63 = vld [vmem:[%s7638_s12 + $0x10] sm:$0xff] }
 0x1c4   : > { %v5207_v2 = vpop.f32.mrb[17].mxu0  ;;  %5872 = vmatprep.subr.bf16.mxu1 %v5871_v58 }
 0x1c5   : > { %v5208_v4 = vadd.f32 %v5207_v2, %v5206_v1  ;;  %v5209_v5 = vpop.f32.mrb[18].mxu0  ;;  %v5270_v6 = vpop.f32.mrb[16].mxu1  ;;  %5874 = vmatpush3.bf16.msra.mxu1 %v5871_v58  ;;  %v3572_v1 = vld [vmem:[%s7638_s12 + $0x18] sm:$0xff] }
 0x1c6   : > { %v5210_v8 = vpop.f32.mrb[19].mxu0  ;;  %v5271_v10 = vpop.f32.mrb[17].mxu1 }
 0x1c7   : > { %v2877_v11 = vadd.f32 %v5208_v4, %v7568_v56  ;;  %v5211_v12 = vadd.f32 %v5210_v8, %v5209_v5  ;;  %v5272_v13 = vadd.f32 %v5271_v10, %v5270_v6  ;;  %v5273_v14 = vpop.f32.mrb[18].mxu1  ;;  %v5875_v5 = vpack.c.bf16 %v3572_v1, %v3571_v63 }
 0x1c8   : > { %v5274_v15 = vpop.f32.mrb[19].mxu1  ;;  %3481 = vmatmul.mubr.bf16.gmra.mrb[124].mxu0 %v6331_v3 }
 0x1c9   : > { %v2880_v16 = vadd.f32 %v5211_v12, %v7568_v56  ;;  %v7623_v17 = vadd.f32 %v5272_v13, %v2877_v11  ;;  %v5275_v18 = vadd.f32 %v5274_v15, %v5273_v14  ;;  %5876 = vmatprep.subr.bf16.mxu1 %v5875_v5  ;;  %v3573_v15 = vld [vmem:[%s7638_s12 + $0x20] sm:$0xff] }
 0x1ca   : > { %5878 = vmatpush3.bf16.msra.mxu1 %v5875_v5  ;;  %v3581_v5 = vld [vmem:[%s7638_s12 + $0x60] sm:$0xff] }
 0x1cb   : > { %v7625_v19 = vadd.f32 %v5275_v18, %v2880_v16  ;;  %v5212_v20 = vpop.f32.mrb[20].mxu0  ;;  %v3574_v16 = vld [vmem:[%s7638_s12 + $0x28] sm:$0xff] }
 0x1cc   : > { %v5213_v21 = vpop.f32.mrb[21].mxu0 }
 0x1cd   : > { %v5214_v22 = vadd.f32 %v5213_v21, %v5212_v20  ;;  %v5215_v23 = vpop.f32.mrb[22].mxu0  ;;  %v5276_v24 = vpop.f32.mrb[20].mxu1 }
 0x1ce   : > { %v5216_v26 = vpop.f32.mrb[23].mxu0  ;;  %v5277_v28 = vpop.f32.mrb[21].mxu1 }
 0x1cf   : > { %v2885_v29 = vadd.f32 %v5214_v22, %v7568_v56  ;;  %v5217_v30 = vadd.f32 %v5216_v26, %v5215_v23  ;;  %v5278_v31 = vadd.f32 %v5277_v28, %v5276_v24  ;;  %v5279_v32 = vpop.f32.mrb[22].mxu1  ;;  %v5879_v22 = vpack.c.bf16 %v3574_v16, %v3573_v15  ;;  %v3575_v28 = vld [vmem:[%s7638_s12 + $0x30] sm:$0xff]  ;;  %v3584_v16 = vld [vmem:[%s7638_s12 + $0x78] sm:$0xff] }
 0x1d0   : > { %v5280_v33 = vpop.f32.mrb[23].mxu1  ;;  %v3583_v15 = vld [vmem:[%s7638_s12 + $0x70] sm:$0xff] }
 0x1d1   : > { %v2888_v34 = vadd.f32 %v5217_v30, %v7568_v56  ;;  %v7629_v35 = vadd.f32 %v5278_v31, %v2885_v29  ;;  %v5281_v36 = vadd.f32 %v5280_v33, %v5279_v32  ;;  %5880 = vmatprep.subr.bf16.mxu1 %v5879_v22  ;;  %v3576_v29 = vld [vmem:[%s7638_s12 + $0x38] sm:$0xff] }
 0x1d2   : > { %5882 = vmatpush3.bf16.msra.mxu1 %v5879_v22  ;;  %v5883_v33 = vpack.c.bf16 %v3576_v29, %v3575_v28 }
 0x1d3   : > { %v7632_v37 = vadd.f32 %v5281_v36, %v2888_v34  ;;  %v5218_v38 = vpop.f32.mrb[24].mxu0 }
 0x1d4   : > { %v5219_v39 = vpop.f32.mrb[25].mxu0  ;;  %5884 = vmatprep.subr.bf16.mxu1 %v5883_v33 }
 0x1d5   : > { %v5220_v40 = vadd.f32 %v5219_v39, %v5218_v38  ;;  %v5221_v41 = vpop.f32.mrb[26].mxu0  ;;  %v5282_v42 = vpop.f32.mrb[24].mxu1 }
 0x1d6   : > { %v5222_v44 = vpop.f32.mrb[27].mxu0  ;;  %v5283_v46 = vpop.f32.mrb[25].mxu1  ;;  %5886 = vmatpush3.bf16.msra.mxu1 %v5883_v33 }
 0x1d7   : > { %v2893_v47 = vadd.f32 %v5220_v40, %v7568_v56  ;;  %v5223_v48 = vadd.f32 %v5222_v44, %v5221_v41  ;;  %v5284_v49 = vadd.f32 %v5283_v46, %v5282_v42  ;;  %v5285_v50 = vpop.f32.mrb[26].mxu1  ;;  %v3577_v42 = vld [vmem:[%s7638_s12 + $0x40] sm:$0xff]  ;;  %v3578_v44 = vld [vmem:[%s7638_s12 + $0x48] sm:$0xff] }
 0x1d8   : > { %v5286_v51 = vpop.f32.mrb[27].mxu1 }
 0x1d9   : > { %v2896_v54 = vadd.f32 %v5223_v48, %v7568_v56  ;;  %v7643_v55 = vadd.f32 %v5284_v49, %v2893_v47  ;;  %v5287_v57 = vadd.f32 %v5286_v51, %v5285_v50  ;;  %v5887_v49 = vpack.c.bf16 %v3578_v44, %v3577_v42 }
 0x1db   : > { %v7645_v59 = vadd.f32 %v5287_v57, %v2896_v54  ;;  %v5224_v60 = vpop.f32.mrb[28].mxu0  ;;  %5888 = vmatprep.subr.bf16.mxu1 %v5887_v49 }
 0x1dc   : > { %v5225_v61 = vpop.f32.mrb[29].mxu0  ;;  %5890 = vmatpush3.bf16.msra.mxu1 %v5887_v49 }
 0x1dd   : > { %v5226_v2 = vadd.f32 %v5225_v61, %v5224_v60  ;;  %v5227_v3 = vpop.f32.mrb[30].mxu0  ;;  %v5288_v4 = vpop.f32.mrb[28].mxu1  ;;  %v5891_v60 = vpack.c.bf16 %v3580_v53, %v3579_v52 }
 0x1de   : > { %v5228_v6 = vpop.f32.mrb[31].mxu0  ;;  %v5289_v8 = vpop.f32.mrb[29].mxu1 }
 0x1df   : > { %v2901_v10 = vadd.f32 %v5226_v2, %v7568_v56  ;;  %v5229_v11 = vadd.f32 %v5228_v6, %v5227_v3  ;;  %v5290_v12 = vadd.f32 %v5289_v8, %v5288_v4  ;;  %v5291_v13 = vpop.f32.mrb[30].mxu1  ;;  %5892 = vmatprep.subr.bf16.mxu1 %v5891_v60  ;;  %v3582_v6 = vld [vmem:[%s7638_s12 + $0x68] sm:$0xff] }
 0x1e0   : > { %v5292_v14 = vpop.f32.mrb[31].mxu1  ;;  %5894 = vmatpush3.bf16.msra.mxu1 %v5891_v60 }
 0x1e1   : > { %v2904_v18 = vadd.f32 %v5229_v11, %v7568_v56  ;;  %v7653_v20 = vadd.f32 %v5290_v12, %v2901_v10  ;;  %v5293_v21 = vadd.f32 %v5292_v14, %v5291_v13  ;;  %v5895_v12 = vpack.c.bf16 %v3582_v6, %v3581_v5 }
 0x1e3   : > { %v7655_v23 = vadd.f32 %v5293_v21, %v2904_v18  ;;  %v5310_v24 = vpop.f32.mrb[32].mxu0  ;;  %5896 = vmatprep.subr.bf16.mxu1 %v5895_v12 }
 0x1e4   : > { %v5311_v26 = vpop.f32.mrb[33].mxu0  ;;  %5898 = vmatpush3.bf16.msra.mxu1 %v5895_v12 }
 0x1e5   : > { %v5312_v30 = vadd.f32 %v5311_v26, %v5310_v24  ;;  %v5313_v31 = vpop.f32.mrb[34].mxu0  ;;  %v5374_v32 = vpop.f32.mrb[32].mxu1  ;;  %v5899_v24 = vpack.c.bf16 %v3584_v16, %v3583_v15 }
 0x1e6   : > { %v5314_v34 = vpop.f32.mrb[35].mxu0  ;;  %v5375_v56 = vpop.f32.mrb[33].mxu1 }
 0x1e7   : > { %v3039_v36 = vadd.f32 %v5312_v30, %v7578_v7  ;;  %v5315_v38 = vadd.f32 %v5314_v34, %v5313_v31  ;;  %v5376_v39 = vadd.f32 %v5375_v56, %v5374_v32  ;;  %v5377_v40 = vpop.f32.mrb[34].mxu1  ;;  %5900 = vmatprep.subr.bf16.mxu1 %v5899_v24 }
 0x1e8   : > { %v5378_v41 = vpop.f32.mrb[35].mxu1  ;;  %5902 = vmatpush3.bf16.msra.mxu1 %v5899_v24 }
 0x1e9   : > { %v3042_v46 = vadd.f32 %v5315_v38, %v7580_v9  ;;  %v7663_v47 = vadd.f32 %v5376_v39, %v3039_v36  ;;  %v5379_v48 = vadd.f32 %v5378_v41, %v5377_v40 }
 0x1eb   : > { %v7665_v50 = vadd.f32 %v5379_v48, %v3042_v46  ;;  %v5316_v51 = vpop.f32.mrb[36].mxu0 }
 0x1ec   : > { %v5317_v7 = vpop.f32.mrb[37].mxu0 }
 0x1ed   : > { %v5318_v54 = vadd.f32 %v5317_v7, %v5316_v51  ;;  %v5319_v57 = vpop.f32.mrb[38].mxu0  ;;  %v5380_v58 = vpop.f32.mrb[36].mxu1 }
 0x1ee   : > { %v5320_v61 = vpop.f32.mrb[39].mxu0  ;;  %v5381_v9 = vpop.f32.mrb[37].mxu1 }
 0x1ef   : > { %v3047_v63 = vadd.f32 %v5318_v54, %v7590_v25  ;;  %v5321_v1 = vadd.f32 %v5320_v61, %v5319_v57  ;;  %v5382_v2 = vadd.f32 %v5381_v9, %v5380_v58  ;;  %v5383_v3 = vpop.f32.mrb[38].mxu1 }
 0x1f0   : > { %v5384_v4 = vpop.f32.mrb[39].mxu1 }
 0x1f1   : > { %v3050_v8 = vadd.f32 %v5321_v1, %v7592_v27  ;;  %v7673_v10 = vadd.f32 %v5382_v2, %v3047_v63  ;;  %v5385_v11 = vadd.f32 %v5384_v4, %v5383_v3 }
 0x1f3   : > { %v7675_v13 = vadd.f32 %v5385_v11, %v3050_v8  ;;  %v5322_v14 = vpop.f32.mrb[40].mxu0 }
 0x1f4   : > { %v5323_v25 = vpop.f32.mrb[41].mxu0 }
 0x1f5   : > { %v5324_v18 = vadd.f32 %v5323_v25, %v5322_v14  ;;  %v5325_v21 = vpop.f32.mrb[42].mxu0  ;;  %v5386_v22 = vpop.f32.mrb[40].mxu1 }
 0x1f6   : > { %v5326_v26 = vpop.f32.mrb[43].mxu0  ;;  %v5387_v28 = vpop.f32.mrb[41].mxu1 }
 0x1f7   : > { %v3055_v27 = vadd.f32 %v5324_v18, %v7602_v43  ;;  %v5327_v29 = vadd.f32 %v5326_v26, %v5325_v21  ;;  %v5388_v30 = vadd.f32 %v5387_v28, %v5386_v22  ;;  %v5389_v31 = vpop.f32.mrb[42].mxu1 }
 0x1f8   : > { %v5390_v32 = vpop.f32.mrb[43].mxu1 }
 0x1f9   : > { %v3058_v33 = vadd.f32 %v5327_v29, %v7604_v45  ;;  %v7681_v34 = vadd.f32 %v5388_v30, %v3055_v27  ;;  %v5391_v56 = vadd.f32 %v5390_v32, %v5389_v31 }
 0x1fb   : > { %v7683_v36 = vadd.f32 %v5391_v56, %v3058_v33  ;;  %v5328_v38 = vpop.f32.mrb[44].mxu0 }
 0x1fc   : > { %v5329_v39 = vpop.f32.mrb[45].mxu0 }
 0x1fd   : > { %v5330_v40 = vadd.f32 %v5329_v39, %v5328_v38  ;;  %v5331_v41 = vpop.f32.mrb[46].mxu0  ;;  %v5392_v42 = vpop.f32.mrb[44].mxu1 }
 0x1fe   : > { %v5332_v44 = vpop.f32.mrb[47].mxu0  ;;  %v5393_v43 = vpop.f32.mrb[45].mxu1 }
 0x1ff   : > { %v3063_v46 = vadd.f32 %v5330_v40, %v7614_v62  ;;  %v5333_v48 = vadd.f32 %v5332_v44, %v5331_v41  ;;  %v5394_v49 = vadd.f32 %v5393_v43, %v5392_v42  ;;  %v5395_v51 = vpop.f32.mrb[46].mxu1 }
 0x200   : > { %v5396_v7 = vpop.f32.mrb[47].mxu1 }
 0x201   : > { %v3066_v45 = vadd.f32 %v5333_v48, %v7616_v0  ;;  %v7687_v52 = vadd.f32 %v5394_v49, %v3063_v46  ;;  %v5397_v53 = vadd.f32 %v5396_v7, %v5395_v51 }
 0x203   : > { %v7689_v54 = vadd.f32 %v5397_v53, %v3066_v45  ;;  %v5334_v57 = vpop.f32.mrb[48].mxu0 }
 0x204   : > { %v5335_v58 = vpop.f32.mrb[49].mxu0 }
 0x205   : > { %v5336_v60 = vadd.f32 %v5335_v58, %v5334_v57  ;;  %v5337_v61 = vpop.f32.mrb[50].mxu0  ;;  %v5398_v9 = vpop.f32.mrb[48].mxu1 }
 0x206   : > { %v5338_v63 = vpop.f32.mrb[51].mxu0  ;;  %v5399_v1 = vpop.f32.mrb[49].mxu1 }
 0x207   : > { %v3071_v62 = vadd.f32 %v5336_v60, %v7623_v17  ;;  %v5339_v2 = vadd.f32 %v5338_v63, %v5337_v61  ;;  %v5400_v3 = vadd.f32 %v5399_v1, %v5398_v9  ;;  %v5401_v4 = vpop.f32.mrb[50].mxu1 }
 0x208   : > { %v5402_v5 = vpop.f32.mrb[51].mxu1 }
 0x209   : > { %v3074_v0 = vadd.f32 %v5339_v2, %v7625_v19  ;;  %v7693_v6 = vadd.f32 %v5400_v3, %v3071_v62  ;;  %v5403_v8 = vadd.f32 %v5402_v5, %v5401_v4 }
 0x20b   : > { %v7695_v11 = vadd.f32 %v5403_v8, %v3074_v0  ;;  %v5340_v12 = vpop.f32.mrb[52].mxu0 }
 0x20c   : > { %v5341_v14 = vpop.f32.mrb[53].mxu0 }
 0x20d   : > { %v5342_v25 = vadd.f32 %v5341_v14, %v5340_v12  ;;  %v5343_v15 = vpop.f32.mrb[54].mxu0  ;;  %v5404_v16 = vpop.f32.mrb[52].mxu1 }
 0x20e   : > { %v5344_v18 = vpop.f32.mrb[55].mxu0  ;;  %v5405_v21 = vpop.f32.mrb[53].mxu1 }
 0x20f   : > { %v3079_v17 = vadd.f32 %v5342_v25, %v7629_v35  ;;  %v5345_v22 = vadd.f32 %v5344_v18, %v5343_v15  ;;  %v5406_v24 = vadd.f32 %v5405_v21, %v5404_v16  ;;  %v5407_v26 = vpop.f32.mrb[54].mxu1 }
 0x210   : > { %v5408_v28 = vpop.f32.mrb[55].mxu1 }
 0x211   : > { %v3082_v19 = vadd.f32 %v5345_v22, %v7632_v37  ;;  %v7699_v27 = vadd.f32 %v5406_v24, %v3079_v17  ;;  %v5409_v29 = vadd.f32 %v5408_v28, %v5407_v26 }
 0x213   : > { %v7701_v30 = vadd.f32 %v5409_v29, %v3082_v19  ;;  %v5346_v31 = vpop.f32.mrb[56].mxu0 }
 0x214   : > { %v5347_v32 = vpop.f32.mrb[57].mxu0 }
 0x215   : > { %v5348_v33 = vadd.f32 %v5347_v32, %v5346_v31  ;;  %v5349_v56 = vpop.f32.mrb[58].mxu0  ;;  %v5410_v38 = vpop.f32.mrb[56].mxu1 }
 0x216   : > { %v5350_v39 = vpop.f32.mrb[59].mxu0  ;;  %v5411_v40 = vpop.f32.mrb[57].mxu1 }
 0x217   : > { %v3087_v35 = vadd.f32 %v5348_v33, %v7643_v55  ;;  %v5351_v41 = vadd.f32 %v5350_v39, %v5349_v56  ;;  %v5412_v42 = vadd.f32 %v5411_v40, %v5410_v38  ;;  %v5413_v44 = vpop.f32.mrb[58].mxu1 }
 0x218   : > { %v5414_v43 = vpop.f32.mrb[59].mxu1 }
 0x219   : > { %v3090_v37 = vadd.f32 %v5351_v41, %v7645_v59  ;;  %v7705_v46 = vadd.f32 %v5412_v42, %v3087_v35  ;;  %v5415_v48 = vadd.f32 %v5414_v43, %v5413_v44 }
 0x21b   : > { %v7707_v49 = vadd.f32 %v5415_v48, %v3090_v37  ;;  %v5352_v51 = vpop.f32.mrb[60].mxu0 }
 0x21c   : > { %v5353_v7 = vpop.f32.mrb[61].mxu0 }
 0x21d   : > { %v5354_v45 = vadd.f32 %v5353_v7, %v5352_v51  ;;  %v5355_v53 = vpop.f32.mrb[62].mxu0  ;;  %v5416_v57 = vpop.f32.mrb[60].mxu1 }
 0x21e   : > { %v5356_v58 = vpop.f32.mrb[63].mxu0  ;;  %v5417_v60 = vpop.f32.mrb[61].mxu1 }
 0x21f   : > { %v3095_v55 = vadd.f32 %v5354_v45, %v7653_v20  ;;  %v5357_v61 = vadd.f32 %v5356_v58, %v5355_v53  ;;  %v5418_v9 = vadd.f32 %v5417_v60, %v5416_v57  ;;  %v5419_v63 = vpop.f32.mrb[62].mxu1 }
 0x220   : > { %v5420_v1 = vpop.f32.mrb[63].mxu1 }
 0x221   : > { %v3098_v59 = vadd.f32 %v5357_v61, %v7655_v23  ;;  %v7711_v62 = vadd.f32 %v5418_v9, %v3095_v55  ;;  %v5421_v2 = vadd.f32 %v5420_v1, %v5419_v63 }
 0x223   : > { %v7713_v3 = vadd.f32 %v5421_v2, %v3098_v59  ;;  %v5438_v4 = vpop.f32.mrb[64].mxu0 }
 0x224   : > { %v5439_v5 = vpop.f32.mrb[65].mxu0 }
 0x225   : > { %v5440_v0 = vadd.f32 %v5439_v5, %v5438_v4  ;;  %v5441_v8 = vpop.f32.mrb[66].mxu0  ;;  %v5502_v12 = vpop.f32.mrb[64].mxu1 }
 0x226   : > { %v5442_v14 = vpop.f32.mrb[67].mxu0  ;;  %v5503_v25 = vpop.f32.mrb[65].mxu1 }
 0x227   : > { %v3233_v20 = vadd.f32 %v5440_v0, %v7663_v47  ;;  %v5443_v15 = vadd.f32 %v5442_v14, %v5441_v8  ;;  %v5504_v16 = vadd.f32 %v5503_v25, %v5502_v12  ;;  %v5505_v18 = vpop.f32.mrb[66].mxu1 }
 0x228   : > { %v5506_v21 = vpop.f32.mrb[67].mxu1 }
 0x229   : > { %v3236_v23 = vadd.f32 %v5443_v15, %v7665_v50  ;;  %v7717_v17 = vadd.f32 %v5504_v16, %v3233_v20  ;;  %v5507_v22 = vadd.f32 %v5506_v21, %v5505_v18 }
 0x22b   : > { %v7719_v24 = vadd.f32 %v5507_v22, %v3236_v23  ;;  %v5444_v26 = vpop.f32.mrb[68].mxu0 }
 0x22c   : > { %v5445_v28 = vpop.f32.mrb[69].mxu0 }
 0x22d   : > { %v5446_v19 = vadd.f32 %v5445_v28, %v5444_v26  ;;  %v5447_v29 = vpop.f32.mrb[70].mxu0  ;;  %v5508_v31 = vpop.f32.mrb[68].mxu1 }
 0x22e   : > { %v5448_v32 = vpop.f32.mrb[71].mxu0  ;;  %v5509_v33 = vpop.f32.mrb[69].mxu1 }
 0x22f   : > { %v3241_v47 = vadd.f32 %v5446_v19, %v7673_v10  ;;  %v5449_v56 = vadd.f32 %v5448_v32, %v5447_v29  ;;  %v5510_v38 = vadd.f32 %v5509_v33, %v5508_v31  ;;  %v5511_v39 = vpop.f32.mrb[70].mxu1 }
 0x230   : > { %v5512_v40 = vpop.f32.mrb[71].mxu1 }
 0x231   : > { %v3244_v50 = vadd.f32 %v5449_v56, %v7675_v13  ;;  %v7723_v35 = vadd.f32 %v5510_v38, %v3241_v47  ;;  %v5513_v41 = vadd.f32 %v5512_v40, %v5511_v39 }
 0x233   : > { %v7725_v42 = vadd.f32 %v5513_v41, %v3244_v50  ;;  %v5450_v44 = vpop.f32.mrb[72].mxu0 }
 0x234   : > { %v5451_v43 = vpop.f32.mrb[73].mxu0 }
 0x235   : > { %v5452_v37 = vadd.f32 %v5451_v43, %v5450_v44  ;;  %v5453_v48 = vpop.f32.mrb[74].mxu0  ;;  %v5514_v51 = vpop.f32.mrb[72].mxu1 }
 0x236   : > { %v5454_v7 = vpop.f32.mrb[75].mxu0  ;;  %v5515_v45 = vpop.f32.mrb[73].mxu1 }
 0x237   : > { %v3249_v10 = vadd.f32 %v5452_v37, %v7681_v34  ;;  %v5455_v53 = vadd.f32 %v5454_v7, %v5453_v48  ;;  %v5516_v57 = vadd.f32 %v5515_v45, %v5514_v51  ;;  %v5517_v58 = vpop.f32.mrb[74].mxu1 }
 0x238   : > { %v5518_v60 = vpop.f32.mrb[75].mxu1 }
 0x239   : > { %v3252_v13 = vadd.f32 %v5455_v53, %v7683_v36  ;;  %v7729_v55 = vadd.f32 %v5516_v57, %v3249_v10  ;;  %v5519_v61 = vadd.f32 %v5518_v60, %v5517_v58 }
 0x23b   : > { %v7731_v9 = vadd.f32 %v5519_v61, %v3252_v13  ;;  %v5456_v63 = vpop.f32.mrb[76].mxu0 }
 0x23c   : > { %v5457_v1 = vpop.f32.mrb[77].mxu0 }
 0x23d   : > { %v5458_v59 = vadd.f32 %v5457_v1, %v5456_v63  ;;  %v5459_v2 = vpop.f32.mrb[78].mxu0  ;;  %v5520_v4 = vpop.f32.mrb[76].mxu1 }
 0x23e   : > { %v5460_v5 = vpop.f32.mrb[79].mxu0  ;;  %v5521_v0 = vpop.f32.mrb[77].mxu1 }
 0x23f   : > { %v3257_v34 = vadd.f32 %v5458_v59, %v7687_v52  ;;  %v5461_v8 = vadd.f32 %v5460_v5, %v5459_v2  ;;  %v5522_v12 = vadd.f32 %v5521_v0, %v5520_v4  ;;  %v5523_v14 = vpop.f32.mrb[78].mxu1 }
 0x240   : > { %v5524_v25 = vpop.f32.mrb[79].mxu1 }
 0x241   : > { %v3260_v36 = vadd.f32 %v5461_v8, %v7689_v54  ;;  %v7735_v20 = vadd.f32 %v5522_v12, %v3257_v34  ;;  %v5525_v15 = vadd.f32 %v5524_v25, %v5523_v14 }
 0x243   : > { %v7737_v16 = vadd.f32 %v5525_v15, %v3260_v36  ;;  %v5462_v18 = vpop.f32.mrb[80].mxu0 }
 0x244   : > { %v5463_v21 = vpop.f32.mrb[81].mxu0 }
 0x245   : > { %v5464_v23 = vadd.f32 %v5463_v21, %v5462_v18  ;;  %v5465_v22 = vpop.f32.mrb[82].mxu0  ;;  %v5526_v26 = vpop.f32.mrb[80].mxu1 }
 0x246   : > { %v5466_v28 = vpop.f32.mrb[83].mxu0  ;;  %v5527_v19 = vpop.f32.mrb[81].mxu1 }
 0x247   : > { %v3265_v52 = vadd.f32 %v5464_v23, %v7693_v6  ;;  %v5467_v29 = vadd.f32 %v5466_v28, %v5465_v22  ;;  %v5528_v31 = vadd.f32 %v5527_v19, %v5526_v26  ;;  %v5529_v32 = vpop.f32.mrb[82].mxu1 }
 0x248   : > { %v5530_v33 = vpop.f32.mrb[83].mxu1 }
 0x249   : > { %v3268_v54 = vadd.f32 %v5467_v29, %v7695_v11  ;;  %v7741_v47 = vadd.f32 %v5528_v31, %v3265_v52  ;;  %v5531_v56 = vadd.f32 %v5530_v33, %v5529_v32 }
 0x24b   : > { %v7743_v38 = vadd.f32 %v5531_v56, %v3268_v54  ;;  %v5468_v39 = vpop.f32.mrb[84].mxu0 }
 0x24c   : > { %v5469_v40 = vpop.f32.mrb[85].mxu0 }
 0x24d   : > { %v5470_v50 = vadd.f32 %v5469_v40, %v5468_v39  ;;  %v5471_v41 = vpop.f32.mrb[86].mxu0  ;;  %v5532_v44 = vpop.f32.mrb[84].mxu1 }
 0x24e   : > { %v5472_v43 = vpop.f32.mrb[87].mxu0  ;;  %v5533_v37 = vpop.f32.mrb[85].mxu1 }
 0x24f   : > { %v3273_v6 = vadd.f32 %v5470_v50, %v7699_v27  ;;  %v5473_v48 = vadd.f32 %v5472_v43, %v5471_v41  ;;  %v5534_v51 = vadd.f32 %v5533_v37, %v5532_v44  ;;  %v5535_v7 = vpop.f32.mrb[86].mxu1 }
 0x250   : > { %v5536_v45 = vpop.f32.mrb[87].mxu1 }
 0x251   : > { %v3276_v11 = vadd.f32 %v5473_v48, %v7701_v30  ;;  %v7747_v10 = vadd.f32 %v5534_v51, %v3273_v6  ;;  %v5537_v53 = vadd.f32 %v5536_v45, %v5535_v7 }
 0x253   : > { %v7749_v57 = vadd.f32 %v5537_v53, %v3276_v11  ;;  %v5474_v58 = vpop.f32.mrb[88].mxu0 }
 0x254   : > { %v5475_v60 = vpop.f32.mrb[89].mxu0 }
 0x255   : > { %v5476_v13 = vadd.f32 %v5475_v60, %v5474_v58  ;;  %v5477_v61 = vpop.f32.mrb[90].mxu0  ;;  %v5538_v63 = vpop.f32.mrb[88].mxu1 }
 0x256   : > { %v5478_v1 = vpop.f32.mrb[91].mxu0  ;;  %v5539_v59 = vpop.f32.mrb[89].mxu1 }
 0x257   : > { %v3281_v27 = vadd.f32 %v5476_v13, %v7705_v46  ;;  %v5479_v2 = vadd.f32 %v5478_v1, %v5477_v61  ;;  %v5540_v4 = vadd.f32 %v5539_v59, %v5538_v63  ;;  %v5541_v5 = vpop.f32.mrb[90].mxu1 }
 0x258   : > { %v5542_v0 = vpop.f32.mrb[91].mxu1 }
 0x259   : > { %v3284_v30 = vadd.f32 %v5479_v2, %v7707_v49  ;;  %v7753_v34 = vadd.f32 %v5540_v4, %v3281_v27  ;;  %v5543_v8 = vadd.f32 %v5542_v0, %v5541_v5 }
 0x25b   : > { %v7755_v12 = vadd.f32 %v5543_v8, %v3284_v30  ;;  %v5480_v14 = vpop.f32.mrb[92].mxu0 }
 0x25c   : > { %v5481_v25 = vpop.f32.mrb[93].mxu0 }
 0x25d   : > { %v5482_v36 = vadd.f32 %v5481_v25, %v5480_v14  ;;  %v5483_v15 = vpop.f32.mrb[94].mxu0  ;;  %v5544_v18 = vpop.f32.mrb[92].mxu1 }
 0x25e   : > { %v5484_v21 = vpop.f32.mrb[95].mxu0  ;;  %v5545_v23 = vpop.f32.mrb[93].mxu1 }
 0x25f   : > { %v3289_v46 = vadd.f32 %v5482_v36, %v7711_v62  ;;  %v5485_v22 = vadd.f32 %v5484_v21, %v5483_v15  ;;  %v5546_v26 = vadd.f32 %v5545_v23, %v5544_v18  ;;  %v5547_v28 = vpop.f32.mrb[94].mxu1 }
 0x260   : > { %v5548_v19 = vpop.f32.mrb[95].mxu1 }
 0x261   : > { %v3292_v49 = vadd.f32 %v5485_v22, %v7713_v3  ;;  %v7759_v52 = vadd.f32 %v5546_v26, %v3289_v46  ;;  %v5549_v29 = vadd.f32 %v5548_v19, %v5547_v28 }
 0x263   : > { %v7761_v31 = vadd.f32 %v5549_v29, %v3292_v49  ;;  %v5566_v32 = vpop.f32.mrb[96].mxu0 }
 0x264   : > { %v5567_v33 = vpop.f32.mrb[97].mxu0 }
 0x265   : > { %v5568_v54 = vadd.f32 %v5567_v33, %v5566_v32  ;;  %v5569_v56 = vpop.f32.mrb[98].mxu0 }
 0x266   : > { %v5570_v39 = vpop.f32.mrb[99].mxu0 }
 0x267   : > { %v3427_v40 = vadd.f32 %v5568_v54, %v7717_v17  ;;  %v5571_v50 = vadd.f32 %v5570_v39, %v5569_v56 }
 0x269   : > { %v3505_v62 = vmul.f32 1.442695, %v3427_v40  ;;  %v3430_v41 = vadd.f32 %v5571_v50, %v7719_v24  ;;  %vm3489_vm0 = vcmp.gt.f32.partialorder %v3427_v40, 0.0 }
 0x26b   : > { %6332 = vpow2.f32 %v3505_v62  ;;  %v3507_v44 = vmul.f32 1.442695, %v3430_v41  ;;  %v5572_v43 = vpop.f32.mrb[100].mxu0  ;;  %vm3490_vm1 = vcmp.gt.f32.partialorder %v3430_v41, 0.0 }
 0x26c   : > { %v5573_v3 = vpop.f32.mrb[101].mxu0 }
 0x26d   : > { %6334 = vpow2.f32 %v3507_v44  ;;  %v5574_v37 = vadd.f32 %v5573_v3, %v5572_v43  ;;  %v5575_v6 = vpop.f32.mrb[102].mxu0 }
 0x26e   : > { %v5576_v48 = vpop.f32.mrb[103].mxu0 }
 0x26f   : > { %v3435_v51 = vadd.f32 %v5574_v37, %v7723_v35  ;;  %v5577_v7 = vadd.f32 %v5576_v48, %v5575_v6 }
 0x271   : > { %v3509_v45 = vmul.f32 1.442695, %v3435_v51  ;;  %v3438_v11 = vadd.f32 %v5577_v7, %v7725_v42  ;;  %vm3491_vm2 = vcmp.gt.f32.partialorder %v3435_v51, 0.0 }
 0x273   : > { %6336 = vpow2.f32 %v3509_v45  ;;  %v3511_v17 = vmul.f32 1.442695, %v3438_v11  ;;  %v5578_v53 = vpop.f32.mrb[104].mxu0  ;;  %vm3492_vm3 = vcmp.gt.f32.partialorder %v3438_v11, 0.0 }
 0x274   : > { %v5579_v58 = vpop.f32.mrb[105].mxu0 }
 0x275   : > { %v6333_v60 = vpop.eup %6332  ;;  %6338 = vpow2.f32 %v3511_v17  ;;  %v5580_v24 = vadd.f32 %v5579_v58, %v5578_v53  ;;  %v5581_v13 = vpop.f32.mrb[106].mxu0 }
 0x276   : > { %v5582_v61 = vpop.f32.mrb[107].mxu0  ;;  %v5118_v63 = vadd.f32 -1.0, %v6333_v60 }
 0x277   : > { %v6335_v1 = vpop.eup %6334  ;;  %v3443_v59 = vadd.f32 %v5580_v24, %v7729_v55  ;;  %v5583_v27 = vadd.f32 %v5582_v61, %v5581_v13 }
 0x278   : > { %v3553_v35 = vsel %vm3489_vm0, %v3427_v40, %v5118_v63  ;;  %v5119_v2 = vadd.f32 -1.0, %v6335_v1  ;;  %vm3734_vm0 = vcmask (!%p5134_p10), 195584  }
 0x279   : > { %v3513_v4 = vmul.f32 1.442695, %v3443_v59  ;;  %v3446_v42 = vadd.f32 %v5583_v27, %v7731_v9  ;;  %5736 = vmatprep.mubr.f32.mxu1 %v3553_v35  ;;  %vm3493_vm4 = vcmp.gt.f32.partialorder %v3443_v59, 0.0 }
 0x27a   : > { %v3554_v5 = vsel %vm3490_vm1, %v3430_v41, %v5119_v2 }
 0x27b   : > { %6340 = vpow2.f32 %v3513_v4  ;;  %v3515_v0 = vmul.f32 1.442695, %v3446_v42  ;;  %v5584_v30 = vpop.f32.mrb[108].mxu0  ;;  %5737 = vmatmul.mubr.f32.vlgmr.msra.gmra.mrb[96].mxu1 %v3554_v5  ;;  %vm3494_vm5 = vcmp.gt.f32.partialorder %v3446_v42, 0.0 }
 0x27c   : > { %v5585_v8 = vpop.f32.mrb[109].mxu0 }
 0x27d   : > { %v6337_v14 = vpop.eup %6336  ;;  %6342 = vpow2.f32 %v3515_v0  ;;  %v5586_v25 = vadd.f32 %v5585_v8, %v5584_v30  ;;  %v5587_v36 = vpop.f32.mrb[110].mxu0 }
 0x27e   : > { %v5588_v55 = vpop.f32.mrb[111].mxu0  ;;  %v5120_v15 = vadd.f32 -1.0, %v6337_v14 }
 0x27f   : > { %v6339_v18 = vpop.eup %6338  ;;  %v3451_v21 = vadd.f32 %v5586_v25, %v7735_v20  ;;  %v5589_v23 = vadd.f32 %v5588_v55, %v5587_v36 }
 0x280   : > { %v3555_v46 = vsel %vm3491_vm2, %v3435_v51, %v5120_v15  ;;  %v5121_v9 = vadd.f32 -1.0, %v6339_v18 }
 0x281   : > { %v3517_v22 = vmul.f32 1.442695, %v3451_v21  ;;  %v3454_v26 = vadd.f32 %v5589_v23, %v7737_v16  ;;  %5739 = vmatprep.mubr.f32.mxu1 %v3555_v46  ;;  %vm3495_vm6 = vcmp.gt.f32.partialorder %v3451_v21, 0.0 }
 0x282   : > { %v3556_v28 = vsel %vm3492_vm3, %v3438_v11, %v5121_v9 }
 0x283   : > { %6344 = vpow2.f32 %v3517_v22  ;;  %v3519_v19 = vmul.f32 1.442695, %v3454_v26  ;;  %v5590_v49 = vpop.f32.mrb[112].mxu0  ;;  %5740 = vmatmul.mubr.f32.gmra.mrb[98].mxu1 %v3556_v28  ;;  %vm3496_vm7 = vcmp.gt.f32.partialorder %v3454_v26, 0.0 }
 0x284   : > { %v5591_v29 = vpop.f32.mrb[113].mxu0 }
 0x285   : > { %v6341_v32 = vpop.eup %6340  ;;  %6346 = vpow2.f32 %v3519_v19  ;;  %v5592_v33 = vadd.f32 %v5591_v29, %v5590_v49  ;;  %v5593_v54 = vpop.f32.mrb[114].mxu0 }
 0x286   : > { %v5594_v20 = vpop.f32.mrb[115].mxu0  ;;  %v5122_v56 = vadd.f32 -1.0, %v6341_v32 }
 0x287   : > { %v6343_v39 = vpop.eup %6342  ;;  %v3459_v40 = vadd.f32 %v5592_v33, %v7741_v47  ;;  %v5595_v50 = vadd.f32 %v5594_v20, %v5593_v54 }
 0x288   : > { %v3557_v16 = vsel %vm3493_vm4, %v3443_v59, %v5122_v56  ;;  %v5123_v62 = vadd.f32 -1.0, %v6343_v39 }
 0x289   : > { %v3521_v41 = vmul.f32 1.442695, %v3459_v40  ;;  %v3462_v44 = vadd.f32 %v5595_v50, %v7743_v38  ;;  %5742 = vmatprep.mubr.f32.mxu1 %v3557_v16  ;;  %vm3497_vm8 = vcmp.gt.f32.partialorder %v3459_v40, 0.0 }
 0x28a   : > { %v3558_v43 = vsel %vm3494_vm5, %v3446_v42, %v5123_v62 }
 0x28b   : > { %6348 = vpow2.f32 %v3521_v41  ;;  %v3523_v3 = vmul.f32 1.442695, %v3462_v44  ;;  %v5596_v37 = vpop.f32.mrb[116].mxu0  ;;  %5743 = vmatmul.mubr.f32.gmra.mrb[100].mxu1 %v3558_v43  ;;  %vm3498_vm9 = vcmp.gt.f32.partialorder %v3462_v44, 0.0 }
 0x28c   : > { %v5597_v6 = vpop.f32.mrb[117].mxu0 }
 0x28d   : > { %v6345_v48 = vpop.eup %6344  ;;  %6350 = vpow2.f32 %v3523_v3  ;;  %v5598_v51 = vadd.f32 %v5597_v6, %v5596_v37  ;;  %v5599_v7 = vpop.f32.mrb[118].mxu0 }
 0x28e   : > { %v5600_v47 = vpop.f32.mrb[119].mxu0  ;;  %v5124_v45 = vadd.f32 -1.0, %v6345_v48 }
 0x28f   : > { %v6347_v11 = vpop.eup %6346  ;;  %v3467_v17 = vadd.f32 %v5598_v51, %v7747_v10  ;;  %v5601_v53 = vadd.f32 %v5600_v47, %v5599_v7 }
 0x290   : > { %v3559_v38 = vsel %vm3495_vm6, %v3451_v21, %v5124_v45  ;;  %v5125_v58 = vadd.f32 -1.0, %v6347_v11 }
 0x291   : > { %v3525_v60 = vmul.f32 1.442695, %v3467_v17  ;;  %v3470_v24 = vadd.f32 %v5601_v53, %v7749_v57  ;;  %5745 = vmatprep.mubr.f32.mxu1 %v3559_v38  ;;  %vm3499_vm10 = vcmp.gt.f32.partialorder %v3467_v17, 0.0 }
 0x292   : > { %v3560_v13 = vsel %vm3496_vm7, %v3454_v26, %v5125_v58 }
 0x293   : > { %6352 = vpow2.f32 %v3525_v60  ;;  %v3527_v61 = vmul.f32 1.442695, %v3470_v24  ;;  %v5602_v63 = vpop.f32.mrb[120].mxu0  ;;  %5746 = vmatmul.mubr.f32.gmra.mrb[102].mxu1 %v3560_v13  ;;  %vm3500_vm11 = vcmp.gt.f32.partialorder %v3470_v24, 0.0  ;;  %v6588_v60 = vmov (!%p5134_p10), 0.0  }
 0x294   : > { %v5603_v1 = vpop.f32.mrb[121].mxu0  ;;  %3735 = vst.msk [vmem:[#allocation2] sm:$0xff] (!%p5134_p10), %vm3734_vm0, %v6588_v60  ;;  %3736 = vst.msk [vmem:[#allocation2 + $0x8] sm:$0xff] (!%p5134_p10), %vm3734_vm0, %v6588_v60 }
 0x295   : > { %v6349_v59 = vpop.eup %6348  ;;  %6354 = vpow2.f32 %v3527_v61  ;;  %v5604_v27 = vadd.f32 %v5603_v1, %v5602_v63  ;;  %v5605_v35 = vpop.f32.mrb[122].mxu0  ;;  %3737 = vst.msk [vmem:[#allocation2 + $0x10] sm:$0xff] (!%p5134_p10), %vm3734_vm0, %v6588_v60  ;;  %3738 = vst.msk [vmem:[#allocation2 + $0x18] sm:$0xff] (!%p5134_p10), %vm3734_vm0, %v6588_v60 }
 0x296   : > { %v5606_v10 = vpop.f32.mrb[123].mxu0  ;;  %v5126_v2 = vadd.f32 -1.0, %v6349_v59  ;;  %3739 = vst.msk [vmem:[#allocation2 + $0x20] sm:$0xff] (!%p5134_p10), %vm3734_vm0, %v6588_v60  ;;  %3740 = vst.msk [vmem:[#allocation2 + $0x28] sm:$0xff] (!%p5134_p10), %vm3734_vm0, %v6588_v60 }
 0x297   : > { %v6351_v4 = vpop.eup %6350  ;;  %v3475_v42 = vadd.f32 %v5604_v27, %v7753_v34  ;;  %v5607_v5 = vadd.f32 %v5606_v10, %v5605_v35  ;;  %3741 = vst.msk [vmem:[#allocation2 + $0x30] sm:$0xff] (!%p5134_p10), %vm3734_vm0, %v6588_v60  ;;  %3742 = vst.msk [vmem:[#allocation2 + $0x38] sm:$0xff] (!%p5134_p10), %vm3734_vm0, %v6588_v60 }
 0x298   : > { %v3561_v57 = vsel %vm3497_vm8, %v3459_v40, %v5126_v2  ;;  %v5127_v0 = vadd.f32 -1.0, %v6351_v4  ;;  %3743 = vst.msk [vmem:[#allocation2 + $0x40] sm:$0xff] (!%p5134_p10), %vm3734_vm0, %v6588_v60  ;;  %3744 = vst.msk [vmem:[#allocation2 + $0x48] sm:$0xff] (!%p5134_p10), %vm3734_vm0, %v6588_v60 }
 0x299   : > { %v3529_v30 = vmul.f32 1.442695, %v3475_v42  ;;  %v3478_v8 = vadd.f32 %v5607_v5, %v7755_v12  ;;  %5748 = vmatprep.mubr.f32.mxu1 %v3561_v57  ;;  %vm3501_vm12 = vcmp.gt.f32.partialorder %v3475_v42, 0.0  ;;  %3745 = vst.msk [vmem:[#allocation2 + $0x50] sm:$0xff] (!%p5134_p10), %vm3734_vm0, %v6588_v60  ;;  %3746 = vst.msk [vmem:[#allocation2 + $0x58] sm:$0xff] (!%p5134_p10), %vm3734_vm0, %v6588_v60 }
 0x29a   : > { %v3562_v14 = vsel %vm3498_vm9, %v3462_v44, %v5127_v0  ;;  %3747 = vst.msk [vmem:[#allocation2 + $0x60] sm:$0xff] (!%p5134_p10), %vm3734_vm0, %v6588_v60  ;;  %3748 = vst.msk [vmem:[#allocation2 + $0x68] sm:$0xff] (!%p5134_p10), %vm3734_vm0, %v6588_v60 }
 0x29b   : > { %6356 = vpow2.f32 %v3529_v30  ;;  %v3531_v25 = vmul.f32 1.442695, %v3478_v8  ;;  %v5608_v36 = vpop.f32.mrb[124].mxu0  ;;  %5749 = vmatmul.mubr.f32.gmra.mrb[104].mxu1 %v3562_v14  ;;  %vm3502_vm13 = vcmp.gt.f32.partialorder %v3478_v8, 0.0  ;;  %3749 = vst.msk [vmem:[#allocation2 + $0x70] sm:$0xff] (!%p5134_p10), %vm3734_vm0, %v6588_v60  ;;  %3750 = vst.msk [vmem:[#allocation2 + $0x78] sm:$0xff] (!%p5134_p10), %vm3734_vm0, %v6588_v60 }
 0x29c   : > { %v5609_v55 = vpop.f32.mrb[125].mxu0 }
 0x29d   : > { %v6353_v15 = vpop.eup %6352  ;;  %6358 = vpow2.f32 %v3531_v25  ;;  %v5610_v18 = vadd.f32 %v5609_v55, %v5608_v36  ;;  %v5611_v21 = vpop.f32.mrb[126].mxu0 }
 0x29e   : > { %v5612_v34 = vpop.f32.mrb[127].mxu0  ;;  %v5128_v23 = vadd.f32 -1.0, %v6353_v15 }
 0x29f   : > { %v6355_v46 = vpop.eup %6354  ;;  %v3483_v9 = vadd.f32 %v5610_v18, %v7759_v52  ;;  %v5613_v22 = vadd.f32 %v5612_v34, %v5611_v21 }
 0x2a0   : > { %v3563_v12 = vsel %vm3499_vm10, %v3467_v17, %v5128_v23  ;;  %v5129_v26 = vadd.f32 -1.0, %v6355_v46 }
 0x2a1   : > { %v3533_v28 = vmul.f32 1.442695, %v3483_v9  ;;  %v3486_v19 = vadd.f32 %v5613_v22, %v7761_v31  ;;  %5751 = vmatprep.mubr.f32.mxu1 %v3563_v12  ;;  %vm3503_vm14 = vcmp.gt.f32.partialorder %v3483_v9, 0.0 }
 0x2a2   : > { %v3564_v49 = vsel %vm3500_vm11, %v3470_v24, %v5129_v26 }
 0x2a3   : > { %6360 = vpow2.f32 %v3533_v28  ;;  %v3535_v29 = vmul.f32 1.442695, %v3486_v19  ;;  %5752 = vmatmul.mubr.f32.gmra.mrb[106].mxu1 %v3564_v49  ;;  %vm3504_vm15 = vcmp.gt.f32.partialorder %v3486_v19, 0.0 }
 0x2a5   : > { %v6357_v32 = vpop.eup %6356  ;;  %6362 = vpow2.f32 %v3535_v29 }
 0x2a6   : > { %v5130_v33 = vadd.f32 -1.0, %v6357_v32 }
 0x2a7   : > { %v6359_v54 = vpop.eup %6358 }
 0x2a8   : > { %v3565_v20 = vsel %vm3501_vm12, %v3475_v42, %v5130_v33  ;;  %v5131_v52 = vadd.f32 -1.0, %v6359_v54 }
 0x2a9   : > { %5754 = vmatprep.mubr.f32.mxu1 %v3565_v20 }
 0x2aa   : > { %v3566_v56 = vsel %vm3502_vm13, %v3478_v8, %v5131_v52 }
 0x2ab   : > { %5755 = vmatmul.mubr.f32.gmra.mrb[108].mxu1 %v3566_v56 }
 0x2ad   : > { %v6361_v39 = vpop.eup %6360 }
 0x2ae   : > { %v5132_v40 = vadd.f32 -1.0, %v6361_v39 }
 0x2af   : > { %v6363_v31 = vpop.eup %6362 }
 0x2b0   : > { %v3567_v50 = vsel %vm3503_vm14, %v3483_v9, %v5132_v40  ;;  %v5133_v16 = vadd.f32 -1.0, %v6363_v31 }
 0x2b1   : > { %5757 = vmatprep.mubr.f32.mxu1 %v3567_v50 }
 0x2b2   : > { %v3568_v62 = vsel %vm3504_vm15, %v3486_v19, %v5133_v16 }
 0x2b3   : > { %5758 = vmatmul.mubr.f32.gmra.mrb[110].mxu1 %v3568_v62 }
 0x34e   : > { %v5738_v41 = vpop.f32.mrb[96].mxu1 }
 0x34f   : > { %v3651_v44 = vpop.f32.mrb[97].mxu1 }
 0x356   : > { %v5741_v43 = vpop.f32.mrb[98].mxu1 }
 0x357   : > { %v3661_v3 = vpop.f32.mrb[99].mxu1 }
 0x35e   : > { %v5744_v37 = vpop.f32.mrb[100].mxu1 }
 0x35f   : > { %v3671_v6 = vpop.f32.mrb[101].mxu1 }
 0x366   : > { %v5747_v48 = vpop.f32.mrb[102].mxu1 }
 0x367   : > { %v3681_v51 = vpop.f32.mrb[103].mxu1 }
 0x36e   : > { %v5750_v7 = vpop.f32.mrb[104].mxu1 }
 0x36f   : > { %v3691_v47 = vpop.f32.mrb[105].mxu1 }
 0x376   : > { %v5753_v45 = vpop.f32.mrb[106].mxu1 }
 0x377   : > { %v3701_v11 = vpop.f32.mrb[107].mxu1 }
 0x37e   : > { %v7779_v17 = vpop.f32.mrb[108].mxu1 }
 0x37f   : > { %v3711_v53 = vpop.f32.mrb[109].mxu1 }
 0x381   : > { %3733 = sbr.rel (%p5134_p10) target bundleno = 904 (0x388), region = 93 }
 0x386   : > { %v7781_v38 = vpop.f32.mrb[110].mxu1 }
 0x387   : > { %v3721_v58 = vpop.f32.mrb[111].mxu1 }
 0x388 PF: > { %v3751_v24 = vld [vmem:[#allocation2] sm:$0xff]  ;;  %vm3783_vm1 = vcmask 195584   ;;  %v3752_v13 = vld [vmem:[#allocation2 + $0x8] sm:$0xff]  ;;  %v3753_v61 = vld [vmem:[#allocation2 + $0x10] sm:$0xff]  ;;  %p5135_p11 = scmp.ne.s32.totalorder %s6665_s27, 2 }
 0x389   : > { %v3767_v63 = vadd.f32 %v3751_v24, %v3651_v44  ;;  %v3768_v1 = vadd.f32 %v5738_v41, %v3752_v13  ;;  %v3769_v59 = vadd.f32 %v3753_v61, %v3661_v3  ;;  %v3754_v27 = vld [vmem:[#allocation2 + $0x18] sm:$0xff]  ;;  %v3755_v35 = vld [vmem:[#allocation2 + $0x20] sm:$0xff]  ;;  %v3756_v10 = vld [vmem:[#allocation2 + $0x28] sm:$0xff]  ;;  %s6589_s13 = smov (!%p5135_p11), 12   ;;  %s6590_s14 = smov (!%p5135_p11), 116   ;;  %vm3852_vm2 = vcmask (!%p5135_p11), 97280  }
 0x38a   : > { %v3770_v2 = vadd.f32 %v5741_v43, %v3754_v27  ;;  %v3771_v4 = vadd.f32 %v3755_v35, %v3671_v6  ;;  %v3772_v42 = vadd.f32 %v5744_v37, %v3756_v10  ;;  %v3757_v5 = vld [vmem:[#allocation2 + $0x30] sm:$0xff]  ;;  %v3758_v57 = vld [vmem:[#allocation2 + $0x38] sm:$0xff]  ;;  %v3759_v0 = vld [vmem:[#allocation2 + $0x40] sm:$0xff]  ;;  %s6592_s24 = smov (!%p5135_p11), 3   ;;  %s6594_s26 = smov (!%p5135_p11), 2   ;;  %vm4017_vm14 = vcmask (!%p5135_p11), 23552  }
 0x38b   : > { %3784 = vst.msk [vmem:[#allocation2] sm:$0xff] %vm3783_vm1, %v3767_v63  ;;  %3785 = vst.msk [vmem:[#allocation2 + $0x8] sm:$0xff] %vm3783_vm1, %v3768_v1  ;;  %v3773_v30 = vadd.f32 %v3757_v5, %v3681_v51  ;;  %v3774_v8 = vadd.f32 %v5747_v48, %v3758_v57  ;;  %v3775_v14 = vadd.f32 %v3759_v0, %v3691_v47  ;;  %v3760_v25 = vld [vmem:[#allocation2 + $0x48] sm:$0xff]  ;;  %v3761_v36 = vld [vmem:[#allocation2 + $0x50] sm:$0xff]  ;;  %s6595_s29 = smov (!%p5135_p11), 1   ;;  %s6596_s30 = smov (!%p5135_p11), 4  }
 0x38c   : > { %3786 = vst.msk [vmem:[#allocation2 + $0x10] sm:$0xff] %vm3783_vm1, %v3769_v59  ;;  %v3762_v55 = vld [vmem:[#allocation2 + $0x58] sm:$0xff]  ;;  %3787 = vst.msk [vmem:[#allocation2 + $0x18] sm:$0xff] %vm3783_vm1, %v3770_v2  ;;  %v3776_v15 = vadd.f32 %v5750_v7, %v3760_v25  ;;  %v3777_v18 = vadd.f32 %v3761_v36, %v3701_v11  ;;  %v3763_v34 = vld [vmem:[#allocation2 + $0x60] sm:$0xff]  ;;  %3803 = sbr.rel (%p5135_p11) target bundleno = 3897 (0xf39), region = 97  ;;  %vm4020_vm15 = vcmask (!%p5135_p11), 220160  }
 0x38d   : > { %3788 = vst.msk [vmem:[#allocation2 + $0x20] sm:$0xff] %vm3783_vm1, %v3771_v4  ;;  %3789 = vst.msk [vmem:[#allocation2 + $0x28] sm:$0xff] %vm3783_vm1, %v3772_v42  ;;  %v3778_v21 = vadd.f32 %v5753_v45, %v3762_v55  ;;  %v3764_v23 = vld [vmem:[#allocation2 + $0x68] sm:$0xff]  ;;  %v3765_v46 = vld [vmem:[#allocation2 + $0x70] sm:$0xff]  ;;  %v3779_v9 = vadd.f32 %v3763_v34, %v3711_v53  ;;  %s6597_s9 = smov (!%p5135_p11), 126   ;;  %s6598_s22 = smov (!%p5135_p11), 127  }
 0x38e   : > { %3790 = vst.msk [vmem:[#allocation2 + $0x30] sm:$0xff] %vm3783_vm1, %v3773_v30  ;;  %3791 = vst.msk [vmem:[#allocation2 + $0x38] sm:$0xff] %vm3783_vm1, %v3774_v8  ;;  %v3780_v22 = vadd.f32 %v7779_v17, %v3764_v23  ;;  %v3781_v12 = vadd.f32 %v3765_v46, %v3721_v58  ;;  %v3766_v26 = vld [vmem:[#allocation2 + $0x78] sm:$0xff]  ;;  %v3901_v47 = vld [vmem:[%s8127_s4] sm:$0xff] (!%p5135_p11)  ;;  %v6591_v17 = vmov (!%p5135_p11), 0   ;;  %s6599_s10 = smov (!%p5135_p11), 125  }
 0x38f   : > { %3792 = vst.msk [vmem:[#allocation2 + $0x40] sm:$0xff] %vm3783_vm1, %v3775_v14  ;;  %3793 = vst.msk [vmem:[#allocation2 + $0x48] sm:$0xff] %vm3783_vm1, %v3776_v15  ;;  %v3782_v28 = vadd.f32 %v7781_v38, %v3766_v26  ;;  %5792 = vmatprep.mubr.f32.mxu0 (!%p5135_p11), %v3901_v47  ;;  %v7853_v45 = vld [vmem:[%s8127_s4 + $0x38] sm:$0xff] (!%p5135_p11)  ;;  %v7858_v11 = vld [vmem:[%s8127_s4 + $0x30] sm:$0xff] (!%p5135_p11)  ;;  %6405 = vset.pattern.permute.xlu1 (!%p5135_p11), %v6591_v17  ;;  %vm4122_vm0 = vcmask (!%p5135_p11), 523264   ;;  %s6601_s16 = smov (!%p5135_p11), 64  }
 0x390   : > { %3794 = vst.msk [vmem:[#allocation2 + $0x50] sm:$0xff] %vm3783_vm1, %v3777_v18  ;;  %3795 = vst.msk [vmem:[#allocation2 + $0x58] sm:$0xff] %vm3783_vm1, %v3778_v21  ;;  %6404 = vset.pattern.permute.xlu0 (!%p5135_p11), %v6591_v17  ;;  %s6603_s17 = smov (!%p5135_p11), 6   ;;  %s6604_s18 = smov (!%p5135_p11), 124  }
 0x391   : > { %3796 = vst.msk [vmem:[#allocation2 + $0x60] sm:$0xff] %vm3783_vm1, %v3779_v9  ;;  %3797 = vst.msk [vmem:[#allocation2 + $0x68] sm:$0xff] %vm3783_vm1, %v3780_v22  ;;  %s6605_s21 = smov (!%p5135_p11), 122  }
 0x392   : > { %3798 = vst.msk [vmem:[#allocation2 + $0x70] sm:$0xff] %vm3783_vm1, %v3781_v12  ;;  %3799 = vst.msk [vmem:[#allocation2 + $0x78] sm:$0xff] %vm3783_vm1, %v3782_v28  ;;  %v3804_v50 = vld [vmem:[#allocation2] sm:$0xff] (!%p5135_p11)  ;;  %v3805_v16 = vld [vmem:[#allocation2 + $0x8] sm:$0xff] (!%p5135_p11) }
 0x393   : > { %v3806_v62 = vld [vmem:[#allocation2 + $0x10] sm:$0xff]  ;;  %v3807_v41 = vld [vmem:[#allocation2 + $0x18] sm:$0xff]  ;;  %v6384_v44 = vpack.i.bf16 %v3805_v16, %v3804_v50 }
 0x394   : > { %v6389_v43 = vpack.i.bf16 %v3807_v41, %v3806_v62  ;;  %v3808_v3 = vld [vmem:[#allocation2 + $0x20] sm:$0xff]  ;;  %v3809_v37 = vld [vmem:[#allocation2 + $0x28] sm:$0xff] }
 0x395   : > { %v3810_v6 = vld [vmem:[#allocation2 + $0x30] sm:$0xff]  ;;  %v3811_v48 = vld [vmem:[#allocation2 + $0x38] sm:$0xff]  ;;  %v6394_v51 = vpack.i.bf16 %v3809_v37, %v3808_v3 }
 0x396   : > { %v7819_v19 = vld [vmem:[#allocation2 + $0x40] sm:$0xff]  ;;  %v7821_v49 = vld [vmem:[#allocation2 + $0x48] sm:$0xff]  ;;  %v6399_v7 = vpack.i.bf16 %v3811_v48, %v3810_v6 }
 0x397   : > { %v7823_v29 = vld [vmem:[#allocation2 + $0x50] sm:$0xff]  ;;  %v6364_v32 = vpack.i.bf16 %v7821_v49, %v7819_v19  ;;  %v7827_v33 = vld [vmem:[#allocation2 + $0x58] sm:$0xff] }
 0x398   : > { %v7829_v54 = vld [vmem:[#allocation2 + $0x60] sm:$0xff]  ;;  %v7831_v20 = vld [vmem:[#allocation2 + $0x68] sm:$0xff]  ;;  %v6369_v40 = vpack.i.bf16 %v7827_v33, %v7823_v29 }
 0x399   : > { %v6374_v52 = vpack.i.bf16 %v7831_v20, %v7829_v54  ;;  %v7835_v56 = vld [vmem:[#allocation2 + $0x70] sm:$0xff]  ;;  %v7837_v39 = vld [vmem:[#allocation2 + $0x78] sm:$0xff]  ;;  %6365 = vrot.lane.b32.xlu0 %v6364_v32, %s6589_s13 }
 0x39a   : > { %v6379_v31 = vpack.i.bf16 %v7837_v39, %v7835_v56 }
 0x39b   : > { %6375 = vrot.lane.b32.xlu1 %v6374_v52, %s6589_s13 }
 0x39d   : > { %6370 = vrot.lane.b32.xlu0 %v6369_v40, %s6589_s13 }
 0x39f   : > { %6380 = vrot.lane.b32.xlu1 %v6379_v31, %s6589_s13 }
 0x3a1   : > { %6385 = vrot.lane.b32.xlu0 %v6384_v44, %s6590_s14 }
 0x3a3   : > { %6390 = vrot.lane.b32.xlu1 %v6389_v43, %s6590_s14 }
 0x3a5   : > { %6395 = vrot.lane.b32.xlu0 %v6394_v51, %s6590_s14 }
 0x3a7   : > { %6400 = vrot.lane.b32.xlu1 %v6399_v7, %s6590_s14 }
 0x3a9   : > { %3907 = vperm.xlu0 %6404, %v7858_v11  }
 0x3ab   : > { %3912 = vperm.xlu1 %6405, %v7853_v45  }
 0x40b   : > { %v6366_v53 = vpop.permute.xlu0 %6365 }
 0x40c   : > { %v6368_v38 = vunpack.i.h.bf16 %v6366_v53  ;;  %v6367_v58 = vunpack.i.l.bf16 %v6366_v53 }
 0x40d   : > { %v6376_v60 = vpop.permute.xlu1 %6375 }
 0x40e   : > { %v6378_v24 = vunpack.i.h.bf16 %v6376_v60  ;;  %v6377_v13 = vunpack.i.l.bf16 %v6376_v60  ;;  %v3853_v61 = vsel %vm3852_vm2, %v3804_v50, %v6367_v58  ;;  %v3854_v63 = vsel %vm3852_vm2, %v3805_v16, %v6368_v38 }
 0x40f   : > { %v6371_v1 = vpop.permute.xlu0 %6370  ;;  %v5903_v59 = vpack.c.bf16 %v3854_v63, %v3853_v61 }
 0x410   : > { %v6373_v27 = vunpack.i.h.bf16 %v6371_v1  ;;  %v6372_v35 = vunpack.i.l.bf16 %v6371_v1  ;;  %v3857_v2 = vsel %vm3852_vm2, %v3808_v3, %v6377_v13  ;;  %v3858_v4 = vsel %vm3852_vm2, %v3809_v37, %v6378_v24 }
 0x411   : > { %v6381_v10 = vpop.permute.xlu1 %6380  ;;  %5904 = vmatprep.subr.bf16.mxu0 %v5903_v59  ;;  %v5911_v8 = vpack.c.bf16 %v3858_v4, %v3857_v2  ;;  %v6593_v1 = vmov 0.0  }
 0x412   : > { %v6383_v42 = vunpack.i.h.bf16 %v6381_v10  ;;  %v6382_v5 = vunpack.i.l.bf16 %v6381_v10  ;;  %5906 = vmatpush3.bf16.msra.mxu0 %v5903_v59  ;;  %v3855_v57 = vsel %vm3852_vm2, %v3806_v62, %v6372_v35  ;;  %v3856_v0 = vsel %vm3852_vm2, %v3807_v41, %v6373_v27 }
 0x413   : > { %v5907_v30 = vpack.c.bf16 %v3856_v0, %v3855_v57  ;;  %v6386_v14 = vpop.permute.xlu0 %6385 }
 0x414   : > { %v6388_v25 = vunpack.i.h.bf16 %v6386_v14  ;;  %v6387_v36 = vunpack.i.l.bf16 %v6386_v14  ;;  %v3859_v55 = vsel %vm3852_vm2, %v3810_v6, %v6382_v5  ;;  %v3860_v15 = vsel %vm3852_vm2, %v3811_v48, %v6383_v42 }
 0x415   : > { %5908 = vmatprep.subr.bf16.mxu0 %v5907_v30  ;;  %v6391_v18 = vpop.permute.xlu1 %6390  ;;  %v5915_v21 = vpack.c.bf16 %v3860_v15, %v3859_v55 }
 0x416   : > { %5910 = vmatpush3.bf16.msra.mxu0 %v5907_v30  ;;  %v6393_v34 = vunpack.i.h.bf16 %v6391_v18  ;;  %v6392_v23 = vunpack.i.l.bf16 %v6391_v18  ;;  %v3893_v46 = vsel %vm3852_vm2, %v6387_v36, %v7819_v19  ;;  %v3894_v9 = vsel %vm3852_vm2, %v6388_v25, %v7821_v49 }
 0x417   : > { %5912 = vmatprep.subr.bf16.mxu0 %v5911_v8  ;;  %v6396_v22 = vpop.permute.xlu0 %6395  ;;  %v5919_v12 = vpack.c.bf16 %v3894_v9, %v3893_v46 }
 0x418   : > { %v6398_v26 = vunpack.i.h.bf16 %v6396_v22  ;;  %v6397_v28 = vunpack.i.l.bf16 %v6396_v22  ;;  %v3895_v32 = vsel %vm3852_vm2, %v6392_v23, %v7823_v29  ;;  %v3896_v52 = vsel %vm3852_vm2, %v6393_v34, %v7827_v33 }
 0x419   : > { %v6401_v40 = vpop.permute.xlu1 %6400  ;;  %v5923_v31 = vpack.c.bf16 %v3896_v52, %v3895_v32 }
 0x41a   : > { %5914 = vmatpush3.bf16.msra.mxu0 %v5911_v8  ;;  %v6403_v19 = vunpack.i.h.bf16 %v6401_v40  ;;  %v6402_v50 = vunpack.i.l.bf16 %v6401_v40  ;;  %v3897_v49 = vsel %vm3852_vm2, %v6397_v28, %v7829_v54  ;;  %v3898_v16 = vsel %vm3852_vm2, %v6398_v26, %v7831_v20  ;;  %v3902_v54 = vld [vmem:[%s8127_s4 + $0x8] sm:$0xff] }
 0x41b   : > { %5916 = vmatprep.subr.bf16.mxu0 %v5915_v21  ;;  %v5927_v62 = vpack.c.bf16 %v3898_v16, %v3897_v49  ;;  %v4000_v20 = vlaneseq  ;;  %v6600_v16 = vmov 1  }
 0x41c   : > { %v3899_v29 = vsel %vm3852_vm2, %v6402_v50, %v7835_v56  ;;  %v3900_v33 = vsel %vm3852_vm2, %v6403_v19, %v7837_v39  ;;  %v7943_v50 = vld [vmem:[%s8127_s4 + $0x10] sm:$0xff]  ;;  %6442 = vset.pattern.permute.xlu1 %v6600_v16  ;;  %6441 = vset.pattern.permute.xlu0 %v6600_v16  ;;  %v6602_v16 = vmov 2  }
 0x41d   : > { %v5931_v41 = vpack.c.bf16 %v3900_v33, %v3899_v29  ;;  %v7890_v56 = vand.u32 127, %v4000_v20  ;;  %5811 = vmatprep.mubr.msk.f32.mxu1 %vm4122_vm0, %v7943_v50 }
 0x41e   : > { %5918 = vmatpush3.bf16.msra.mxu0 %v5915_v21 }
 0x41f   : > { %5920 = vmatprep.subr.bf16.mxu0 %v5919_v12  ;;  %v5138_v7 = vadd.s32 4294967284, %v7890_v56  ;;  %vm4002_vm3 = vcmp.ge.s32.totalorder %v7890_v56, 12 }
 0x421   : > { %v7895_v47 = vsel %vm4002_vm3, %v5138_v7, %v7890_v56 }
 0x422   : > { %5922 = vmatpush3.bf16.msra.mxu0 %v5919_v12  ;;  %v4035_v17 = vadd.s32 4294967295, %v7895_v47  ;;  %v4023_v53 = vadd.s32 4294967294, %v7895_v47  ;;  %vm4048_vm7 = vcmp.lt.s32.totalorder %v7895_v47, 12  ;;  %v4058_v61 = vadd.s32 1, %v7895_v47 }
 0x423   : > { %5924 = vmatprep.subr.bf16.mxu0 %v5923_v31  ;;  %v5141_v59 = vsel %vm4048_vm7, 1.0, %v6593_v1 }
 0x424   : > { %vm4036_vm4 = vcmp.ge.s32.totalorder %v4035_v17, 0  ;;  %vm4037_vm5 = vcmp.lt.s32.totalorder %v4035_v17, 12  ;;  %vm4024_vm8 = vcmp.ge.s32.totalorder %v4023_v53, 0  ;;  %vm4025_vm11 = vcmp.lt.s32.totalorder %v4023_v53, 12 }
 0x425   : > { %vm4038_vm10 = vmand %vm4036_vm4, %vm4037_vm5  ;;  %vm4060_vm13 = vcmp.lt.s32.totalorder %v4058_v61, 12 }
 0x426   : > { %5926 = vmatpush3.bf16.msra.mxu0 %v5923_v31  ;;  %v5140_v27 = vsel %vm4038_vm10, 1.0, %v6593_v1  ;;  %vm4026_vm12 = vmand %vm4024_vm8, %vm4025_vm11  ;;  %v5142_v10 = vsel %vm4060_vm13, 1.0, %v6593_v1 }
 0x427   : > { %5928 = vmatprep.subr.bf16.mxu0 %v5927_v62  ;;  %v5139_v35 = vsel %vm4026_vm12, 1.0, %v6593_v1 }
 0x428   : > { %v3908_v43 = vpop.permute.xlu0 %3907 }
 0x42a   : > { %5930 = vmatpush3.bf16.msra.mxu0 %v5927_v62  ;;  %v3913_v44 = vpop.permute.xlu1 %3912 }
 0x42b   : > { %5932 = vmatprep.subr.bf16.mxu0 %v5931_v41 }
 0x42e   : > { %5934 = vmatpush3.bf16.msra.mxu0 %v5931_v41 }
 0x431   : > { %5793 = vmatmul.mubr.f32.vlgmr.msra.gmra.mrb[0].mxu0 %v3902_v54 }
 0x504   : > { %v5794_v3 = vpop.f32.mrb[0].mxu0 }
 0x505   : > { %v3987_v37 = vadd.f32 %v5794_v3, %v3913_v44  ;;  %v3981_v39 = vpop.f32.mrb[1].mxu0 }
 0x506   : > { %v3982_v6 = vadd.f32 %v3981_v39, %v3908_v43 }
 0x507   : > { %v3994_v48 = vmul.f32 1.442695, %v3987_v37  ;;  %vm3991_vm6 = vcmp.gt.f32.partialorder %v3987_v37, 0.0 }
 0x508   : > { %v3992_v51 = vmul.f32 1.442695, %v3982_v6  ;;  %vm3990_vm9 = vcmp.gt.f32.partialorder %v3982_v6, 0.0 }
 0x509   : > { %6514 = vpow2.f32 %v3994_v48 }
 0x50a   : > { %6516 = vpow2.f32 %v3992_v51  ;;  %v4006_v51 = vld [vmem:[%s8127_s4 + $0x18] sm:$0xff] }
 0x513   : > { %v6515_v38 = vpop.eup %6514 }
 0x514   : > { %v6517_v58 = vpop.eup %6516  ;;  %v5137_v60 = vadd.f32 -1.0, %v6515_v38 }
 0x515   : > { %v5136_v24 = vadd.f32 -1.0, %v6517_v58 }
 0x516   : > { %v7900_v13 = vsel %vm3991_vm6, %v3987_v37, %v5137_v60 }
 0x517   : > { %4013 = vrot.lane.b32.xlu0 %v7900_v13, %s6592_s24  ;;  %v7905_v63 = vsel %vm3990_vm9, %v3982_v6, %v5136_v24 }
 0x518   : > { %4011 = vrot.lane.b32.xlu1 %v7905_v63, %s6592_s24 }
 0x51b   : > { %4053 = vrot.lane.b32.xlu0 %v5141_v59, %s6592_s24 }
 0x51c   : > { %4042 = vrot.lane.b32.xlu1 %v5140_v27, %s6594_s26 }
 0x51f   : > { %4030 = vrot.lane.b32.xlu0 %v5139_v35, %s6595_s29 }
 0x520   : > { %4065 = vrot.lane.b32.xlu1 %v5142_v10, %s6596_s30 }
 0x589   : > { %v4014_v2 = vpop.permute.xlu0 %4013 }
 0x58a   : > { %v4019_v4 = vsel %vm4017_vm14, 0.0, %v4014_v2  ;;  %v4012_v42 = vpop.permute.xlu1 %4011 }
 0x58b   : > { %v4018_v5 = vsel %vm4017_vm14, 0.0, %v4012_v42  ;;  %v4022_v0 = vsel %vm4020_vm15, %v4019_v4, 0.0 }
 0x58c   : > { %v4021_v57 = vsel %vm4020_vm15, %v4018_v5, 0.0 }
 0x58d   : > { %v7918_v30 = vpop.permute.xlu0 %4053 }
 0x58e   : > { %v4056_v8 = vmul.f32 %v7918_v30, %v4021_v57  ;;  %v4057_v14 = vmul.f32 %v7918_v30, %v4022_v0  ;;  %v7922_v25 = vpop.permute.xlu1 %4042 }
 0x58f   : > { %v4045_v36 = vmul.f32 %v7922_v25, %v4021_v57  ;;  %v4046_v55 = vmul.f32 %v7922_v25, %v4022_v0 }
 0x590   : > { %v6411_v15 = vpack.i.bf16 %v4057_v14, %v4056_v8 }
 0x591   : > { %v7926_v18 = vpop.permute.xlu0 %4030  ;;  %v6406_v21 = vpack.i.bf16 %v4046_v55, %v4045_v36 }
 0x592   : > { %v4033_v34 = vmul.f32 %v7926_v18, %v4021_v57  ;;  %v4034_v23 = vmul.f32 %v7926_v18, %v4022_v0  ;;  %6412 = vrot.lane.b32.xlu0 %v6411_v15, %s6597_s9  ;;  %v7931_v46 = vpop.permute.xlu1 %4065 }
 0x593   : > { %6407 = vrot.lane.b32.xlu1 %v6406_v21, %s6598_s22  ;;  %v4068_v9 = vmul.f32 %v7931_v46, %v4021_v57  ;;  %v4069_v22 = vmul.f32 %v7931_v46, %v4022_v0 }
 0x594   : > { %v6421_v12 = vpack.i.bf16 %v4034_v23, %v4033_v34 }
 0x595   : > { %v6416_v26 = vpack.i.bf16 %v4069_v22, %v4068_v9 }
 0x596   : > { %6422 = vrot.lane.b32.xlu0 %v6421_v12, %s6598_s22 }
 0x597   : > { %6417 = vrot.lane.b32.xlu1 %v6416_v26, %s6599_s10 }
 0x604   : > { %v6413_v28 = vpop.permute.xlu0 %6412 }
 0x605   : > { %v6408_v32 = vpop.permute.xlu1 %6407  ;;  %6432 = vrot.lane.b32.xlu0 %v6413_v28, %s6598_s22 }
 0x606   : > { %6427 = vrot.lane.b32.xlu1 %v6408_v32, %s6598_s22 }
 0x608   : > { %v6423_v52 = vpop.permute.xlu0 %6422 }
 0x609   : > { %v6425_v40 = vunpack.i.h.bf16 %v6423_v52  ;;  %v6424_v31 = vunpack.i.l.bf16 %v6423_v52  ;;  %v6418_v19 = vpop.permute.xlu1 %6417  ;;  %4089 = vperm.xlu0 %6441, %v7858_v11  }
 0x60a   : > { %6437 = vrot.lane.b32.xlu1 %v6418_v19, %s6598_s22 }
 0x60b   : > { %v5935_v49 = vpack.c.bf16 %v6425_v40, %v6424_v31 }
 0x60d   : > { %5936 = vmatprep.subr.bf16.mxu1 %v5935_v49  ;;  %6478 = vset.pattern.permute.xlu0 %v6602_v16 }
 0x60e   : > { %5938 = vmatpush3.bf16.msra.mxu1 %v5935_v49  ;;  %4093 = vperm.xlu1 %6442, %v7853_v45  }
 0x612   : > { %6479 = vset.pattern.permute.xlu1 %v6602_v16 }
 0x677   : > { %v6433_v62 = vpop.permute.xlu0 %6432 }
 0x678   : > { %v6428_v29 = vpop.permute.xlu1 %6427  ;;  %v6435_v33 = vunpack.i.h.bf16 %v6433_v62  ;;  %v6434_v41 = vunpack.i.l.bf16 %v6433_v62 }
 0x679   : > { %v6430_v54 = vunpack.i.h.bf16 %v6428_v29  ;;  %v6429_v44 = vunpack.i.l.bf16 %v6428_v29 }
 0x67a   : > { %v5943_v37 = vpack.c.bf16 %v6435_v33, %v6434_v41 }
 0x67b   : > { %v5939_v43 = vpack.c.bf16 %v6430_v54, %v6429_v44 }
 0x67c   : > { %v6438_v3 = vpop.permute.xlu1 %6437 }
 0x67d   : > { %v6440_v39 = vunpack.i.h.bf16 %v6438_v3  ;;  %v6439_v6 = vunpack.i.l.bf16 %v6438_v3  ;;  %5940 = vmatprep.subr.bf16.mxu1 %v5939_v43 }
 0x67e   : > { %5942 = vmatpush3.bf16.msra.mxu1 %v5939_v43 }
 0x67f   : > { %5944 = vmatprep.subr.bf16.mxu1 %v5943_v37  ;;  %v5947_v48 = vpack.c.bf16 %v6440_v39, %v6439_v6 }
 0x682   : > { %5946 = vmatpush3.bf16.msra.mxu1 %v5943_v37 }
 0x683   : > { %5948 = vmatprep.subr.bf16.mxu1 %v5947_v48 }
 0x686   : > { %5950 = vmatpush3.bf16.msra.mxu1 %v5947_v48 }
 0x688   : > { %v4090_v17 = vpop.permute.xlu0 %4089 }
 0x689   : > { %5812 = vmatmul.mubr.msk.f32.vlgmr.msra.gmra.mrb[0].mxu1 %vm4122_vm0, %v4006_v51 }
 0x68d   : > { %v4094_v7 = vpop.permute.xlu1 %4093 }
 0x75c   : > { %v5813_v53 = vpop.f32.mrb[0].mxu1 }
 0x75d   : > { %v4201_v38 = vadd.f32 %v5813_v53, %v4094_v7  ;;  %v4195_v58 = vpop.f32.mrb[1].mxu1 }
 0x75e   : > { %v4196_v60 = vadd.f32 %v4195_v58, %v4090_v17 }
 0x75f   : > { %v4208_v24 = vmul.f32 1.442695, %v4201_v38  ;;  %vm4205_vm1 = vcmp.gt.f32.partialorder %v4201_v38, 0.0 }
 0x760   : > { %v4206_v61 = vmul.f32 1.442695, %v4196_v60  ;;  %vm4204_vm3 = vcmp.gt.f32.partialorder %v4196_v60, 0.0 }
 0x761   : > { %6518 = vpow2.f32 %v4208_v24 }
 0x762   : > { %6520 = vpow2.f32 %v4206_v61 }
 0x76b   : > { %v6519_v59 = vpop.eup %6518 }
 0x76c   : > { %v6521_v27 = vpop.eup %6520  ;;  %v5146_v35 = vadd.f32 -1.0, %v6519_v59 }
 0x76d   : > { %v5145_v10 = vadd.f32 -1.0, %v6521_v27 }
 0x76e   : > { %v4213_v2 = vsel %vm4205_vm1, %v4201_v38, %v5146_v35  ;;  %vm4811_vm1 = vcmask 9216  }
 0x76f   : > { %4218 = vrot.lane.b32.xlu0 %v4213_v2, %s6592_s24  ;;  %v4212_v4 = vsel %vm4204_vm3, %v4196_v60, %v5145_v10  ;;  %v4405_v10 = vadd.s32 3, %v7895_v47 }
 0x770   : > { %4216 = vrot.lane.b32.xlu1 %v4212_v4, %s6592_s24 }
 0x771   : > { %vm4407_vm6 = vcmp.lt.s32.totalorder %v4405_v10, 12 }
 0x7e1   : > { %v4219_v42 = vpop.permute.xlu0 %4218 }
 0x7e2   : > { %v4223_v5 = vsel %vm4017_vm14, 0.0, %v4219_v42  ;;  %v4217_v57 = vpop.permute.xlu1 %4216 }
 0x7e3   : > { %v4225_v0 = vsel %vm4020_vm15, %v4223_v5, 0.0  ;;  %v4222_v8 = vsel %vm4017_vm14, 0.0, %v4217_v57 }
 0x7e4   : > { %v4229_v14 = vmul.f32 %v4225_v0, %v7922_v25  ;;  %v4231_v36 = vmul.f32 %v4225_v0, %v7918_v30  ;;  %v4224_v55 = vsel %vm4020_vm15, %v4222_v8, 0.0  ;;  %v4227_v34 = vmul.f32 %v4225_v0, %v7926_v18 }
 0x7e5   : > { %v4228_v15 = vmul.f32 %v4224_v55, %v7922_v25  ;;  %v4230_v21 = vmul.f32 %v4224_v55, %v7918_v30  ;;  %v4233_v23 = vmul.f32 %v4225_v0, %v7931_v46  ;;  %v4226_v9 = vmul.f32 %v4224_v55, %v7926_v18 }
 0x7e6   : > { %v4232_v22 = vmul.f32 %v4224_v55, %v7931_v46  ;;  %v5152_v0 = vsel %vm4407_vm6, 1.0, %v6593_v1  ;;  %v4393_v8 = vadd.s32 4294967293, %v7895_v47 }
 0x7e7   : > { %v6448_v12 = vpack.i.bf16 %v4231_v36, %v4230_v21  ;;  %v6443_v26 = vpack.i.bf16 %v4229_v14, %v4228_v15  ;;  %v6458_v32 = vpack.i.bf16 %v4227_v34, %v4226_v9 }
 0x7e8   : > { %v6453_v28 = vpack.i.bf16 %v4233_v23, %v4232_v22  ;;  %vm4394_vm7 = vcmp.ge.s32.totalorder %v4393_v8, 0  ;;  %vm4395_vm8 = vcmp.lt.s32.totalorder %v4393_v8, 12 }
 0x7e9   : > { %6449 = vrot.lane.b32.xlu0 %v6448_v12, %s6597_s9  ;;  %6444 = vrot.lane.b32.xlu1 %v6443_v26, %s6598_s22  ;;  %vm4396_vm9 = vmand %vm4394_vm7, %vm4395_vm8 }
 0x7ed   : > { %6454 = vrot.lane.b32.xlu1 %v6453_v28, %s6599_s10  ;;  %6459 = vrot.lane.b32.xlu0 %v6458_v32, %s6598_s22 }
 0x85b   : > { %v6450_v30 = vpop.permute.xlu0 %6449  ;;  %v6445_v52 = vpop.permute.xlu1 %6444 }
 0x85c   : > { %6464 = vrot.lane.b32.xlu1 %v6445_v52, %s6598_s22  ;;  %6469 = vrot.lane.b32.xlu0 %v6450_v30, %s6598_s22 }
 0x85f   : > { %v6455_v40 = vpop.permute.xlu1 %6454  ;;  %v6460_v31 = vpop.permute.xlu0 %6459 }
 0x860   : > { %v6462_v19 = vunpack.i.h.bf16 %v6460_v31  ;;  %v6461_v18 = vunpack.i.l.bf16 %v6460_v31  ;;  %6474 = vrot.lane.b32.xlu1 %v6455_v40, %s6598_s22  ;;  %4260 = vrot.lane.b32.xlu0 %v7943_v50, %s6601_s16  ;;  %v8017_v40 = vld [vmem:[%s8127_s4 + $0x20] sm:$0xff] }
 0x861   : > { %5849 = vmatprep.mubr.msk.f32.mxu0 %vm4122_vm0, %v8017_v40 }
 0x862   : > { %v5951_v49 = vpack.c.bf16 %v6462_v19, %v6461_v18  ;;  %v6606_v19 = vmov 3  }
 0x864   : > { %5952 = vmatprep.subr.bf16.mxu1 %v5951_v49  ;;  %4262 = vrot.lane.b32.xlu1 %v4006_v51, %s6601_s16 }
 0x865   : > { %5954 = vmatpush3.bf16.msra.mxu1 %v5951_v49  ;;  %4253 = vperm.xlu0 %6478, %v7858_v11  }
 0x868   : > { %4257 = vperm.xlu1 %6479, %v7853_v45  }
 0x869   : > { %6496 = vset.pattern.permute.xlu0 %v6606_v19 }
 0x86c   : > { %6495 = vset.pattern.permute.xlu1 %v6606_v19 }
 0x8ce   : > { %v6465_v62 = vpop.permute.xlu1 %6464  ;;  %v6470_v29 = vpop.permute.xlu0 %6469 }
 0x8cf   : > { %v6467_v33 = vunpack.i.h.bf16 %v6465_v62  ;;  %v6466_v41 = vunpack.i.l.bf16 %v6465_v62  ;;  %v6472_v54 = vunpack.i.h.bf16 %v6470_v29  ;;  %v6471_v44 = vunpack.i.l.bf16 %v6470_v29 }
 0x8d1   : > { %v5955_v43 = vpack.c.bf16 %v6467_v33, %v6466_v41  ;;  %v5959_v37 = vpack.c.bf16 %v6472_v54, %v6471_v44 }
 0x8d2   : > { %v6475_v3 = vpop.permute.xlu1 %6474  ;;  %v4261_v6 = vpop.permute.xlu0 %4260 }
 0x8d3   : > { %v6477_v39 = vunpack.i.h.bf16 %v6475_v3  ;;  %v6476_v50 = vunpack.i.l.bf16 %v6475_v3  ;;  %5956 = vmatprep.subr.bf16.mxu1 %v5955_v43  ;;  %5830 = vmatprep.mubr.msk.f32.mxu1 %vm4122_vm0, %v4261_v6 }
 0x8d4   : > { %5958 = vmatpush3.bf16.msra.mxu1 %v5955_v43 }
 0x8d5   : > { %5960 = vmatprep.subr.bf16.mxu1 %v5959_v37  ;;  %v5963_v48 = vpack.c.bf16 %v6477_v39, %v6476_v50  ;;  %v4008_v39 = vld [vmem:[%s8127_s4 + $0x28] sm:$0xff] }
 0x8d6   : > { %v4263_v51 = vpop.permute.xlu1 %4262 }
 0x8d8   : > { %5962 = vmatpush3.bf16.msra.mxu1 %v5959_v37 }
 0x8d9   : > { %5964 = vmatprep.subr.bf16.mxu1 %v5963_v48 }
 0x8dc   : > { %5966 = vmatpush3.bf16.msra.mxu1 %v5963_v48 }
 0x8df   : > { %5831 = vmatmul.mubr.msk.f32.vlgmr.msra.gmra.mrb[2].mxu1 %vm4122_vm0, %v4263_v51 }
 0x8e4   : > { %v4254_v17 = vpop.permute.xlu0 %4253 }
 0x8e7   : > { %v4258_v7 = vpop.permute.xlu1 %4257 }
 0x9b2   : > { %v5832_v53 = vpop.f32.mrb[2].mxu1 }
 0x9b3   : > { %v4366_v38 = vadd.f32 %v5832_v53, %v4258_v7  ;;  %v4360_v58 = vpop.f32.mrb[3].mxu1 }
 0x9b4   : > { %v4361_v60 = vadd.f32 %v4360_v58, %v4254_v17 }
 0x9b5   : > { %v4373_v24 = vmul.f32 1.442695, %v4366_v38  ;;  %vm4370_vm4 = vcmp.gt.f32.partialorder %v4366_v38, 0.0 }
 0x9b6   : > { %v4371_v61 = vmul.f32 1.442695, %v4361_v60  ;;  %vm4369_vm5 = vcmp.gt.f32.partialorder %v4361_v60, 0.0 }
 0x9b7   : > { %6522 = vpow2.f32 %v4373_v24 }
 0x9b8   : > { %6524 = vpow2.f32 %v4371_v61 }
 0x9c1   : > { %v6523_v59 = vpop.eup %6522 }
 0x9c2   : > { %v6525_v27 = vpop.eup %6524  ;;  %v5150_v35 = vadd.f32 -1.0, %v6523_v59 }
 0x9c3   : > { %v5149_v2 = vadd.f32 -1.0, %v6525_v27 }
 0x9c4   : > { %v4378_v4 = vsel %vm4370_vm4, %v4366_v38, %v5150_v35 }
 0x9c5   : > { %v7984_v42 = vadd.f32 %v4378_v4, %v7900_v13  ;;  %v4377_v5 = vsel %vm4369_vm5, %v4361_v60, %v5149_v2  ;;  %v7996_v13 = vsel %vm4396_vm9, 1.0, %v6593_v1 }
 0x9c6   : > { %v7987_v57 = vadd.f32 %v4377_v5, %v7905_v63 }
 0x9c7   : > { %4385 = vrot.lane.b32.xlu0 %v7984_v42, %s6592_s24 }
 0x9c8   : > { %4383 = vrot.lane.b32.xlu1 %v7987_v57, %s6592_s24 }
 0x9cc   : > { %4412 = vrot.lane.b32.xlu1 %v5152_v0, %s6603_s17 }
 0xa39   : > { %v4386_v63 = vpop.permute.xlu0 %4385 }
 0xa3a   : > { %v4390_v14 = vsel %vm4017_vm14, 0.0, %v4386_v63  ;;  %v4384_v36 = vpop.permute.xlu1 %4383 }
 0xa3b   : > { %v4392_v55 = vsel %vm4020_vm15, %v4390_v14, 0.0  ;;  %v4389_v15 = vsel %vm4017_vm14, 0.0, %v4384_v36 }
 0xa3c   : > { %v4400_v21 = vmul.f32 %v7996_v13, %v4392_v55  ;;  %v4402_v34 = vmul.f32 %v4392_v55, %v7922_v25  ;;  %v4404_v47 = vmul.f32 %v4392_v55, %v7931_v46  ;;  %v4391_v23 = vsel %vm4020_vm15, %v4389_v15, 0.0 }
 0xa3d   : > { %v4399_v9 = vmul.f32 %v7996_v13, %v4391_v23  ;;  %v4401_v1 = vmul.f32 %v4391_v23, %v7922_v25  ;;  %v4403_v22 = vmul.f32 %v4391_v23, %v7931_v46 }
 0xa3e   : > { %v8008_v12 = vpop.permute.xlu1 %4412 }
 0xa3f   : > { %v4415_v26 = vmul.f32 %v8008_v12, %v4391_v23  ;;  %v4416_v28 = vmul.f32 %v8008_v12, %v4392_v55  ;;  %v6485_v32 = vpack.i.bf16 %v4404_v47, %v4403_v22  ;;  %v6480_v30 = vpack.i.bf16 %v4402_v34, %v4401_v1 }
 0xa40   : > { %v5967_v52 = vpack.c.bf16 %v4400_v21, %v4399_v9 }
 0xa41   : > { %6486 = vrot.lane.b32.xlu1 %v6485_v32, %s6604_s18  ;;  %6481 = vrot.lane.b32.xlu0 %v6480_v30, %s6597_s9  ;;  %v6490_v31 = vpack.i.bf16 %v4416_v28, %v4415_v26 }
 0xa42   : > { %5968 = vmatprep.subr.bf16.mxu0 %v5967_v52 }
 0xa43   : > { %5970 = vmatpush3.bf16.msra.mxu0 %v5967_v52 }
 0xa45   : > { %6491 = vrot.lane.b32.xlu0 %v6490_v31, %s6605_s21  ;;  %4442 = vperm.xlu1 %6495, %v7858_v11  }
 0xa49   : > { %4446 = vperm.xlu0 %6496, %v7853_v45  }
 0xab3   : > { %v6482_v18 = vpop.permute.xlu0 %6481  ;;  %v6487_v49 = vpop.permute.xlu1 %6486 }
 0xab4   : > { %v6484_v16 = vunpack.i.h.bf16 %v6482_v18  ;;  %v6483_v62 = vunpack.i.l.bf16 %v6482_v18  ;;  %v6489_v29 = vunpack.i.h.bf16 %v6487_v49  ;;  %v6488_v33 = vunpack.i.l.bf16 %v6487_v49 }
 0xab6   : > { %v5971_v41 = vpack.c.bf16 %v6484_v16, %v6483_v62  ;;  %v5975_v44 = vpack.c.bf16 %v6489_v29, %v6488_v33 }
 0xab7   : > { %v6492_v54 = vpop.permute.xlu0 %6491 }
 0xab8   : > { %v6494_v43 = vunpack.i.h.bf16 %v6492_v54  ;;  %v6493_v3 = vunpack.i.l.bf16 %v6492_v54  ;;  %5972 = vmatprep.subr.bf16.mxu0 %v5971_v41 }
 0xab9   : > { %5974 = vmatpush3.bf16.msra.mxu0 %v5971_v41 }
 0xaba   : > { %5976 = vmatprep.subr.bf16.mxu0 %v5975_v44  ;;  %v5979_v37 = vpack.c.bf16 %v6494_v43, %v6493_v3 }
 0xabd   : > { %5978 = vmatpush3.bf16.msra.mxu0 %v5975_v44 }
 0xabe   : > { %5980 = vmatprep.subr.bf16.mxu0 %v5979_v37 }
 0xac1   : > { %5982 = vmatpush3.bf16.msra.mxu0 %v5979_v37 }
 0xac4   : > { %5850 = vmatmul.mubr.msk.f32.vlgmr.msra.gmra.mrb[2].mxu0 %vm4122_vm0, %v4008_v39  ;;  %v4443_v6 = vpop.permute.xlu1 %4442 }
 0xac8   : > { %v4447_v50 = vpop.permute.xlu0 %4446 }
 0xb97   : > { %v5851_v48 = vpop.f32.mrb[2].mxu0 }
 0xb98   : > { %v4527_v51 = vadd.f32 %v5851_v48, %v4447_v50  ;;  %v4521_v7 = vpop.f32.mrb[3].mxu0  ;;  %v4690_v50 = vld [vmem:[%s8128_s5 + $0x18] sm:$0xff] }
 0xb99   : > { %v4522_v17 = vadd.f32 %v4521_v7, %v4443_v6  ;;  %v4687_v7 = vld [vmem:[%s8128_s5] sm:$0xff] }
 0xb9a   : > { %v4534_v53 = vmul.f32 1.442695, %v4527_v51  ;;  %vm4531_vm11 = vcmp.gt.f32.partialorder %v4527_v51, 0.0 }
 0xb9b   : > { %v4532_v38 = vmul.f32 1.442695, %v4522_v17  ;;  %vm4530_vm10 = vcmp.gt.f32.partialorder %v4522_v17, 0.0 }
 0xb9c   : > { %6526 = vpow2.f32 %v4534_v53 }
 0xb9d   : > { %6528 = vpow2.f32 %v4532_v38 }
 0xba6   : > { %v6527_v58 = vpop.eup %6526 }
 0xba7   : > { %v6529_v60 = vpop.eup %6528  ;;  %v5156_v59 = vadd.f32 -1.0, %v6527_v58  ;;  %v4689_v58 = vld [vmem:[%s8128_s5 + $0x10] sm:$0xff] }
 0xba8   : > { %v5155_v24 = vadd.f32 -1.0, %v6529_v60 }
 0xba9   : > { %v4539_v27 = vsel %vm4531_vm11, %v4527_v51, %v5156_v59 }
 0xbaa   : > { %v4538_v61 = vsel %vm4530_vm10, %v4522_v17, %v5155_v24  ;;  %v4688_v24 = vld [vmem:[%s8128_s5 + $0x8] sm:$0xff] }
 0xbab   : > { %4542 = vrot.lane.b32.xlu1 %v4538_v61, %s6592_s24 }
 0xbaf   : > { %4544 = vrot.lane.b32.xlu1 %v4539_v27, %s6592_s24 }
 0xc1d   : > { %v4543_v35 = vpop.permute.xlu1 %4542 }
 0xc1e   : > { %v4548_v10 = vsel %vm4017_vm14, 0.0, %v4543_v35 }
 0xc1f   : > { %v4550_v2 = vsel %vm4020_vm15, %v4548_v10, 0.0 }
 0xc20   : > { %v4552_v0 = vmul.f32 %v7996_v13, %v4550_v2  ;;  %v4554_v8 = vmul.f32 %v4550_v2, %v7922_v25  ;;  %v4556_v14 = vmul.f32 %v4550_v2, %v7931_v46  ;;  %v4558_v9 = vmul.f32 %v4550_v2, %v8008_v12 }
 0xc21   : > { %v4545_v4 = vpop.permute.xlu1 %4544 }
 0xc22   : > { %v4549_v5 = vsel %vm4017_vm14, 0.0, %v4545_v4  ;;  %vm4720_vm14 = vcmask 130112  }
 0xc23   : > { %v4551_v63 = vsel %vm4020_vm15, %v4549_v5, 0.0  ;;  %vm4731_vm15 = vcmask 1041409  }
 0xc24   : > { %v4553_v36 = vmul.f32 %v7996_v13, %v4551_v63  ;;  %v4555_v55 = vmul.f32 %v4551_v63, %v7922_v25  ;;  %v4557_v15 = vmul.f32 %v4551_v63, %v7931_v46  ;;  %v4559_v21 = vmul.f32 %v4551_v63, %v8008_v12 }
 0xc25   : > { %v6607_v25 = vmov 4  }
 0xc26   : > { %v6502_v34 = vpack.i.bf16 %v4557_v15, %v4556_v14  ;;  %v6497_v47 = vpack.i.bf16 %v4555_v55, %v4554_v8  ;;  %v5983_v23 = vpack.c.bf16 %v4553_v36, %v4552_v0  ;;  %v6507_v1 = vpack.i.bf16 %v4559_v21, %v4558_v9  ;;  %6513 = vset.pattern.permute.xlu0 %v6607_v25 }
 0xc27   : > { %6512 = vset.pattern.permute.xlu1 %v6607_v25  ;;  %v4712_v15 = vshrl.u32 %v4000_v20, 7  ;;  %v4715_v21 = vadd.s32 4294967288, %v7890_v56 }
 0xc28   : > { %6503 = vrot.lane.b32.xlu1 %v6502_v34, %s6604_s18  ;;  %6498 = vrot.lane.b32.xlu0 %v6497_v47, %s6597_s9 }
 0xc29   : > { %5984 = vmatprep.subr.bf16.mxu1 %v5983_v23  ;;  %v4713_v47 = vsub.s32 %v7890_v56, %v4712_v15 }
 0xc2a   : > { %5986 = vmatpush3.bf16.msra.mxu1 %v5983_v23  ;;  %v4718_v23 = vsub.s32 %v4715_v21, %v4712_v15 }
 0xc2c   : > { %6508 = vrot.lane.b32.xlu0 %v6507_v1, %s6605_s21  ;;  %4592 = vrot.lane.b32.xlu1 %v8017_v40, %s6601_s16 }
 0xc30   : > { %4594 = vrot.lane.b32.xlu0 %v4008_v39, %s6601_s16  ;;  %4585 = vperm.xlu1 %6512, %v7858_v11  }
 0xc34   : > { %4589 = vperm.xlu0 %6513, %v7853_v45  }
 0xc9a   : > { %v6504_v46 = vpop.permute.xlu1 %6503  ;;  %v6499_v13 = vpop.permute.xlu0 %6498 }
 0xc9b   : > { %v6506_v22 = vunpack.i.h.bf16 %v6504_v46  ;;  %v6505_v12 = vunpack.i.l.bf16 %v6504_v46  ;;  %v6501_v26 = vunpack.i.h.bf16 %v6499_v13  ;;  %v6500_v28 = vunpack.i.l.bf16 %v6499_v13 }
 0xc9d   : > { %v5987_v32 = vpack.c.bf16 %v6501_v26, %v6500_v28  ;;  %v5991_v31 = vpack.c.bf16 %v6506_v22, %v6505_v12 }
 0xc9e   : > { %v6509_v30 = vpop.permute.xlu0 %6508  ;;  %v4593_v52 = vpop.permute.xlu1 %4592 }
 0xc9f   : > { %v6511_v40 = vunpack.i.h.bf16 %v6509_v30  ;;  %v6510_v19 = vunpack.i.l.bf16 %v6509_v30  ;;  %5988 = vmatprep.subr.bf16.mxu1 %v5987_v32  ;;  %5868 = vmatprep.mubr.msk.f32.mxu1 %vm4122_vm0, %v4593_v52 }
 0xca0   : > { %5990 = vmatpush3.bf16.msra.mxu1 %v5987_v32 }
 0xca1   : > { %5992 = vmatprep.subr.bf16.mxu1 %v5991_v31  ;;  %v5995_v11 = vpack.c.bf16 %v6511_v40, %v6510_v19 }
 0xca2   : > { %v4595_v45 = vpop.permute.xlu0 %4594 }
 0xca4   : > { %5994 = vmatpush3.bf16.msra.mxu1 %v5991_v31 }
 0xca5   : > { %5996 = vmatprep.subr.bf16.mxu1 %v5995_v11 }
 0xca8   : > { %5998 = vmatpush3.bf16.msra.mxu1 %v5995_v11 }
 0xcab   : > { %5869 = vmatmul.mubr.msk.f32.vlgmr.msra.gmra.mrb[4].mxu1 %vm4122_vm0, %v4595_v45  ;;  %vm4734_vm0 = vcmask 123904  }
 0xcaf   : > { %v4586_v49 = vpop.permute.xlu1 %4585 }
 0xcb3   : > { %v4590_v18 = vpop.permute.xlu0 %4589 }
 0xd7e   : > { %v5870_v16 = vpop.f32.mrb[4].mxu1 }
 0xd7f   : > { %v4672_v62 = vadd.f32 %v5870_v16, %v4590_v18  ;;  %v4666_v29 = vpop.f32.mrb[5].mxu1 }
 0xd80   : > { %v4667_v33 = vadd.f32 %v4666_v29, %v4586_v49 }
 0xd81   : > { %v4679_v41 = vmul.f32 1.442695, %v4672_v62  ;;  %vm4676_vm12 = vcmp.gt.f32.partialorder %v4672_v62, 0.0 }
 0xd82   : > { %v4677_v54 = vmul.f32 1.442695, %v4667_v33  ;;  %vm4675_vm13 = vcmp.gt.f32.partialorder %v4667_v33, 0.0 }
 0xd83   : > { %6530 = vpow2.f32 %v4679_v41 }
 0xd84   : > { %6532 = vpow2.f32 %v4677_v54 }
 0xd8d   : > { %v6531_v44 = vpop.eup %6530 }
 0xd8e   : > { %v6533_v43 = vpop.eup %6532  ;;  %v5160_v3 = vadd.f32 -1.0, %v6531_v44 }
 0xd8f   : > { %v5159_v37 = vadd.f32 -1.0, %v6533_v43 }
 0xd90   : > { %v4684_v39 = vsel %vm4676_vm12, %v4672_v62, %v5160_v3 }
 0xd91   : > { %v4686_v6 = vadd.f32 %v4684_v39, %v7984_v42  ;;  %v4683_v48 = vsel %vm4675_vm13, %v4667_v33, %v5159_v37  ;;  %v5161_v33 = vld [vmem:[%s8129_s6] ss:$0 sm:$0xff] }
 0xd92   : > { %v4685_v51 = vadd.f32 %v4683_v48, %v7987_v57 }
 0xd93   : > { %v4694_v17 = vmul.f32 %v4690_v50, %v4686_v6  ;;  %v4692_v61 = vmul.f32 %v4688_v24, %v4686_v6 }
 0xd94   : > { %4740 = vrot.lane.b32.xlu1 %v4685_v51, %s6590_s14  ;;  %v4691_v38 = vmul.f32 %v4687_v7, %v4685_v51  ;;  %v4693_v57 = vmul.f32 %v4689_v58, %v4685_v51 }
 0xd95   : > { %v4704_v53 = vsel %vm3852_vm2, %v4694_v17, 0.0  ;;  %v4698_v59 = vsel %vm3852_vm2, %v4692_v61, 0.0 }
 0xd96   : > { %4705 = vadd.xlane.f32.xlu0 %v4704_v53  ;;  %v4695_v42 = vsel %vm3852_vm2, %v4691_v38, 0.0  ;;  %v4701_v60 = vsel %vm3852_vm2, %v4693_v57, 0.0 }
 0xd98   : > { %4742 = vrot.lane.b32.xlu1 %v4686_v6, %s6590_s14 }
 0xd9a   : > { %4696 = vadd.xlane.f32.xlu0 %v4695_v42 }
 0xd9e   : > { %4702 = vadd.xlane.f32.xlu0 %v4701_v60 }
 0xdbc   : > { %4699 = vadd.xlane.f32.xlu1 %v4698_v59 }
 0xe06   : > { %v4741_v27 = vpop.permute.xlu1 %4740 }
 0xe07   : > { %v4746_v35 = vmul.f32 %v4741_v27, %v4687_v7  ;;  %v4748_v10 = vmul.f32 %v4741_v27, %v4689_v58 }
 0xe09   : > { %v4750_v2 = vsel %vm3852_vm2, %v4746_v35, 0.0  ;;  %v4756_v8 = vsel %vm3852_vm2, %v4748_v10, 0.0 }
 0xe0a   : > { %4751 = vadd.xlane.f32.xlu1 %v4750_v2  ;;  %v4743_v4 = vpop.permute.xlu1 %4742 }
 0xe0b   : > { %v4747_v5 = vmul.f32 %v4743_v4, %v4688_v24  ;;  %v4749_v0 = vmul.f32 %v4743_v4, %v4690_v50 }
 0xe0d   : > { %v4753_v63 = vsel %vm3852_vm2, %v4747_v5, 0.0  ;;  %v4759_v14 = vsel %vm3852_vm2, %v4749_v0, 0.0  ;;  %vm4801_vm2 = vcmask 1040384  }
 0xe0e   : > { %4757 = vadd.xlane.f32.xlu1 %v4756_v8  ;;  %4754 = vadd.xlane.f32.xlu0 %v4753_v63 }
 0xe12   : > { %4760 = vadd.xlane.f32.xlu0 %v4759_v14 }
 0xe23   : > { %v4706_v36 = vpop.xlane.xlu0 %4705 }
 0xe24   : > { %v4729_v25 = vrot.slane %v4706_v36, %v4718_v23 }
 0xe27   : > { %v4697_v55 = vpop.xlane.xlu0 %4696 }
 0xe28   : > { %v4714_v46 = vrot.slane %v4697_v55, %v4713_v47 }
 0xe2b   : > { %v4703_v34 = vpop.xlane.xlu0 %4702 }
 0xe2c   : > { %v4725_v9 = vrot.slane %v4703_v34, %v4713_v47 }
 0xe2e   : > { %v4730_v12 = vsel %vm4720_vm14, %v4729_v25, %v4725_v9 }
 0xe49   : > { %v4700_v1 = vpop.xlane.xlu1 %4699 }
 0xe4a   : > { %v4719_v13 = vrot.slane %v4700_v1, %v4718_v23 }
 0xe4c   : > { %v4721_v22 = vsel %vm4720_vm14, %v4719_v13, %v4714_v46 }
 0xe4d   : > { %v4732_v20 = vsel %vm4731_vm15, %v4730_v12, %v4721_v22 }
 0xe4e   : > { %v4735_v26 = vsel %vm4734_vm0, %v4732_v20, 0.0 }
 0xe4f   : > { %4736 = vadd.xlane.f32.xlu1 %v4735_v26 }
 0xe97   : > { %v4752_v28 = vpop.xlane.xlu1 %4751 }
 0xe98   : > { %v4769_v31 = vrot.slane %v4752_v28, %v4713_v47 }
 0xe9b   : > { %v4755_v56 = vpop.xlane.xlu0 %4754  ;;  %v4758_v32 = vpop.xlane.xlu1 %4757 }
 0xe9c   : > { %v4773_v30 = vrot.slane %v4755_v56, %v4718_v23  ;;  %v4778_v40 = vrot.slane %v4758_v32, %v4713_v47 }
 0xe9e   : > { %v4774_v11 = vsel %vm4720_vm14, %v4773_v30, %v4769_v31 }
 0xe9f   : > { %v4761_v52 = vpop.xlane.xlu0 %4760 }
 0xea0   : > { %v4782_v19 = vrot.slane %v4761_v52, %v4718_v23 }
 0xea2   : > { %v4783_v45 = vsel %vm4720_vm14, %v4782_v19, %v4778_v40 }
 0xea3   : > { %v4784_v18 = vsel %vm4731_vm15, %v4783_v45, %v4774_v11 }
 0xea4   : > { %v4786_v49 = vsel %vm4734_vm0, %v4784_v18, 0.0 }
 0xea5   : > { %4787 = vadd.xlane.f32.xlu0 %v4786_v49 }
 0xedc   : > { %v4737_v16 = vpop.xlane.xlu1 %4736 }
 0xedd   : > { %v4793_v29 = vrot.slane %v4737_v16, %v4713_v47 }
 0xf32   : > { %v4788_v62 = vpop.xlane.xlu0 %4787 }
 0xf33   : > { %v4799_v41 = vrot.slane %v4788_v62, %v4713_v47 }
 0xf35   : > { %v4802_v54 = vsel %vm4801_vm2, %v4793_v29, %v4799_v41 }
 0xf36   : > { %v4810_v44 = vadd.f32 %v5161_v33, %v4802_v54 }
 0xf38   : > { %4812 = vst.msk [vmem:[#allocation4] sm:$0x3] %vm4811_vm1, %v4810_v44 }
 0xf39 PF: > { %p6005_p12 = scmp.eq.s32.totalorder %s6665_s27, 2  ;;  %s6608_s15 = smov [#allocation4]  }
 0xf3a   : > { %s4820_s16 = sshll.u32 %s6608_s15, 4  ;;  %s4821_s16 = int_to_ptr.vmem [resolvable:$true] %s4820_s16 }
 0xf3b   : > { %s6534_s17 = scalar_lea.vmem %s4821_s16, 32  ;;  %p6541_p2 = scmp.lt.s32.totalorder %s4821_s16, %s4821_s16 }
 0xf3c   : > { %p6535_p13 = scmp.ne.s32.totalorder %s4821_s16, %s6534_s17  ;;  %p6542_p3 = scmp.lt.s32.totalorder %s6534_s17, %s6534_s17 }
 0xf3e   : > { %p6536_p0 = pnand %p6535_p13, %p6005_p12  ;;  %p6543_p4 = por %p6542_p3, %p6541_p2 }
 0xf40   : > { %p6537_p1 = pneg %p6536_p0 }
 0xf42   : > { %p6544_p5 = pnand %p6543_p4, %p6537_p1 }
 0xf44   : > { %6547 = shalt.err (!%p6544_p5)
}
 0xf45   : > { %s6548_s20 = scalar_lea.hbm %s8130_s7, 32 }
 0xf46   : > { %p6549_p6 = scmp.ne.s32.totalorder %s8130_s7, %s6548_s20  ;;  %p6554_p9 = scmp.lt.u32.totalorder %s6548_s20, %s8130_s7 }
 0xf48   : > { %p6550_p7 = pnand %p6549_p6, %p6005_p12 }
 0xf4a   : > { %p6551_p8 = pneg %p6550_p7 }
 0xf4c   : > { %p6556_p10 = pnand %p6554_p9, %p6551_p8 }
 0xf4e   : > { %6559 = shalt.err (!%p6556_p10)
}
 0xf4f   : > { %6002 = dma.vmem_to_hbm [thread:$0]  (%p6005_p12), %s4821_s16, 32, %s8130_s7, [#allocation5]  }
 0xf50   : > { %6573 = dma.done.wait (%p6005_p12), [#allocation5], 32  }
 0xf51   : > { %6575 = vsyncadd (%p6005_p12), [#allocation5], 4294967264 }
 0xf52 PF: > { %p15_p11 = scmp.ge.s32.totalorder %s6668_s28, 5   ;;  %s8131_s24 = smov %s6582_s25 }
 0xf53   : > { %s8132_s25 = smov %s6677_s8  ;;  %s8133_s26 = smov %s6668_s28 }
 0xf54   :  { %17 = sbr.rel (!%p15_p11) target bundleno = 2 (0x2), region = 135 }
 0xf5b   :  { %4833 = vsyncpa [#allocation5], 1 }
 0xf5c   :  { %4835 = vsyncpa [#allocation5 + $0x1], 1 }

</bundles_post_ra>
